<compile_context>
chip_gen: v5e
topology: v5e:2x2
jax: 0.10.0
libtpu: 0.0.40
codegen_flags: <defaults>
</compile_context>

<pallas_src>
import functools

import numpy as np
import jax
import jax.numpy as jnp
from jax import lax
from jax.experimental import pallas as pl
from jax.experimental.pallas import tpu as pltpu


def _round_up(x, m):
    return ((x + m - 1) // m) * m


# Raster geometry for 84x84 inputs (hard requirement: linear1 expects 3136).
#   space-to-depth (8x8 blocks, zero-padded to 88x88) -> 11x11 raster (stride 11)
#   conv1 (8x8 s4) as 2x2 taps  -> 109-row raster, 10x10 useful, 128 ch
#   conv2 (4x4 s2) as 2x2 taps  ->  97-row raster,  9x9  useful,  64 ch
#   conv3 (3x3 s1) as 3x3 taps  ->  73-row raster,  7x7  useful,  64 ch
_RASTER = 11
_L0, _L1, _L2, _L3 = 121, 109, 97, 73


# ----------------------------------------------------------------------------
# Kernel 1: conv1 + conv2 + conv3 fused, one image per grid step.
# All slab reads are contiguous 2D ref slices; all matmuls are 2D bf16 with
# f32 accumulation; activations live in VMEM scratch.
# ----------------------------------------------------------------------------
def _convnet_kernel(x_ref, w1_ref, b1_ref, w2_ref, b2_ref, w3_ref, b3_ref,
                    out_ref, h1_ref, h2_ref, h3_ref):
    # conv1 (blocked): 2x2 taps, K = 64*C, N = 128 (= 2x2 output phases x 32 ch)
    acc = jnp.zeros((_L1, 128), jnp.float32)
    for i in range(2):
        for j in range(2):
            s = i * _RASTER + j
            acc = acc + jnp.dot(x_ref[s:s + _L1, :], w1_ref[i * 2 + j],
                                preferred_element_type=jnp.float32)
    h1_ref[...] = jnp.maximum(acc + b1_ref[...], 0.0).astype(jnp.bfloat16)

    # conv2 (blocked): 2x2 taps, K = 128, N = 64
    acc = jnp.zeros((_L2, 64), jnp.float32)
    for i in range(2):
        for j in range(2):
            s = i * _RASTER + j
            acc = acc + jnp.dot(h1_ref[s:s + _L2, :], w2_ref[i * 2 + j],
                                preferred_element_type=jnp.float32)
    h2_ref[...] = jnp.maximum(acc + b2_ref[...], 0.0).astype(jnp.bfloat16)

    # conv3: 3x3 taps, K = 64, N = 64
    acc = jnp.zeros((_L3, 64), jnp.float32)
    for i in range(3):
        for j in range(3):
            s = i * _RASTER + j
            acc = acc + jnp.dot(h2_ref[s:s + _L3, :], w3_ref[i * 3 + j],
                                preferred_element_type=jnp.float32)
    h3_ref[...] = jnp.maximum(acc + b3_ref[...], 0.0).astype(jnp.bfloat16)

    # Compact the stride-11 raster (useful rows at a*11+b) to the dense 7x7
    # feature grid (row a*7+b), matching the NHWC flatten order of lin1_w.
    for r in range(7):
        out_ref[r * 7:(r + 1) * 7, :] = h3_ref[r * _RASTER:r * _RASTER + 7, :]


def convnet_pallas(prepped, xblk):
    B, _, kc = xblk.shape  # (B, 121, 64*C)
    return pl.pallas_call(
        _convnet_kernel,
        out_shape=jax.ShapeDtypeStruct((B, 49, 64), jnp.bfloat16),
        grid=(B,),
        in_specs=[
            pl.BlockSpec((None, _L0, kc), lambda b: (b, 0, 0)),   # one image
            pl.BlockSpec((4, kc, 128), lambda b: (0, 0, 0)),      # VMEM-resident
            pl.BlockSpec((1, 128), lambda b: (0, 0)),
            pl.BlockSpec((4, 128, 64), lambda b: (0, 0, 0)),
            pl.BlockSpec((1, 64), lambda b: (0, 0)),
            pl.BlockSpec((9, 64, 64), lambda b: (0, 0, 0)),
            pl.BlockSpec((1, 64), lambda b: (0, 0)),
        ],
        out_specs=pl.BlockSpec((None, 49, 64), lambda b: (b, 0, 0)),
        scratch_shapes=[
            pltpu.VMEM((_L1, 128), jnp.bfloat16),
            pltpu.VMEM((_L2, 64), jnp.bfloat16),
            pltpu.VMEM((_L3, 64), jnp.bfloat16),
        ],
        compiler_params=pltpu.CompilerParams(
            dimension_semantics=("parallel",)),   # v7x: images split across TCs
    )(xblk, prepped["w1t"], prepped["b1"], prepped["w2t"], prepped["b2"],
      prepped["w3t"], prepped["b3"])


# ----------------------------------------------------------------------------
# Kernel 2: linear1 (relu) + linear2 fused.  lin1 tiled over N so the 3.2 MB
# weight streams; lin2 accumulated over those N tiles in f32 scratch (P3).
# ----------------------------------------------------------------------------
def _linear_kernel(feat_ref, w1_ref, b1_ref, w2_ref, b2_ref, out_ref, acc_ref):
    n = pl.program_id(1)

    @pl.when(n == 0)
    def _():
        acc_ref[...] = jnp.zeros_like(acc_ref)

    z = jnp.dot(feat_ref[...], w1_ref[...], preferred_element_type=jnp.float32)
    z = jnp.maximum(z + b1_ref[...], 0.0).astype(jnp.bfloat16)
    acc_ref[...] += jnp.dot(z, w2_ref[...], preferred_element_type=jnp.float32)

    @pl.when(n == pl.num_programs(1) - 1)
    def _():
        out_ref[...] = (acc_ref[...] + b2_ref[...]).astype(out_ref.dtype)


def linears_pallas(prepped, feat):
    Mp, K = feat.shape                      # Mp multiple of 16
    N1 = prepped["lin1_w"].shape[1]         # 512
    N2 = prepped["lin2_w"].shape[1]         # >= 128, lane-dense
    TN = 128
    TM = Mp if Mp <= 512 else 256
    assert Mp % TM == 0 and N1 % TN == 0
    return pl.pallas_call(
        _linear_kernel,
        out_shape=jax.ShapeDtypeStruct((Mp, N2), jnp.float32),
        grid=(Mp // TM, N1 // TN),
        in_specs=[
            pl.BlockSpec((TM, K), lambda m, n: (m, 0)),
            pl.BlockSpec((K, TN), lambda m, n: (0, n)),   # lin1 weight streams
            pl.BlockSpec((1, TN), lambda m, n: (0, n)),
            pl.BlockSpec((TN, N2), lambda m, n: (n, 0)),
            pl.BlockSpec((1, N2), lambda m, n: (0, 0)),
        ],
        out_specs=pl.BlockSpec((TM, N2), lambda m, n: (m, 0)),
        scratch_shapes=[pltpu.VMEM((TM, N2), jnp.float32)],
        compiler_params=pltpu.CompilerParams(
            dimension_semantics=("parallel", "arbitrary")),
    )(feat, prepped["lin1_w"], prepped["lin1_b"], prepped["lin2_w"],
      prepped["lin2_b"])


# ----------------------------------------------------------------------------
# XLA glue: single input relayout (NCHW -> padded space-to-depth raster, bf16).
# Same byte count as the raw input; padded rows/cols are never used (the
# blocked conv1 weights are structurally zero there, and the pad is zero).
# ----------------------------------------------------------------------------
def space_to_depth_input(x):
    B, C, H, W = x.shape
    assert H == 84 and W == 84, "Q_net requires 84x84 inputs (linear1 expects 3136)"
    x = jnp.transpose(x, (0, 2, 3, 1))                    # NHWC
    x = jnp.pad(x, ((0, 0), (0, 4), (0, 4), (0, 0)))      # 88x88
    x = x.reshape(B, 11, 8, 11, 8, C)
    x = jnp.transpose(x, (0, 1, 3, 2, 4, 5))              # (B, 11, 11, 8, 8, C)
    return x.reshape(B, _L0, 64 * C).astype(jnp.bfloat16)


# ----------------------------------------------------------------------------
# One-time weight re-layout (host side, numpy).
# ----------------------------------------------------------------------------
def prepare_params(params):
    W1 = np.asarray(params["conv1_w"], np.float32)   # (32, C, 8, 8)
    W2 = np.asarray(params["conv2_w"], np.float32)   # (64, 32, 4, 4)
    W3 = np.asarray(params["conv3_w"], np.float32)   # (64, 64, 3, 3)
    C = W1.shape[1]

    # conv1 as a blocked conv over the 8x8-block raster.
    #   input col  (dh, dw, c)  -> dh*8*C + dw*C + c
    #   output col (di, dj, o)  -> di*64 + dj*32 + o   (2x2 output phases x 32)
    w1t = np.zeros((4, 64 * C, 128), np.float32)
    for i in range(2):
        for j in range(2):
            for di in range(2):
                for dj in range(2):
                    for dh in range(8):
                        kh = 8 * i + dh - 4 * di
                        if not 0 <= kh < 8:
                            continue
                        for dw in range(8):
                            kw = 8 * j + dw - 4 * dj
                            if not 0 <= kw < 8:
                                continue
                            row = dh * 8 * C + dw * C
                            col = di * 64 + dj * 32
                            w1t[i * 2 + j, row:row + C, col:col + 32] = \
                                W1[:, :, kh, kw].T
    b1 = np.tile(np.asarray(params["conv1_b"], np.float32), 4)   # (di,dj,o) order

    # conv2 as a blocked conv consuming the (di, dj, o) channel order above.
    w2t = np.zeros((4, 128, 64), np.float32)
    for bi in range(2):
        for bj in range(2):
            for di in range(2):
                for dj in range(2):
                    r = di * 64 + dj * 32
                    w2t[bi * 2 + bj, r:r + 32, :] = \
                        W2[:, :, 2 * bi + di, 2 * bj + dj].T
    b2 = np.asarray(params["conv2_b"], np.float32)

    # conv3: plain stride-1 conv, one (64, 64) matrix per tap.
    w3t = np.stack([W3[:, :, i, j].T for i in range(3) for j in range(3)])
    b3 = np.asarray(params["conv3_b"], np.float32)

    # lin1: permute PyTorch's NCHW flatten (c*49 + h*7 + w) to the kernel's
    # NHWC flatten (h*448 + w*64 + c).
    lw1 = np.asarray(params["lin1_w"], np.float32).reshape(512, 64, 7, 7)
    lw1 = lw1.transpose(2, 3, 1, 0).reshape(3136, 512)

    # lin2: transpose + zero-pad N to a lane-dense 128.
    lw2 = np.asarray(params["lin2_w"], np.float32)
    oc = lw2.shape[0]
    n2 = _round_up(max(oc, 128), 128)
    lw2p = np.zeros((512, n2), np.float32)
    lw2p[:, :oc] = lw2.T
    lb2 = np.zeros((n2,), np.float32)
    lb2[:oc] = np.asarray(params["lin2_b"], np.float32)

    f32, bf16 = jnp.float32, jnp.bfloat16
    return {
        "w1t": jnp.asarray(w1t, bf16), "b1": jnp.asarray(b1, f32).reshape(1, 128),
        "w2t": jnp.asarray(w2t, bf16), "b2": jnp.asarray(b2, f32).reshape(1, 64),
        "w3t": jnp.asarray(w3t, bf16), "b3": jnp.asarray(b3, f32).reshape(1, 64),
        "lin1_w": jnp.asarray(lw1, bf16),
        "lin1_b": jnp.asarray(np.asarray(params["lin1_b"], np.float32)).reshape(1, 512),
        "lin2_w": jnp.asarray(lw2p, bf16),
        "lin2_b": jnp.asarray(lb2, f32).reshape(1, n2),
    }


# ----------------------------------------------------------------------------
# Forward pass
# ----------------------------------------------------------------------------
def q_net_forward(prepped, x, *, out_channel):
    B = x.shape[0]
    xblk = space_to_depth_input(x)            # (B, 121, 64*C) bf16
    feat = convnet_pallas(prepped, xblk)      # (B, 49, 64) bf16
    feat = feat.reshape(B, 3136)
    Mp = _round_up(B, 16)
    if Mp > 512:
        Mp = _round_up(Mp, 256)
    if Mp != B:
        feat = jnp.pad(feat, ((0, Mp - B), (0, 0)))
    q = linears_pallas(prepped, feat)         # (Mp, >=128) f32
    return q[:B, :out_channel]


# Same math (same prepared weights, same bf16 casts) with XLA ops — tight ref.
def q_net_forward_xla(prepped, x, *, out_channel):
    B = x.shape[0]
    xblk = space_to_depth_input(x)

    def conv_taps(h, wt, b, L, taps):
        acc = jnp.zeros((h.shape[0], L, wt.shape[-1]), jnp.float32)
        for t, (i, j) in enumerate(taps):
            s = i * _RASTER + j
            acc = acc + jnp.einsum("brk,kn->brn", h[:, s:s + L, :], wt[t],
                                   preferred_element_type=jnp.float32)
        return jnp.maximum(acc + b, 0.0).astype(jnp.bfloat16)

    t2 = [(i, j) for i in range(2) for j in range(2)]
    t3 = [(i, j) for i in range(3) for j in range(3)]
    h1 = conv_taps(xblk, prepped["w1t"], prepped["b1"], _L1, t2)
    h2 = conv_taps(h1, prepped["w2t"], prepped["b2"], _L2, t2)
    h3 = conv_taps(h2, prepped["w3t"], prepped["b3"], _L3, t3)
    idx = np.array([a * _RASTER + b for a in range(7) for b in range(7)])
    feat = h3[:, idx, :].reshape(B, 3136)
    z = jnp.dot(feat, prepped["lin1_w"], preferred_element_type=jnp.float32)
    z = jnp.maximum(z + prepped["lin1_b"], 0.0).astype(jnp.bfloat16)
    q = jnp.dot(z, prepped["lin2_w"],
                preferred_element_type=jnp.float32) + prepped["lin2_b"]
    return q[:, :out_channel]


# ----------------------------------------------------------------------------
# Deterministic parameter init (PyTorch-default-style uniform(-1/sqrt(fan_in)))
# ----------------------------------------------------------------------------
def init_params(key, in_channel, out_channel):
    def conv_init(k, o, c, ks):
        bound = 1.0 / ((c * ks * ks) ** 0.5)
        k1, k2 = jax.random.split(k)
        w = jax.random.uniform(k1, (o, c, ks, ks), jnp.float32, -bound, bound)
        b = jax.random.uniform(k2, (o,), jnp.float32, -bound, bound)
        return w, b

    def lin_init(k, i, o):
        bound = 1.0 / (i ** 0.5)
        k1, k2 = jax.random.split(k)
        w = jax.random.uniform(k1, (o, i), jnp.float32, -bound, bound)
        b = jax.random.uniform(k2, (o,), jnp.float32, -bound, bound)
        return w, b

    keys = jax.random.split(key, 5)
    p = {}
    p["conv1_w"], p["conv1_b"] = conv_init(keys[0], 32, in_channel, 8)
    p["conv2_w"], p["conv2_b"] = conv_init(keys[1], 64, 32, 4)
    p["conv3_w"], p["conv3_b"] = conv_init(keys[2], 64, 64, 3)
    p["lin1_w"], p["lin1_b"] = lin_init(keys[3], 3136, 512)
    p["lin2_w"], p["lin2_b"] = lin_init(keys[4], 512, out_channel)
    return p


# Pure-JAX f32 reference with exact PyTorch layout/semantics (loose check).
def q_net_reference(params, x):
    dn = ("NCHW", "OIHW", "NCHW")

    def conv(x, w, b, s):
        y = lax.conv_general_dilated(x, w, (s, s), "VALID", dimension_numbers=dn)
        return jax.nn.relu(y + b.reshape(1, -1, 1, 1))

    x = conv(x, params["conv1_w"], params["conv1_b"], 4)
    x = conv(x, params["conv2_w"], params["conv2_b"], 2)
    x = conv(x, params["conv3_w"], params["conv3_b"], 1)
    x = x.reshape(x.shape[0], -1)
    x = jax.nn.relu(x @ params["lin1_w"].T + params["lin1_b"])
    x = x @ params["lin2_w"].T + params["lin2_b"]
    return x


if __name__ == "__main__":
    in_channel, out_channel = 4, 6
    batch = 2
    key = jax.random.PRNGKey(0)
    k_param, k_x = jax.random.split(key)

    params = init_params(k_param, in_channel, out_channel)
    prepped = prepare_params(params)
    # 84x84 spatial is required by the architecture (linear1 expects 3136 = 64*7*7)
    x = jax.random.uniform(k_x, (batch, in_channel, 84, 84), jnp.float32)

    fwd = jax.jit(functools.partial(q_net_forward, out_channel=out_channel))
    out = jax.block_until_ready(fwd(prepped, x))
    assert out.shape == (batch, out_channel), out.shape

    # Tight check: identical bf16 math path, XLA matmuls instead of Pallas.
    out_xla = jax.block_until_ready(
        jax.jit(functools.partial(q_net_forward_xla,
                                  out_channel=out_channel))(prepped, x))
    assert jnp.allclose(out, out_xla, rtol=2e-2, atol=1e-2), (
        float(jnp.max(jnp.abs(out - out_xla))))

    # Loose check: full-precision f32 reference with PyTorch semantics
    # (differences are bf16 rounding of weights/activations only).
    ref = jax.block_until_ready(q_net_reference(params, x))
    assert jnp.allclose(out, ref, rtol=3e-2, atol=3e-2), (
        float(jnp.max(jnp.abs(out - ref))))

    print("KERNEL_OK")
</pallas_src>

<mosaic_0001>
module attributes {stable_mosaic.version = 11 : i64} {
  func.func @_convnet_kernel(%arg0: i32, %arg1: memref<1x121x256xbf16, #tpu.memory_space<vmem>>, %arg2: memref<4x256x128xbf16, #tpu.memory_space<vmem>>, %arg3: memref<1x128xf32, #tpu.memory_space<vmem>>, %arg4: memref<4x128x64xbf16, #tpu.memory_space<vmem>>, %arg5: memref<1x64xf32, #tpu.memory_space<vmem>>, %arg6: memref<9x64x64xbf16, #tpu.memory_space<vmem>>, %arg7: memref<1x64xf32, #tpu.memory_space<vmem>>, %arg8: memref<1x49x64xbf16, #tpu.memory_space<vmem>>, %arg9: memref<109x128xbf16, #tpu.memory_space<vmem>>, %arg10: memref<97x64xbf16, #tpu.memory_space<vmem>>, %arg11: memref<73x64xbf16, #tpu.memory_space<vmem>>) attributes {dimension_semantics = [#tpu.dimension_semantics<parallel>], iteration_bounds = array<i64: 2>, scalar_prefetch = 0 : i64, scratch_operands = 3 : i64, tpu.core_type = #tpu.core_type<tc>, window_params = [{transform_indices = @transform_0, window_bounds = array<i64: 1, 121, 256>}, {pipeline_mode = #tpu.pipeline_mode<synchronous>, transform_indices = @transform_1, window_bounds = array<i64: 4, 256, 128>}, {pipeline_mode = #tpu.pipeline_mode<synchronous>, transform_indices = @transform_2, window_bounds = array<i64: 1, 128>}, {pipeline_mode = #tpu.pipeline_mode<synchronous>, transform_indices = @transform_3, window_bounds = array<i64: 4, 128, 64>}, {pipeline_mode = #tpu.pipeline_mode<synchronous>, transform_indices = @transform_4, window_bounds = array<i64: 1, 64>}, {pipeline_mode = #tpu.pipeline_mode<synchronous>, transform_indices = @transform_5, window_bounds = array<i64: 9, 64, 64>}, {pipeline_mode = #tpu.pipeline_mode<synchronous>, transform_indices = @transform_6, window_bounds = array<i64: 1, 64>}, {transform_indices = @transform_7, window_bounds = array<i64: 1, 49, 64>}]} {
    %cst = arith.constant 0.000000e+00 : f32
    %0 = vector.broadcast %cst : f32 to vector<109x128xf32>
    %c0 = arith.constant 0 : index
    %c0_0 = arith.constant 0 : index
    %c0_1 = arith.constant 0 : index
    %1 = vector.load %arg1[%c0, %c0_0, %c0_1] : memref<1x121x256xbf16, #tpu.memory_space<vmem>>, vector<1x109x256xbf16>
    %2 = vector.shape_cast %1 : vector<1x109x256xbf16> to vector<109x256xbf16>
    %c0_2 = arith.constant 0 : index
    %c0_3 = arith.constant 0 : index
    %c0_4 = arith.constant 0 : index
    %3 = vector.load %arg2[%c0_2, %c0_3, %c0_4] : memref<4x256x128xbf16, #tpu.memory_space<vmem>>, vector<1x256x128xbf16>
    %4 = vector.shape_cast %3 : vector<1x256x128xbf16> to vector<256x128xbf16>
    %cst_5 = arith.constant dense<0.000000e+00> : vector<109x128xf32>
    %5 = tpu.matmul %2, %4, %cst_5 {dimension_numbers = #tpu.dot_dimension_numbers<[1], [0], [0], [1], [0, 0, 1, 1], [], []>} : vector<109x256xbf16>, vector<256x128xbf16>, vector<109x128xf32> -> vector<109x128xf32>
    %6 = arith.addf %0, %5 : vector<109x128xf32>
    %c0_6 = arith.constant 0 : index
    %c1 = arith.constant 1 : index
    %c0_7 = arith.constant 0 : index
    %7 = vector.load %arg1[%c0_6, %c1, %c0_7] : memref<1x121x256xbf16, #tpu.memory_space<vmem>>, vector<1x109x256xbf16>
    %8 = vector.shape_cast %7 : vector<1x109x256xbf16> to vector<109x256xbf16>
    %c1_8 = arith.constant 1 : index
    %c0_9 = arith.constant 0 : index
    %c0_10 = arith.constant 0 : index
    %9 = vector.load %arg2[%c1_8, %c0_9, %c0_10] : memref<4x256x128xbf16, #tpu.memory_space<vmem>>, vector<1x256x128xbf16>
    %10 = vector.shape_cast %9 : vector<1x256x128xbf16> to vector<256x128xbf16>
    %cst_11 = arith.constant dense<0.000000e+00> : vector<109x128xf32>
    %11 = tpu.matmul %8, %10, %cst_11 {dimension_numbers = #tpu.dot_dimension_numbers<[1], [0], [0], [1], [0, 0, 1, 1], [], []>} : vector<109x256xbf16>, vector<256x128xbf16>, vector<109x128xf32> -> vector<109x128xf32>
    %12 = arith.addf %6, %11 : vector<109x128xf32>
    %c0_12 = arith.constant 0 : index
    %c11 = arith.constant 11 : index
    %c0_13 = arith.constant 0 : index
    %13 = vector.load %arg1[%c0_12, %c11, %c0_13] : memref<1x121x256xbf16, #tpu.memory_space<vmem>>, vector<1x109x256xbf16>
    %14 = vector.shape_cast %13 : vector<1x109x256xbf16> to vector<109x256xbf16>
    %c2 = arith.constant 2 : index
    %c0_14 = arith.constant 0 : index
    %c0_15 = arith.constant 0 : index
    %15 = vector.load %arg2[%c2, %c0_14, %c0_15] : memref<4x256x128xbf16, #tpu.memory_space<vmem>>, vector<1x256x128xbf16>
    %16 = vector.shape_cast %15 : vector<1x256x128xbf16> to vector<256x128xbf16>
    %cst_16 = arith.constant dense<0.000000e+00> : vector<109x128xf32>
    %17 = tpu.matmul %14, %16, %cst_16 {dimension_numbers = #tpu.dot_dimension_numbers<[1], [0], [0], [1], [0, 0, 1, 1], [], []>} : vector<109x256xbf16>, vector<256x128xbf16>, vector<109x128xf32> -> vector<109x128xf32>
    %18 = arith.addf %12, %17 : vector<109x128xf32>
    %c0_17 = arith.constant 0 : index
    %c12 = arith.constant 12 : index
    %c0_18 = arith.constant 0 : index
    %19 = vector.load %arg1[%c0_17, %c12, %c0_18] : memref<1x121x256xbf16, #tpu.memory_space<vmem>>, vector<1x109x256xbf16>
    %20 = vector.shape_cast %19 : vector<1x109x256xbf16> to vector<109x256xbf16>
    %c3 = arith.constant 3 : index
    %c0_19 = arith.constant 0 : index
    %c0_20 = arith.constant 0 : index
    %21 = vector.load %arg2[%c3, %c0_19, %c0_20] : memref<4x256x128xbf16, #tpu.memory_space<vmem>>, vector<1x256x128xbf16>
    %22 = vector.shape_cast %21 : vector<1x256x128xbf16> to vector<256x128xbf16>
    %cst_21 = arith.constant dense<0.000000e+00> : vector<109x128xf32>
    %23 = tpu.matmul %20, %22, %cst_21 {dimension_numbers = #tpu.dot_dimension_numbers<[1], [0], [0], [1], [0, 0, 1, 1], [], []>} : vector<109x256xbf16>, vector<256x128xbf16>, vector<109x128xf32> -> vector<109x128xf32>
    %24 = arith.addf %18, %23 : vector<109x128xf32>
    %c0_22 = arith.constant 0 : index
    %c0_23 = arith.constant 0 : index
    %25 = vector.load %arg3[%c0_22, %c0_23] : memref<1x128xf32, #tpu.memory_space<vmem>>, vector<1x128xf32>
    %26 = vector.broadcast %25 : vector<1x128xf32> to vector<109x128xf32>
    %27 = arith.addf %24, %26 : vector<109x128xf32>
    %cst_24 = arith.constant 0.000000e+00 : f32
    %28 = vector.broadcast %cst_24 : f32 to vector<109x128xf32>
    %29 = arith.maximumf %27, %28 : vector<109x128xf32>
    %30 = arith.truncf %29 : vector<109x128xf32> to vector<109x128xbf16>
    %c0_25 = arith.constant 0 : index
    %c0_26 = arith.constant 0 : index
    %31 = vector.load %arg9[%c0_25, %c0_26] : memref<109x128xbf16, #tpu.memory_space<vmem>>, vector<109x128xbf16>
    tpu.vector_store %arg9[%c0_25, %c0_26], %30 {strides = array<i32>} : memref<109x128xbf16, #tpu.memory_space<vmem>>, vector<109x128xbf16>,
    %cst_27 = arith.constant 0.000000e+00 : f32
    %32 = vector.broadcast %cst_27 : f32 to vector<97x64xf32>
    %c0_28 = arith.constant 0 : index
    %c0_29 = arith.constant 0 : index
    %33 = vector.load %arg9[%c0_28, %c0_29] : memref<109x128xbf16, #tpu.memory_space<vmem>>, vector<97x128xbf16>
    %c0_30 = arith.constant 0 : index
    %c0_31 = arith.constant 0 : index
    %c0_32 = arith.constant 0 : index
    %34 = vector.load %arg4[%c0_30, %c0_31, %c0_32] : memref<4x128x64xbf16, #tpu.memory_space<vmem>>, vector<1x128x64xbf16>
    %35 = vector.shape_cast %34 : vector<1x128x64xbf16> to vector<128x64xbf16>
    %cst_33 = arith.constant dense<0.000000e+00> : vector<97x64xf32>
    %36 = tpu.matmul %33, %35, %cst_33 {dimension_numbers = #tpu.dot_dimension_numbers<[1], [0], [0], [1], [0, 0, 1, 1], [], []>} : vector<97x128xbf16>, vector<128x64xbf16>, vector<97x64xf32> -> vector<97x64xf32>
    %37 = arith.addf %32, %36 : vector<97x64xf32>
    %c1_34 = arith.constant 1 : index
    %c0_35 = arith.constant 0 : index
    %38 = vector.load %arg9[%c1_34, %c0_35] : memref<109x128xbf16, #tpu.memory_space<vmem>>, vector<97x128xbf16>
    %c1_36 = arith.constant 1 : index
    %c0_37 = arith.constant 0 : index
    %c0_38 = arith.constant 0 : index
    %39 = vector.load %arg4[%c1_36, %c0_37, %c0_38] : memref<4x128x64xbf16, #tpu.memory_space<vmem>>, vector<1x128x64xbf16>
    %40 = vector.shape_cast %39 : vector<1x128x64xbf16> to vector<128x64xbf16>
    %cst_39 = arith.constant dense<0.000000e+00> : vector<97x64xf32>
    %41 = tpu.matmul %38, %40, %cst_39 {dimension_numbers = #tpu.dot_dimension_numbers<[1], [0], [0], [1], [0, 0, 1, 1], [], []>} : vector<97x128xbf16>, vector<128x64xbf16>, vector<97x64xf32> -> vector<97x64xf32>
    %42 = arith.addf %37, %41 : vector<97x64xf32>
    %c11_40 = arith.constant 11 : index
    %c0_41 = arith.constant 0 : index
    %43 = vector.load %arg9[%c11_40, %c0_41] : memref<109x128xbf16, #tpu.memory_space<vmem>>, vector<97x128xbf16>
    %c2_42 = arith.constant 2 : index
    %c0_43 = arith.constant 0 : index
    %c0_44 = arith.constant 0 : index
    %44 = vector.load %arg4[%c2_42, %c0_43, %c0_44] : memref<4x128x64xbf16, #tpu.memory_space<vmem>>, vector<1x128x64xbf16>
    %45 = vector.shape_cast %44 : vector<1x128x64xbf16> to vector<128x64xbf16>
    %cst_45 = arith.constant dense<0.000000e+00> : vector<97x64xf32>
    %46 = tpu.matmul %43, %45, %cst_45 {dimension_numbers = #tpu.dot_dimension_numbers<[1], [0], [0], [1], [0, 0, 1, 1], [], []>} : vector<97x128xbf16>, vector<128x64xbf16>, vector<97x64xf32> -> vector<97x64xf32>
    %47 = arith.addf %42, %46 : vector<97x64xf32>
    %c12_46 = arith.constant 12 : index
    %c0_47 = arith.constant 0 : index
    %48 = vector.load %arg9[%c12_46, %c0_47] : memref<109x128xbf16, #tpu.memory_space<vmem>>, vector<97x128xbf16>
    %c3_48 = arith.constant 3 : index
    %c0_49 = arith.constant 0 : index
    %c0_50 = arith.constant 0 : index
    %49 = vector.load %arg4[%c3_48, %c0_49, %c0_50] : memref<4x128x64xbf16, #tpu.memory_space<vmem>>, vector<1x128x64xbf16>
    %50 = vector.shape_cast %49 : vector<1x128x64xbf16> to vector<128x64xbf16>
    %cst_51 = arith.constant dense<0.000000e+00> : vector<97x64xf32>
    %51 = tpu.matmul %48, %50, %cst_51 {dimension_numbers = #tpu.dot_dimension_numbers<[1], [0], [0], [1], [0, 0, 1, 1], [], []>} : vector<97x128xbf16>, vector<128x64xbf16>, vector<97x64xf32> -> vector<97x64xf32>
    %52 = arith.addf %47, %51 : vector<97x64xf32>
    %c0_52 = arith.constant 0 : index
    %c0_53 = arith.constant 0 : index
    %53 = vector.load %arg5[%c0_52, %c0_53] : memref<1x64xf32, #tpu.memory_space<vmem>>, vector<1x64xf32>
    %54 = vector.broadcast %53 : vector<1x64xf32> to vector<97x64xf32>
    %55 = arith.addf %52, %54 : vector<97x64xf32>
    %cst_54 = arith.constant 0.000000e+00 : f32
    %56 = vector.broadcast %cst_54 : f32 to vector<97x64xf32>
    %57 = arith.maximumf %55, %56 : vector<97x64xf32>
    %58 = arith.truncf %57 : vector<97x64xf32> to vector<97x64xbf16>
    %c0_55 = arith.constant 0 : index
    %c0_56 = arith.constant 0 : index
    %59 = vector.load %arg10[%c0_55, %c0_56] : memref<97x64xbf16, #tpu.memory_space<vmem>>, vector<97x64xbf16>
    tpu.vector_store %arg10[%c0_55, %c0_56], %58 {strides = array<i32>} : memref<97x64xbf16, #tpu.memory_space<vmem>>, vector<97x64xbf16>,
    %cst_57 = arith.constant 0.000000e+00 : f32
    %60 = vector.broadcast %cst_57 : f32 to vector<73x64xf32>
    %c0_58 = arith.constant 0 : index
    %c0_59 = arith.constant 0 : index
    %61 = vector.load %arg10[%c0_58, %c0_59] : memref<97x64xbf16, #tpu.memory_space<vmem>>, vector<73x64xbf16>
    %c0_60 = arith.constant 0 : index
    %c0_61 = arith.constant 0 : index
    %c0_62 = arith.constant 0 : index
    %62 = vector.load %arg6[%c0_60, %c0_61, %c0_62] : memref<9x64x64xbf16, #tpu.memory_space<vmem>>, vector<1x64x64xbf16>
    %63 = vector.shape_cast %62 : vector<1x64x64xbf16> to vector<64x64xbf16>
    %cst_63 = arith.constant dense<0.000000e+00> : vector<73x64xf32>
    %64 = tpu.matmul %61, %63, %cst_63 {dimension_numbers = #tpu.dot_dimension_numbers<[1], [0], [0], [1], [0, 0, 1, 1], [], []>} : vector<73x64xbf16>, vector<64x64xbf16>, vector<73x64xf32> -> vector<73x64xf32>
    %65 = arith.addf %60, %64 : vector<73x64xf32>
    %c1_64 = arith.constant 1 : index
    %c0_65 = arith.constant 0 : index
    %66 = vector.load %arg10[%c1_64, %c0_65] : memref<97x64xbf16, #tpu.memory_space<vmem>>, vector<73x64xbf16>
    %c1_66 = arith.constant 1 : index
    %c0_67 = arith.constant 0 : index
    %c0_68 = arith.constant 0 : index
    %67 = vector.load %arg6[%c1_66, %c0_67, %c0_68] : memref<9x64x64xbf16, #tpu.memory_space<vmem>>, vector<1x64x64xbf16>
    %68 = vector.shape_cast %67 : vector<1x64x64xbf16> to vector<64x64xbf16>
    %cst_69 = arith.constant dense<0.000000e+00> : vector<73x64xf32>
    %69 = tpu.matmul %66, %68, %cst_69 {dimension_numbers = #tpu.dot_dimension_numbers<[1], [0], [0], [1], [0, 0, 1, 1], [], []>} : vector<73x64xbf16>, vector<64x64xbf16>, vector<73x64xf32> -> vector<73x64xf32>
    %70 = arith.addf %65, %69 : vector<73x64xf32>
    %c2_70 = arith.constant 2 : index
    %c0_71 = arith.constant 0 : index
    %71 = vector.load %arg10[%c2_70, %c0_71] : memref<97x64xbf16, #tpu.memory_space<vmem>>, vector<73x64xbf16>
    %c2_72 = arith.constant 2 : index
    %c0_73 = arith.constant 0 : index
    %c0_74 = arith.constant 0 : index
    %72 = vector.load %arg6[%c2_72, %c0_73, %c0_74] : memref<9x64x64xbf16, #tpu.memory_space<vmem>>, vector<1x64x64xbf16>
    %73 = vector.shape_cast %72 : vector<1x64x64xbf16> to vector<64x64xbf16>
    %cst_75 = arith.constant dense<0.000000e+00> : vector<73x64xf32>
    %74 = tpu.matmul %71, %73, %cst_75 {dimension_numbers = #tpu.dot_dimension_numbers<[1], [0], [0], [1], [0, 0, 1, 1], [], []>} : vector<73x64xbf16>, vector<64x64xbf16>, vector<73x64xf32> -> vector<73x64xf32>
    %75 = arith.addf %70, %74 : vector<73x64xf32>
    %c11_76 = arith.constant 11 : index
    %c0_77 = arith.constant 0 : index
    %76 = vector.load %arg10[%c11_76, %c0_77] : memref<97x64xbf16, #tpu.memory_space<vmem>>, vector<73x64xbf16>
    %c3_78 = arith.constant 3 : index
    %c0_79 = arith.constant 0 : index
    %c0_80 = arith.constant 0 : index
    %77 = vector.load %arg6[%c3_78, %c0_79, %c0_80] : memref<9x64x64xbf16, #tpu.memory_space<vmem>>, vector<1x64x64xbf16>
    %78 = vector.shape_cast %77 : vector<1x64x64xbf16> to vector<64x64xbf16>
    %cst_81 = arith.constant dense<0.000000e+00> : vector<73x64xf32>
    %79 = tpu.matmul %76, %78, %cst_81 {dimension_numbers = #tpu.dot_dimension_numbers<[1], [0], [0], [1], [0, 0, 1, 1], [], []>} : vector<73x64xbf16>, vector<64x64xbf16>, vector<73x64xf32> -> vector<73x64xf32>
    %80 = arith.addf %75, %79 : vector<73x64xf32>
    %c12_82 = arith.constant 12 : index
    %c0_83 = arith.constant 0 : index
    %81 = vector.load %arg10[%c12_82, %c0_83] : memref<97x64xbf16, #tpu.memory_space<vmem>>, vector<73x64xbf16>
    %c4 = arith.constant 4 : index
    %c0_84 = arith.constant 0 : index
    %c0_85 = arith.constant 0 : index
    %82 = vector.load %arg6[%c4, %c0_84, %c0_85] : memref<9x64x64xbf16, #tpu.memory_space<vmem>>, vector<1x64x64xbf16>
    %83 = vector.shape_cast %82 : vector<1x64x64xbf16> to vector<64x64xbf16>
    %cst_86 = arith.constant dense<0.000000e+00> : vector<73x64xf32>
    %84 = tpu.matmul %81, %83, %cst_86 {dimension_numbers = #tpu.dot_dimension_numbers<[1], [0], [0], [1], [0, 0, 1, 1], [], []>} : vector<73x64xbf16>, vector<64x64xbf16>, vector<73x64xf32> -> vector<73x64xf32>
    %85 = arith.addf %80, %84 : vector<73x64xf32>
    %c13 = arith.constant 13 : index
    %c0_87 = arith.constant 0 : index
    %86 = vector.load %arg10[%c13, %c0_87] : memref<97x64xbf16, #tpu.memory_space<vmem>>, vector<73x64xbf16>
    %c5 = arith.constant 5 : index
    %c0_88 = arith.constant 0 : index
    %c0_89 = arith.constant 0 : index
    %87 = vector.load %arg6[%c5, %c0_88, %c0_89] : memref<9x64x64xbf16, #tpu.memory_space<vmem>>, vector<1x64x64xbf16>
    %88 = vector.shape_cast %87 : vector<1x64x64xbf16> to vector<64x64xbf16>
    %cst_90 = arith.constant dense<0.000000e+00> : vector<73x64xf32>
    %89 = tpu.matmul %86, %88, %cst_90 {dimension_numbers = #tpu.dot_dimension_numbers<[1], [0], [0], [1], [0, 0, 1, 1], [], []>} : vector<73x64xbf16>, vector<64x64xbf16>, vector<73x64xf32> -> vector<73x64xf32>
    %90 = arith.addf %85, %89 : vector<73x64xf32>
    %c22 = arith.constant 22 : index
    %c0_91 = arith.constant 0 : index
    %91 = vector.load %arg10[%c22, %c0_91] : memref<97x64xbf16, #tpu.memory_space<vmem>>, vector<73x64xbf16>
    %c6 = arith.constant 6 : index
    %c0_92 = arith.constant 0 : index
    %c0_93 = arith.constant 0 : index
    %92 = vector.load %arg6[%c6, %c0_92, %c0_93] : memref<9x64x64xbf16, #tpu.memory_space<vmem>>, vector<1x64x64xbf16>
    %93 = vector.shape_cast %92 : vector<1x64x64xbf16> to vector<64x64xbf16>
    %cst_94 = arith.constant dense<0.000000e+00> : vector<73x64xf32>
    %94 = tpu.matmul %91, %93, %cst_94 {dimension_numbers = #tpu.dot_dimension_numbers<[1], [0], [0], [1], [0, 0, 1, 1], [], []>} : vector<73x64xbf16>, vector<64x64xbf16>, vector<73x64xf32> -> vector<73x64xf32>
    %95 = arith.addf %90, %94 : vector<73x64xf32>
    %c23 = arith.constant 23 : index
    %c0_95 = arith.constant 0 : index
    %96 = vector.load %arg10[%c23, %c0_95] : memref<97x64xbf16, #tpu.memory_space<vmem>>, vector<73x64xbf16>
    %c7 = arith.constant 7 : index
    %c0_96 = arith.constant 0 : index
    %c0_97 = arith.constant 0 : index
    %97 = vector.load %arg6[%c7, %c0_96, %c0_97] : memref<9x64x64xbf16, #tpu.memory_space<vmem>>, vector<1x64x64xbf16>
    %98 = vector.shape_cast %97 : vector<1x64x64xbf16> to vector<64x64xbf16>
    %cst_98 = arith.constant dense<0.000000e+00> : vector<73x64xf32>
    %99 = tpu.matmul %96, %98, %cst_98 {dimension_numbers = #tpu.dot_dimension_numbers<[1], [0], [0], [1], [0, 0, 1, 1], [], []>} : vector<73x64xbf16>, vector<64x64xbf16>, vector<73x64xf32> -> vector<73x64xf32>
    %100 = arith.addf %95, %99 : vector<73x64xf32>
    %c24 = arith.constant 24 : index
    %c0_99 = arith.constant 0 : index
    %101 = vector.load %arg10[%c24, %c0_99] : memref<97x64xbf16, #tpu.memory_space<vmem>>, vector<73x64xbf16>
    %c8 = arith.constant 8 : index
    %c0_100 = arith.constant 0 : index
    %c0_101 = arith.constant 0 : index
    %102 = vector.load %arg6[%c8, %c0_100, %c0_101] : memref<9x64x64xbf16, #tpu.memory_space<vmem>>, vector<1x64x64xbf16>
    %103 = vector.shape_cast %102 : vector<1x64x64xbf16> to vector<64x64xbf16>
    %cst_102 = arith.constant dense<0.000000e+00> : vector<73x64xf32>
    %104 = tpu.matmul %101, %103, %cst_102 {dimension_numbers = #tpu.dot_dimension_numbers<[1], [0], [0], [1], [0, 0, 1, 1], [], []>} : vector<73x64xbf16>, vector<64x64xbf16>, vector<73x64xf32> -> vector<73x64xf32>
    %105 = arith.addf %100, %104 : vector<73x64xf32>
    %c0_103 = arith.constant 0 : index
    %c0_104 = arith.constant 0 : index
    %106 = vector.load %arg7[%c0_103, %c0_104] : memref<1x64xf32, #tpu.memory_space<vmem>>, vector<1x64xf32>
    %107 = vector.broadcast %106 : vector<1x64xf32> to vector<73x64xf32>
    %108 = arith.addf %105, %107 : vector<73x64xf32>
    %cst_105 = arith.constant 0.000000e+00 : f32
    %109 = vector.broadcast %cst_105 : f32 to vector<73x64xf32>
    %110 = arith.maximumf %108, %109 : vector<73x64xf32>
    %111 = arith.truncf %110 : vector<73x64xf32> to vector<73x64xbf16>
    %c0_106 = arith.constant 0 : index
    %c0_107 = arith.constant 0 : index
    %112 = vector.load %arg11[%c0_106, %c0_107] : memref<73x64xbf16, #tpu.memory_space<vmem>>, vector<73x64xbf16>
    tpu.vector_store %arg11[%c0_106, %c0_107], %111 {strides = array<i32>} : memref<73x64xbf16, #tpu.memory_space<vmem>>, vector<73x64xbf16>,
    %c0_108 = arith.constant 0 : index
    %c0_109 = arith.constant 0 : index
    %113 = vector.load %arg11[%c0_108, %c0_109] : memref<73x64xbf16, #tpu.memory_space<vmem>>, vector<7x64xbf16>
    %c0_110 = arith.constant 0 : index
    %c0_111 = arith.constant 0 : index
    %c0_112 = arith.constant 0 : index
    %114 = vector.load %arg8[%c0_110, %c0_111, %c0_112] : memref<1x49x64xbf16, #tpu.memory_space<vmem>>, vector<1x7x64xbf16>
    %115 = vector.shape_cast %114 : vector<1x7x64xbf16> to vector<7x64xbf16>
    %116 = vector.shape_cast %113 : vector<7x64xbf16> to vector<1x7x64xbf16>
    tpu.vector_store %arg8[%c0_110, %c0_111, %c0_112], %116 {strides = array<i32>} : memref<1x49x64xbf16, #tpu.memory_space<vmem>>, vector<1x7x64xbf16>,
    %c11_113 = arith.constant 11 : index
    %c0_114 = arith.constant 0 : index
    %117 = vector.load %arg11[%c11_113, %c0_114] : memref<73x64xbf16, #tpu.memory_space<vmem>>, vector<7x64xbf16>
    %c0_115 = arith.constant 0 : index
    %c7_116 = arith.constant 7 : index
    %c0_117 = arith.constant 0 : index
    %118 = vector.load %arg8[%c0_115, %c7_116, %c0_117] : memref<1x49x64xbf16, #tpu.memory_space<vmem>>, vector<1x7x64xbf16>
    %119 = vector.shape_cast %118 : vector<1x7x64xbf16> to vector<7x64xbf16>
    %120 = vector.shape_cast %117 : vector<7x64xbf16> to vector<1x7x64xbf16>
    tpu.vector_store %arg8[%c0_115, %c7_116, %c0_117], %120 {strides = array<i32>} : memref<1x49x64xbf16, #tpu.memory_space<vmem>>, vector<1x7x64xbf16>,
    %c22_118 = arith.constant 22 : index
    %c0_119 = arith.constant 0 : index
    %121 = vector.load %arg11[%c22_118, %c0_119] : memref<73x64xbf16, #tpu.memory_space<vmem>>, vector<7x64xbf16>
    %c0_120 = arith.constant 0 : index
    %c14 = arith.constant 14 : index
    %c0_121 = arith.constant 0 : index
    %122 = vector.load %arg8[%c0_120, %c14, %c0_121] : memref<1x49x64xbf16, #tpu.memory_space<vmem>>, vector<1x7x64xbf16>
    %123 = vector.shape_cast %122 : vector<1x7x64xbf16> to vector<7x64xbf16>
    %124 = vector.shape_cast %121 : vector<7x64xbf16> to vector<1x7x64xbf16>
    tpu.vector_store %arg8[%c0_120, %c14, %c0_121], %124 {strides = array<i32>} : memref<1x49x64xbf16, #tpu.memory_space<vmem>>, vector<1x7x64xbf16>,
    %c33 = arith.constant 33 : index
    %c0_122 = arith.constant 0 : index
    %125 = vector.load %arg11[%c33, %c0_122] : memref<73x64xbf16, #tpu.memory_space<vmem>>, vector<7x64xbf16>
    %c0_123 = arith.constant 0 : index
    %c21 = arith.constant 21 : index
    %c0_124 = arith.constant 0 : index
    %126 = vector.load %arg8[%c0_123, %c21, %c0_124] : memref<1x49x64xbf16, #tpu.memory_space<vmem>>, vector<1x7x64xbf16>
    %127 = vector.shape_cast %126 : vector<1x7x64xbf16> to vector<7x64xbf16>
    %128 = vector.shape_cast %125 : vector<7x64xbf16> to vector<1x7x64xbf16>
    tpu.vector_store %arg8[%c0_123, %c21, %c0_124], %128 {strides = array<i32>} : memref<1x49x64xbf16, #tpu.memory_space<vmem>>, vector<1x7x64xbf16>,
    %c44 = arith.constant 44 : index
    %c0_125 = arith.constant 0 : index
    %129 = vector.load %arg11[%c44, %c0_125] : memref<73x64xbf16, #tpu.memory_space<vmem>>, vector<7x64xbf16>
    %c0_126 = arith.constant 0 : index
    %c28 = arith.constant 28 : index
    %c0_127 = arith.constant 0 : index
    %130 = vector.load %arg8[%c0_126, %c28, %c0_127] : memref<1x49x64xbf16, #tpu.memory_space<vmem>>, vector<1x7x64xbf16>
    %131 = vector.shape_cast %130 : vector<1x7x64xbf16> to vector<7x64xbf16>
    %132 = vector.shape_cast %129 : vector<7x64xbf16> to vector<1x7x64xbf16>
    tpu.vector_store %arg8[%c0_126, %c28, %c0_127], %132 {strides = array<i32>} : memref<1x49x64xbf16, #tpu.memory_space<vmem>>, vector<1x7x64xbf16>,
    %c55 = arith.constant 55 : index
    %c0_128 = arith.constant 0 : index
    %133 = vector.load %arg11[%c55, %c0_128] : memref<73x64xbf16, #tpu.memory_space<vmem>>, vector<7x64xbf16>
    %c0_129 = arith.constant 0 : index
    %c35 = arith.constant 35 : index
    %c0_130 = arith.constant 0 : index
    %134 = vector.load %arg8[%c0_129, %c35, %c0_130] : memref<1x49x64xbf16, #tpu.memory_space<vmem>>, vector<1x7x64xbf16>
    %135 = vector.shape_cast %134 : vector<1x7x64xbf16> to vector<7x64xbf16>
    %136 = vector.shape_cast %133 : vector<7x64xbf16> to vector<1x7x64xbf16>
    tpu.vector_store %arg8[%c0_129, %c35, %c0_130], %136 {strides = array<i32>} : memref<1x49x64xbf16, #tpu.memory_space<vmem>>, vector<1x7x64xbf16>,
    %c66 = arith.constant 66 : index
    %c0_131 = arith.constant 0 : index
    %137 = vector.load %arg11[%c66, %c0_131] : memref<73x64xbf16, #tpu.memory_space<vmem>>, vector<7x64xbf16>
    %c0_132 = arith.constant 0 : index
    %c42 = arith.constant 42 : index
    %c0_133 = arith.constant 0 : index
    %138 = vector.load %arg8[%c0_132, %c42, %c0_133] : memref<1x49x64xbf16, #tpu.memory_space<vmem>>, vector<1x7x64xbf16>
    %139 = vector.shape_cast %138 : vector<1x7x64xbf16> to vector<7x64xbf16>
    %140 = vector.shape_cast %137 : vector<7x64xbf16> to vector<1x7x64xbf16>
    tpu.vector_store %arg8[%c0_132, %c42, %c0_133], %140 {strides = array<i32>} : memref<1x49x64xbf16, #tpu.memory_space<vmem>>, vector<1x7x64xbf16>,
    return
  }
  func.func @transform_0(%arg0: i32) -> (i32, i32, i32) {
    %c0_i32 = arith.constant 0 : i32
    %c0_i32_0 = arith.constant 0 : i32
    %c0_i32_1 = arith.constant 0 : i32
    return %arg0, %c0_i32, %c0_i32_0 : i32, i32, i32
  }
  func.func @transform_1(%arg0: i32) -> (i32, i32, i32) {
    %c0_i32 = arith.constant 0 : i32
    %c0_i32_0 = arith.constant 0 : i32
    %c0_i32_1 = arith.constant 0 : i32
    %c0_i32_2 = arith.constant 0 : i32
    return %c0_i32, %c0_i32_0, %c0_i32_1 : i32, i32, i32
  }
  func.func @transform_2(%arg0: i32) -> (i32, i32) {
    %c0_i32 = arith.constant 0 : i32
    %c0_i32_0 = arith.constant 0 : i32
    %c0_i32_1 = arith.constant 0 : i32
    return %c0_i32, %c0_i32_0 : i32, i32
  }
  func.func @transform_3(%arg0: i32) -> (i32, i32, i32) {
    %c0_i32 = arith.constant 0 : i32
    %c0_i32_0 = arith.constant 0 : i32
    %c0_i32_1 = arith.constant 0 : i32
    %c0_i32_2 = arith.constant 0 : i32
    return %c0_i32, %c0_i32_0, %c0_i32_1 : i32, i32, i32
  }
  func.func @transform_4(%arg0: i32) -> (i32, i32) {
    %c0_i32 = arith.constant 0 : i32
    %c0_i32_0 = arith.constant 0 : i32
    %c0_i32_1 = arith.constant 0 : i32
    return %c0_i32, %c0_i32_0 : i32, i32
  }
  func.func @transform_5(%arg0: i32) -> (i32, i32, i32) {
    %c0_i32 = arith.constant 0 : i32
    %c0_i32_0 = arith.constant 0 : i32
    %c0_i32_1 = arith.constant 0 : i32
    %c0_i32_2 = arith.constant 0 : i32
    return %c0_i32, %c0_i32_0, %c0_i32_1 : i32, i32, i32
  }
  func.func @transform_6(%arg0: i32) -> (i32, i32) {
    %c0_i32 = arith.constant 0 : i32
    %c0_i32_0 = arith.constant 0 : i32
    %c0_i32_1 = arith.constant 0 : i32
    return %c0_i32, %c0_i32_0 : i32, i32
  }
  func.func @transform_7(%arg0: i32) -> (i32, i32, i32) {
    %c0_i32 = arith.constant 0 : i32
    %c0_i32_0 = arith.constant 0 : i32
    %c0_i32_1 = arith.constant 0 : i32
    return %arg0, %c0_i32, %c0_i32_0 : i32, i32, i32
  }
}

module attributes {stable_mosaic.version = 11 : i64} {
  func.func @_linear_kernel(%arg0: i32, %arg1: i32, %arg2: memref<16x3136xbf16, #tpu.memory_space<vmem>>, %arg3: memref<3136x128xbf16, #tpu.memory_space<vmem>>, %arg4: memref<1x128xf32, #tpu.memory_space<vmem>>, %arg5: memref<128x128xbf16, #tpu.memory_space<vmem>>, %arg6: memref<1x128xf32, #tpu.memory_space<vmem>>, %arg7: memref<16x128xf32, #tpu.memory_space<vmem>>, %arg8: memref<16x128xf32, #tpu.memory_space<vmem>>) attributes {dimension_semantics = [#tpu.dimension_semantics<parallel>, #tpu.dimension_semantics<arbitrary>], iteration_bounds = array<i64: 1, 4>, scalar_prefetch = 0 : i64, scratch_operands = 1 : i64, tpu.core_type = #tpu.core_type<tc>, window_params = [{transform_indices = @transform_0, window_bounds = array<i64: 16, 3136>}, {transform_indices = @transform_1, window_bounds = array<i64: 3136, 128>}, {transform_indices = @transform_2, window_bounds = array<i64: 1, 128>}, {transform_indices = @transform_3, window_bounds = array<i64: 128, 128>}, {pipeline_mode = #tpu.pipeline_mode<synchronous>, transform_indices = @transform_4, window_bounds = array<i64: 1, 128>}, {transform_indices = @transform_5, window_bounds = array<i64: 16, 128>}]} {
    %c0_i32 = arith.constant 0 : i32
    %0 = arith.cmpi eq, %arg1, %c0_i32 : i32
    %1 = arith.extui %0 : i1 to i32
    %c0_i32_0 = arith.constant 0 : i32
    %2 = arith.cmpi ne, %1, %c0_i32_0 : i32
    scf.if %2 {
      %cst_15 = arith.constant 0.000000e+00 : f32
      %20 = vector.broadcast %cst_15 : f32 to vector<16x128xf32>
      %c0_16 = arith.constant 0 : index
      %c0_17 = arith.constant 0 : index
      %21 = vector.load %arg8[%c0_16, %c0_17] : memref<16x128xf32, #tpu.memory_space<vmem>>, vector<16x128xf32>
      tpu.vector_store %arg8[%c0_16, %c0_17], %20 {strides = array<i32>} : memref<16x128xf32, #tpu.memory_space<vmem>>, vector<16x128xf32>,
    } else {
    }
    %c0 = arith.constant 0 : index
    %c0_1 = arith.constant 0 : index
    %3 = vector.load %arg2[%c0, %c0_1] : memref<16x3136xbf16, #tpu.memory_space<vmem>>, vector<16x3136xbf16>
    %c0_2 = arith.constant 0 : index
    %c0_3 = arith.constant 0 : index
    %4 = vector.load %arg3[%c0_2, %c0_3] : memref<3136x128xbf16, #tpu.memory_space<vmem>>, vector<3136x128xbf16>
    %cst = arith.constant dense<0.000000e+00> : vector<16x128xf32>
    %5 = tpu.matmul %3, %4, %cst {dimension_numbers = #tpu.dot_dimension_numbers<[1], [0], [0], [1], [0, 0, 1, 1], [], []>} : vector<16x3136xbf16>, vector<3136x128xbf16>, vector<16x128xf32> -> vector<16x128xf32>
    %c0_4 = arith.constant 0 : index
    %c0_5 = arith.constant 0 : index
    %6 = vector.load %arg4[%c0_4, %c0_5] : memref<1x128xf32, #tpu.memory_space<vmem>>, vector<1x128xf32>
    %7 = vector.broadcast %6 : vector<1x128xf32> to vector<16x128xf32>
    %8 = arith.addf %5, %7 : vector<16x128xf32>
    %cst_6 = arith.constant 0.000000e+00 : f32
    %9 = vector.broadcast %cst_6 : f32 to vector<16x128xf32>
    %10 = arith.maximumf %8, %9 : vector<16x128xf32>
    %11 = arith.truncf %10 : vector<16x128xf32> to vector<16x128xbf16>
    %c0_7 = arith.constant 0 : index
    %c0_8 = arith.constant 0 : index
    %12 = vector.load %arg8[%c0_7, %c0_8] : memref<16x128xf32, #tpu.memory_space<vmem>>, vector<16x128xf32>
    %c0_9 = arith.constant 0 : index
    %c0_10 = arith.constant 0 : index
    %13 = vector.load %arg5[%c0_9, %c0_10] : memref<128x128xbf16, #tpu.memory_space<vmem>>, vector<128x128xbf16>
    %cst_11 = arith.constant dense<0.000000e+00> : vector<16x128xf32>
    %14 = tpu.matmul %11, %13, %cst_11 {dimension_numbers = #tpu.dot_dimension_numbers<[1], [0], [0], [1], [0, 0, 1, 1], [], []>} : vector<16x128xbf16>, vector<128x128xbf16>, vector<16x128xf32> -> vector<16x128xf32>
    %15 = arith.addf %12, %14 : vector<16x128xf32>
    %c0_12 = arith.constant 0 : index
    %c0_13 = arith.constant 0 : index
    %16 = vector.load %arg8[%c0_12, %c0_13] : memref<16x128xf32, #tpu.memory_space<vmem>>, vector<16x128xf32>
    tpu.vector_store %arg8[%c0_12, %c0_13], %15 {strides = array<i32>} : memref<16x128xf32, #tpu.memory_space<vmem>>, vector<16x128xf32>,
    %c3_i32 = arith.constant 3 : i32
    %17 = arith.cmpi eq, %arg1, %c3_i32 : i32
    %18 = arith.extui %17 : i1 to i32
    %c0_i32_14 = arith.constant 0 : i32
    %19 = arith.cmpi ne, %18, %c0_i32_14 : i32
    scf.if %19 {
      %c0_15 = arith.constant 0 : index
      %c0_16 = arith.constant 0 : index
      %20 = vector.load %arg8[%c0_15, %c0_16] : memref<16x128xf32, #tpu.memory_space<vmem>>, vector<16x128xf32>
      %c0_17 = arith.constant 0 : index
      %c0_18 = arith.constant 0 : index
      %21 = vector.load %arg6[%c0_17, %c0_18] : memref<1x128xf32, #tpu.memory_space<vmem>>, vector<1x128xf32>
      %22 = vector.broadcast %21 : vector<1x128xf32> to vector<16x128xf32>
      %23 = arith.addf %20, %22 : vector<16x128xf32>
      %c0_19 = arith.constant 0 : index
      %c0_20 = arith.constant 0 : index
      %24 = vector.load %arg7[%c0_19, %c0_20] : memref<16x128xf32, #tpu.memory_space<vmem>>, vector<16x128xf32>
      tpu.vector_store %arg7[%c0_19, %c0_20], %23 {strides = array<i32>} : memref<16x128xf32, #tpu.memory_space<vmem>>, vector<16x128xf32>,
    } else {
    }
    return
  }
  func.func @transform_0(%arg0: i32, %arg1: i32) -> (i32, i32) {
    %c0_i32 = arith.constant 0 : i32
    %c0_i32_0 = arith.constant 0 : i32
    return %arg0, %c0_i32 : i32, i32
  }
  func.func @transform_1(%arg0: i32, %arg1: i32) -> (i32, i32) {
    %c0_i32 = arith.constant 0 : i32
    %c0_i32_0 = arith.constant 0 : i32
    return %c0_i32, %arg1 : i32, i32
  }
  func.func @transform_2(%arg0: i32, %arg1: i32) -> (i32, i32) {
    %c0_i32 = arith.constant 0 : i32
    %c0_i32_0 = arith.constant 0 : i32
    return %c0_i32, %arg1 : i32, i32
  }
  func.func @transform_3(%arg0: i32, %arg1: i32) -> (i32, i32) {
    %c0_i32 = arith.constant 0 : i32
    %c0_i32_0 = arith.constant 0 : i32
    return %arg1, %c0_i32 : i32, i32
  }
  func.func @transform_4(%arg0: i32, %arg1: i32) -> (i32, i32) {
    %c0_i32 = arith.constant 0 : i32
    %c0_i32_0 = arith.constant 0 : i32
    %c0_i32_1 = arith.constant 0 : i32
    return %c0_i32, %c0_i32_0 : i32, i32
  }
  func.func @transform_5(%arg0: i32, %arg1: i32) -> (i32, i32) {
    %c0_i32 = arith.constant 0 : i32
    %c0_i32_0 = arith.constant 0 : i32
    return %arg0, %c0_i32 : i32, i32
  }
}

</mosaic_0001>

<bundles_post_ra>
// kernel: q_net_forward.2
= control target key start
LH: loop header
LB: loop body
LE: loop exit
PB: predicated region body
PF: predicated region fallthrough
CT: control target
= control target key end

     0   :  { %s5277_s24 = smov 0   ;;  %s6391_s0 = inlined_call_operand.vmem [shape: bf16[2,121,256], index: 0, kind: input, shape index: {}]   ;;  %s6392_s1 = inlined_call_operand.vmem [shape: bf16[4,256,128], index: 1, kind: input, shape index: {}]   ;;  %s6393_s2 = inlined_call_operand.vmem [shape: f32[1,128], index: 2, kind: input, shape index: {}]   ;;  %s6394_s3 = inlined_call_operand.vmem [shape: bf16[4,128,64], index: 3, kind: input, shape index: {}]   ;;  %s6395_s4 = inlined_call_operand.vmem [shape: f32[1,64], index: 4, kind: input, shape index: {}]   ;;  %s6396_s5 = inlined_call_operand.vmem [shape: bf16[9,64,64], index: 5, kind: input, shape index: {}]   ;;  %s6397_s6 = inlined_call_operand.vmem [shape: f32[1,64], index: 6, kind: input, shape index: {}]   ;;  %s6398_s7 = inlined_call_operand.vmem [shape: bf16[2,49,64], index: 7, kind: output, shape index: {}]  }
   0x1 LB: > { %s3889_s25 = sadd.s32 4294967295, %s5235_s24   ;;  %p3893_p0 = scmp.ge.s32.totalorder %s5235_s24, 1  ;;  %s5235_s24 = sphi %s5277_s24, %s17_s24  }
   0x2   : > { %p237_p1 = scmp.lt.s32.totalorder %s5235_s24, 3 }
   0x4   : > { %p238_p2 = pnand %p3893_p0, %p237_p1 }
   0x5   : > { %p269_p3 = scmp.lt.s32.totalorder (!%p238_p2), %s3889_s25, 1 }
   0x6   : > { %241 = sbr.rel (%p238_p2) target bundleno = 946 (0x3b2), region = 48 }
   0xb   : > { %v4995_v0 = vld [vmem:[%s6392_s1 + $0xb8] sm:$0xff]  ;;  %v4994_v1 = vld [vmem:[%s6392_s1 + $0xb0] sm:$0xff]  ;;  %s6404_s25 = smov (!%p269_p3, %s3889_s25), 1  ;;  %v4993_v4 = vld [vmem:[%s6392_s1 + $0xa8] sm:$0xff]  ;;  %vm415_vm0 = vsmask.f32 7424 }
   0xc   : > { %5201 = vmatpush.bf16.msra.mxu1 %v4995_v0  ;;  %5202 = vmatpush.bf16.msra.mxu2 %v4995_v0  ;;  %v4987_v2 = vld [vmem:[%s6392_s1 + $0x78] sm:$0xff]  ;;  %v4986_v3 = vld [vmem:[%s6392_s1 + $0x70] sm:$0xff]  ;;  %s4957_s11 = sshll.u32 %s6404_s25, 7  ;;  %v4985_v5 = vld [vmem:[%s6392_s1 + $0x68] sm:$0xff]  ;;  %vm1025_vm1 = vsmask.f32 6400 }
   0xd   : > { %636 = vmatpush.bf16.msra.mxu0 %v4995_v0  ;;  %878 = vmatpush.bf16.msra.mxu3 %v4987_v2  ;;  %s5309_s18 = scalar_lea.vmem %s6391_s0, %s4957_s11  ;;  %v4992_v6 = vld [vmem:[%s6392_s1 + $0xa0] sm:$0xff]  ;;  %v4991_v10 = vld [vmem:[%s6392_s1 + $0x98] sm:$0xff]  ;;  %v4990_v18 = vld [vmem:[%s6392_s1 + $0x90] sm:$0xff]  ;;  %vm1471_vm2 = vcmask 1045504   ;;  %vm1773_vm3 = vcmask 1042432   ;;  %vm2536_vm6 = vcmask 519168  }
   0xe   : > { %v3963_v7 = vld [vmem:[%s5309_s18 + $0x40] sm:$0xf]  ;;  %v4967_v8 = vld [vmem:[%s5309_s18 + $0x44] sm:$0xf0]  ;;  %v3971_v14 = vld [vmem:[%s5309_s18 + $0x50] sm:$0xf] }
   0xf   : > { %v4984_v9 = vld [vmem:[%s6392_s1 + $0x60] sm:$0xff]  ;;  %v5322_v11 = vor.u32 %v4967_v8, %v3963_v7  ;;  %v4971_v13 = vld [vmem:[%s5309_s18 + $0x64] sm:$0x70]  ;;  %v4969_v15 = vld [vmem:[%s5309_s18 + $0x54] sm:$0xf0]  ;;  %vm2670_vm7 = vcmask 523264  }
  0x10   : > { %5203 = vmatpush.bf16.msra.mxu1 %v4994_v1  ;;  %5204 = vmatpush.bf16.msra.mxu2 %v4994_v1  ;;  %v3979_v12 = vld [vmem:[%s5309_s18 + $0x60] sm:$0xf]  ;;  %v4983_v16 = vld [vmem:[%s6392_s1 + $0x58] sm:$0xff]  ;;  %v5336_v19 = vor.u32 %v4969_v15, %v3971_v14  ;;  %v4982_v21 = vld [vmem:[%s6392_s1 + $0x50] sm:$0xff]  ;;  %vm1774_vm4 = vsmask.f32 2304 }
  0x11   : > { %637 = vmatpush.bf16.msra.mxu0 %v4994_v1  ;;  %879 = vmatpush.bf16.msra.mxu3 %v4986_v3  ;;  %v5331_v17 = vor.u32 %v4971_v13, %v3979_v12  ;;  %v476_v20 = vshll.u32 %v5322_v11, 16  ;;  %v4989_v23 = vld [vmem:[%s6392_s1 + $0x88] sm:$0xff]  ;;  %v488_v25 = vshrl.u32 %v5322_v11, 16  ;;  %v3931_v27 = vld [vmem:[%s5309_s18] sm:$0xf]  ;;  %v4979_v39 = vld [vmem:[%s6392_s1 + $0x38] sm:$0xff] }
  0x12   : > { %v492_v26 = vshll.u32 %v5336_v19, 16  ;;  %v4981_v28 = vld [vmem:[%s6392_s1 + $0x48] sm:$0xff]  ;;  %v3939_v33 = vld [vmem:[%s5309_s18 + $0x10] sm:$0xf]  ;;  %v4961_v34 = vld [vmem:[%s5309_s18 + $0x14] sm:$0xf0] }
  0x13   : > { %v508_v22 = vshll.u32 %v5331_v17, 16  ;;  %v5346_v24 = vrot.slane %v476_v20, 1  ;;  %v4959_v29 = vld [vmem:[%s5309_s18 + $0x4] sm:$0xf0]  ;;  %v520_v31 = vshrl.u32 %v5331_v17, 16  ;;  %v4988_v35 = vld [vmem:[%s6392_s1 + $0x80] sm:$0xff]  ;;  %v5366_v38 = vor.u32 %v4961_v34, %v3939_v33  ;;  %vm1775_vm5 = vmand %vm1773_vm3, %vm1774_vm4 }
  0x14   : > { %5205 = vmatpush.bf16.msra.mxu1 %v4993_v4  ;;  %5206 = vmatpush.bf16.msra.mxu2 %v4993_v4  ;;  %v5358_v32 = vor.u32 %v4959_v29, %v3931_v27  ;;  %v494_v37 = vrot.slane %v492_v26, 1  ;;  %v5003_v40 = vld [vmem:[%s6392_s1 + $0xf8] sm:$0xff]  ;;  %v4980_v42 = vld [vmem:[%s6392_s1 + $0x40] sm:$0xff]  ;;  %v3933_v47 = vld [vmem:[%s5309_s18 + $0x8] sm:$0xf0]  ;;  %v504_v60 = vshrl.u32 %v5336_v19, 16 }
  0x15   : > { %638 = vmatpush.bf16.msra.mxu0 %v4993_v4  ;;  %880 = vmatpush.bf16.msra.mxu3 %v4985_v5  ;;  %v5355_v30 = vrot.slane %v508_v22, 1  ;;  %v490_v36 = vor.u32 %v488_v25, %v5346_v24  ;;  %v424_v44 = vshll.u32 %v5366_v38, 16  ;;  %v4958_v46 = vld [vmem:[%s5309_s18 + $0x4] sm:$0xf]  ;;  %v5063_v50 = vld [vmem:[%s6392_s1 + $0x1f8] sm:$0xff]  ;;  %v4978_v52 = vld [vmem:[%s6392_s1 + $0x30] sm:$0xff] }
  0x16   : > { %v419_v41 = vshll.u32 %v5358_v32, 16  ;;  %v417_v43 = vshrl.u32 %v5358_v32, 16  ;;  %v5002_v53 = vld [vmem:[%s6392_s1 + $0xf0] sm:$0xff]  ;;  %v3936_v55 = vor.u32 %v4958_v46, %v3933_v47  ;;  %v4977_v58 = vld [vmem:[%s6392_s1 + $0x28] sm:$0xff]  ;;  %v4976_v61 = vld [vmem:[%s6392_s1 + $0x20] sm:$0xff]  ;;  %v506_v1 = vor.u32 %v504_v60, %v494_v37  ;;  %s5217_s9 = smul.u32 28, %s6404_s25 }
  0x17   : > { %v522_v45 = vor.u32 %v520_v31, %v5355_v30  ;;  %v495_v49 = vsel %vm415_vm0, %v490_v36, %v494_v37  ;;  %v426_v51 = vrot.slane %v424_v44, 1  ;;  %v5062_v57 = vld [vmem:[%s6392_s1 + $0x1f0] sm:$0xff]  ;;  %v5001_v59 = vld [vmem:[%s6392_s1 + $0xe8] sm:$0xff]  ;;  %v5000_v62 = vld [vmem:[%s6392_s1 + $0xe0] sm:$0xff]  ;;  %v440_v5 = vshrl.u32 %v5366_v38, 16 }
  0x18   : > { %5207 = vmatpush.bf16.msra.mxu1 %v4992_v6  ;;  %5208 = vmatpush.bf16.msra.mxu2 %v4992_v6  ;;  %v421_v48 = vrot.slane %v419_v41, 1  ;;  %v3947_v63 = vld [vmem:[%s5309_s18 + $0x20] sm:$0xf]  ;;  %v4963_v0 = vld [vmem:[%s5309_s18 + $0x24] sm:$0xf0]  ;;  %v4975_v3 = vld [vmem:[%s6392_s1 + $0x18] sm:$0xff]  ;;  %v511_v7 = vsel %vm415_vm0, %v506_v1, %v5355_v30  ;;  %s6318_s12 = scalar_lea.vmem %s6398_s7, %s5217_s9 }
  0x19   : > { %639 = vmatpush.bf16.msra.mxu0 %v4992_v6  ;;  %881 = vmatpush.bf16.msra.mxu3 %v4984_v9  ;;  %v5412_v2 = vor.u32 %v4963_v0, %v3947_v63  ;;  %v4999_v4 = vld [vmem:[%s6392_s1 + $0xd8] sm:$0xff]  ;;  %v4974_v8 = vld [vmem:[%s6392_s1 + $0x10] sm:$0xff]  ;;  %v442_v9 = vor.u32 %v440_v5, %v426_v51  ;;  %v4997_v22 = vld [vmem:[%s6392_s1 + $0xc8] sm:$0xff]  ;;  %vm2805_vm8 = vcmask 1046528   ;;  %vm2549_vm9 = vcmask 516096  }
  0x1a   : > { %v422_v54 = vor.u32 %v421_v48, %v417_v43  ;;  %v4998_v12 = vld [vmem:[%s6392_s1 + $0xd0] sm:$0xff]  ;;  %v3941_v14 = vld [vmem:[%s5309_s18 + $0x18] sm:$0xf0]  ;;  %v4972_v27 = vld [vmem:[%s6392_s1] sm:$0xff]  ;;  %vm2550_vm10 = vsmask.f32 256 }
  0x1b   : > { %v444_v6 = vshll.u32 %v5412_v2, 16  ;;  %v4960_v13 = vld [vmem:[%s5309_s18 + $0x14] sm:$0xf]  ;;  %v5055_v29 = vld [vmem:[%s6392_s1 + $0x1b8] sm:$0xff]  ;;  %v3955_v31 = vld [vmem:[%s5309_s18 + $0x30] sm:$0xf] }
  0x1c   : > { %5209 = vmatpush.bf16.msra.mxu1 %v4991_v10  ;;  %5210 = vmatpush.bf16.msra.mxu2 %v4991_v10  ;;  %v427_v56 = vsel %vm415_vm0, %v422_v54, %v426_v51  ;;  %v3944_v20 = vor.u32 %v4960_v13, %v3941_v14  ;;  %v5033_v30 = vld [vmem:[%s6392_s1 + $0x178] sm:$0xff]  ;;  %v5054_v37 = vld [vmem:[%s6392_s1 + $0x1b0] sm:$0xff]  ;;  %v3949_v46 = vld [vmem:[%s5309_s18 + $0x28] sm:$0xf0]  ;;  %vm3187_vm12 = vsmask.f32 5376 }
  0x1d   : > { %640 = vmatpush.bf16.msra.mxu0 %v4991_v10  ;;  %882 = vmatpush.bf16.msra.mxu3 %v4983_v16  ;;  %v446_v10 = vrot.slane %v444_v6, 1  ;;  %v5061_v16 = vld [vmem:[%s6392_s1 + $0x1e8] sm:$0xff]  ;;  %v4965_v33 = vld [vmem:[%s5309_s18 + $0x34] sm:$0xf0]  ;;  %v5052_v51 = vld [vmem:[%s6392_s1 + $0x1a0] sm:$0xff]  ;;  %vm3344_vm13 = vcmask 1044480  }
  0x1e   : > { %v436_v26 = vshll.u32 %v3944_v20, 16  ;;  %v5456_v36 = vor.u32 %v4965_v33, %v3955_v31  ;;  %v5053_v47 = vld [vmem:[%s6392_s1 + $0x1a8] sm:$0xff]  ;;  %v4964_v60 = vld [vmem:[%s5309_s18 + $0x34] sm:$0xf]  ;;  %v5051_v63 = vld [vmem:[%s6392_s1 + $0x198] sm:$0xff] }
  0x1f   : > { %v447_v15 = vsel %vm415_vm0, %v442_v9, %v446_v10  ;;  %v5031_v48 = vld [vmem:[%s6392_s1 + $0x168] sm:$0xff]  ;;  %v5059_v0 = vld [vmem:[%s6392_s1 + $0x1d8] sm:$0xff]  ;;  %v4966_v9 = vld [vmem:[%s5309_s18 + $0x44] sm:$0xf]  ;;  %vm3446_vm14 = vsmask.f32 4352 }
  0x20   : > { %5211 = vmatpush.bf16.msra.mxu1 %v4990_v18  ;;  %5212 = vmatpush.bf16.msra.mxu2 %v4990_v18  ;;  %v460_v41 = vshll.u32 %v5456_v36, 16  ;;  %v5050_v13 = vld [vmem:[%s6392_s1 + $0x190] sm:$0xff]  ;;  %v5027_v31 = vld [vmem:[%s6392_s1 + $0x148] sm:$0xff]  ;;  %vm6206_vm11 = vmand %vm2549_vm9, %vm2550_vm10  ;;  %vm3749_vm15 = vsmask.f32 3328 }
  0x21   : > { %641 = vmatpush.bf16.msra.mxu0 %v4990_v18  ;;  %883 = vmatpush.bf16.msra.mxu3 %v4982_v21  ;;  %v431_v18 = vshll.u32 %v3936_v55, 16  ;;  %v4973_v21 = vld [vmem:[%s6392_s1 + $0x8] sm:$0xff]  ;;  %v5058_v14 = vld [vmem:[%s6392_s1 + $0x1d0] sm:$0xff] }
  0x22   : > { %v462_v44 = vrot.slane %v460_v41, 1  ;;  %v5020_v33 = vld [vmem:[%s6392_s1 + $0x110] sm:$0xff]  ;;  %v3981_v41 = vld [vmem:[%s5309_s18 + $0x68] sm:$0x70] }
  0x23   : > { %v433_v25 = vrot.slane %v431_v18, 1 }
  0x24   : > { %5213 = vmatpush.bf16.msra.mxu1 %v4989_v23  ;;  %5214 = vmatpush.bf16.msra.mxu2 %v4989_v23 }
  0x25   : > { %642 = vmatpush.bf16.msra.mxu0 %v4989_v23  ;;  %884 = vmatpush.bf16.msra.mxu3 %v4981_v28  ;;  %v429_v23 = vshrl.u32 %v3936_v55, 16  ;;  %v4996_v28 = vld [vmem:[%s6392_s1 + $0xc0] sm:$0xff] }
  0x27   : > { %v434_v34 = vor.u32 %v433_v25, %v429_v23  ;;  %v4968_v25 = vld [vmem:[%s5309_s18 + $0x54] sm:$0xf] }
  0x28   : > { %5215 = vmatpush.bf16.msra.mxu1 %v4988_v35  ;;  %5216 = vmatpush.bf16.msra.mxu2 %v4988_v35 }
  0x29   : > { %885 = vmatpush.bf16.msra.mxu3 %v4980_v42  ;;  %643 = vmatpush.bf16.msra.mxu0 %v4988_v35  ;;  %v438_v35 = vrot.slane %v436_v26, 1  ;;  %v3973_v26 = vld [vmem:[%s5309_s18 + $0x58] sm:$0xf0] }
  0x2b   : > { %664 = vmatmul.bf16.vlgmr.msra.gmra.mxu1 %v495_v49  ;;  %674 = vmatmul.bf16.vlgmr.msra.gmra.mxu2 %v522_v45  ;;  %v439_v42 = vsel %vm415_vm0, %v434_v34, %v438_v35  ;;  %v4962_v45 = vld [vmem:[%s5309_s18 + $0x24] sm:$0xf] }
  0x2c   : > { %834 = vmatpush.bf16.msrb.mxu2 %v4979_v39  ;;  %680 = vmatpush.bf16.msrb.mxu1 %v5003_v40  ;;  %v5032_v39 = vld [vmem:[%s6392_s1 + $0x170] sm:$0xff]  ;;  %v456_v40 = vshrl.u32 %v5412_v2, 16  ;;  %v3952_v49 = vor.u32 %v4962_v45, %v3949_v46  ;;  %v5026_v45 = vld [vmem:[%s6392_s1 + $0x140] sm:$0xff]  ;;  %v4147_v46 = vld [vmem:[%s5309_s18 + $0x8] sm:$0xe] }
  0x2d   : > { %1656 = vmatpush.bf16.msrb.mxu3 %v5063_v50  ;;  %644 = vmatmul.bf16.vlgmr.msra.gmra.mxu0 %v427_v56 }
  0x2e   : > { %886 = vmatmul.bf16.vlgmr.msra.gmra.mxu3 %v3936_v55  ;;  %v458_v43 = vor.u32 %v456_v40, %v446_v10  ;;  %v452_v54 = vshll.u32 %v3952_v49, 16  ;;  %v464_v5 = vshrl.u32 %v3952_v49, 16  ;;  %v3965_v10 = vld [vmem:[%s5309_s18 + $0x48] sm:$0xf0] }
  0x30   : > { %835 = vmatpush.bf16.msrb.mxu2 %v4978_v52  ;;  %681 = vmatpush.bf16.msrb.mxu1 %v5002_v53  ;;  %v463_v50 = vsel %vm415_vm0, %v458_v43, %v462_v44  ;;  %v5030_v52 = vld [vmem:[%s6392_s1 + $0x160] sm:$0xff]  ;;  %v448_v53 = vshrl.u32 %v3944_v20, 16  ;;  %v454_v56 = vrot.slane %v452_v54, 1  ;;  %v4301_v54 = vld [vmem:[%s5309_s18 + $0x10] sm:$0xf0] }
  0x31   : > { %1657 = vmatpush.bf16.msrb.mxu3 %v5062_v57  ;;  %v472_v57 = vshrl.u32 %v5456_v36, 16  ;;  %v5056_v43 = vld [vmem:[%s6392_s1 + $0x1c0] sm:$0xff] }
  0x32   : > { %v450_v55 = vor.u32 %v448_v53, %v438_v35 }
  0x34   : > { %836 = vmatpush.bf16.msrb.mxu2 %v4977_v58  ;;  %682 = vmatpush.bf16.msrb.mxu1 %v5001_v59  ;;  %v455_v58 = vsel %vm415_vm0, %v450_v55, %v454_v56  ;;  %v474_v59 = vor.u32 %v472_v57, %v462_v44  ;;  %v5018_v55 = vld [vmem:[%s6392_s1 + $0x100] sm:$0xff] }
  0x35   : > { %1658 = vmatpush.bf16.msrb.mxu3 %v5061_v16  ;;  %v5022_v16 = vld [vmem:[%s6392_s1 + $0x120] sm:$0xff] }
  0x38   : > { %837 = vmatpush.bf16.msrb.mxu2 %v4976_v61  ;;  %683 = vmatpush.bf16.msrb.mxu1 %v5000_v62  ;;  %v3957_v61 = vld [vmem:[%s5309_s18 + $0x38] sm:$0xf0] }
  0x39   : > { %v5025_v62 = vld [vmem:[%s6392_s1 + $0x138] sm:$0xff]  ;;  %v3960_v1 = vor.u32 %v4964_v60, %v3957_v61 }
  0x3a   : > { %1260 = vmatpush.bf16.msrb.mxu0 %v5025_v62 }
  0x3b   : > { %669 = vmatmul.bf16.gmra.mxu1 %v511_v7  ;;  %v468_v6 = vshll.u32 %v3960_v1, 16  ;;  %v480_v18 = vshrl.u32 %v3960_v1, 16 }
  0x3c   : > { %838 = vmatpush.bf16.msrb.mxu2 %v4975_v3  ;;  %684 = vmatpush.bf16.msrb.mxu1 %v4999_v4  ;;  %v5029_v3 = vld [vmem:[%s6392_s1 + $0x158] sm:$0xff]  ;;  %v5024_v4 = vld [vmem:[%s6392_s1 + $0x130] sm:$0xff] }
  0x3d   : > { %649 = vmatmul.bf16.gmra.mxu0 %v447_v15  ;;  %v470_v7 = vrot.slane %v468_v6, 1  ;;  %v3968_v15 = vor.u32 %v4966_v9, %v3965_v10 }
  0x3e   : > { %891 = vmatmul.bf16.gmra.mxu3 %v3944_v20  ;;  %1261 = vmatpush.bf16.msrb.mxu0 %v5024_v4 }
  0x3f   : > { %v484_v20 = vshll.u32 %v3968_v15, 16  ;;  %v496_v34 = vshrl.u32 %v3968_v15, 16 }
  0x40   : > { %839 = vmatpush.bf16.msrb.mxu2 %v4974_v8  ;;  %685 = vmatpush.bf16.msrb.mxu1 %v4998_v12  ;;  %v5023_v12 = vld [vmem:[%s6392_s1 + $0x128] sm:$0xff] }
  0x42   : > { %1262 = vmatpush.bf16.msrb.mxu0 %v5023_v12  ;;  %v4163_v12 = vld [vmem:[%s5309_s18 + $0x28] sm:$0xf] }
  0x44   : > { %840 = vmatpush.bf16.msrb.mxu2 %v4973_v21  ;;  %686 = vmatpush.bf16.msrb.mxu1 %v4997_v22  ;;  %v482_v21 = vor.u32 %v480_v18, %v470_v7  ;;  %v486_v22 = vrot.slane %v484_v20, 1  ;;  %v5038_v18 = vld [vmem:[%s5309_s18 + $0x2c] sm:$0xf]  ;;  %v4317_v20 = vld [vmem:[%s5309_s18 + $0x30] sm:$0xf0] }
  0x46   : > { %1263 = vmatpush.bf16.msrb.mxu0 %v5022_v16  ;;  %v487_v23 = vsel %vm415_vm0, %v482_v21, %v486_v22 }
  0x48   : > { %841 = vmatpush.bf16.msrb.mxu2 %v4972_v27  ;;  %687 = vmatpush.bf16.msrb.mxu1 %v4996_v28  ;;  %v5021_v27 = vld [vmem:[%s6392_s1 + $0x118] sm:$0xff]  ;;  %v5049_v28 = vld [vmem:[%s6392_s1 + $0x188] sm:$0xff] }
  0x4a   : > { %1264 = vmatpush.bf16.msrb.mxu0 %v5021_v27  ;;  %v4320_v27 = vor.u32 %v5038_v18, %v4317_v20 }
  0x4b   : > { %842 = vmatmul.bf16.vlgmr.msrb.gmra.mxu2 %v5358_v32  ;;  %688 = vmatmul.bf16.vlgmr.msrb.gmra.mxu1 %v439_v42  ;;  %v5060_v32 = vld [vmem:[%s6392_s1 + $0x1e0] sm:$0xff] }
  0x4c   : > { %1612 = vmatpush.bf16.msra.mxu2 %v5055_v29  ;;  %1304 = vmatpush.bf16.msra.mxu1 %v5033_v30  ;;  %v5057_v29 = vld [vmem:[%s6392_s1 + $0x1c8] sm:$0xff]  ;;  %v3976_v30 = vor.u32 %v4968_v25, %v3973_v26  ;;  %v5048_v42 = vld [vmem:[%s6392_s1 + $0x180] sm:$0xff]  ;;  %v4149_v26 = vld [vmem:[%s5309_s18 + $0x10] sm:$0xf0] }
  0x4d   : > { %1659 = vmatpush.bf16.msrb.mxu3 %v5060_v32  ;;  %654 = vmatmul.bf16.gmra.mxu0 %v463_v50  ;;  %v5007_v32 = vld [vmem:[%s5309_s18 + $0x1c] sm:$0xf0]  ;;  %v5004_v25 = vld [vmem:[%s5309_s18 + $0xc] sm:$0xe] }
  0x4e   : > { %896 = vmatmul.bf16.gmra.mxu3 %v3952_v49  ;;  %v500_v35 = vshll.u32 %v3976_v30, 16  ;;  %1265 = vmatpush.bf16.msrb.mxu0 %v5020_v33  ;;  %v512_v50 = vshrl.u32 %v3976_v30, 16 }
  0x50   : > { %1613 = vmatpush.bf16.msra.mxu2 %v5054_v37  ;;  %1305 = vmatpush.bf16.msra.mxu1 %v5032_v39  ;;  %v502_v37 = vrot.slane %v500_v35, 1  ;;  %v4970_v39 = vld [vmem:[%s5309_s18 + $0x64] sm:$0xf]  ;;  %v1480_v35 = vrot.slane %v4320_v27, 2 }
  0x51   : > { %1660 = vmatpush.bf16.msrb.mxu3 %v5059_v0  ;;  %v5556_v44 = vor.u32 %v4970_v39, %v3981_v41  ;;  %v5035_v39 = vld [vmem:[%s5309_s18 + $0xc] sm:$0xf0]  ;;  %v5037_v41 = vld [vmem:[%s5309_s18 + $0x1c] sm:$0xf0] }
  0x53   : > { %v516_v53 = vshll.u32 %v5556_v44, 16 }
  0x54   : > { %1614 = vmatpush.bf16.msra.mxu2 %v5053_v47  ;;  %1306 = vmatpush.bf16.msra.mxu1 %v5031_v48  ;;  %v5005_v47 = vld [vmem:[%s5309_s18 + $0xc] sm:$0xf0]  ;;  %v4155_v48 = vld [vmem:[%s5309_s18 + $0x18] sm:$0xf] }
  0x55   : > { %1661 = vmatpush.bf16.msrb.mxu3 %v5058_v14  ;;  %v4148_v49 = vor.u32 %v5005_v47, %v4147_v46  ;;  %v518_v6 = vrot.slane %v516_v53, 1  ;;  %v5009_v14 = vld [vmem:[%s5309_s18 + $0x2c] sm:$0xf0]  ;;  %v5011_v47 = vld [vmem:[%s5309_s18 + $0x3c] sm:$0xf0] }
  0x57   : > { %v1030_v57 = vshll.u32 %v4148_v49, 16 }
  0x58   : > { %1615 = vmatpush.bf16.msra.mxu2 %v5052_v51  ;;  %1307 = vmatpush.bf16.msra.mxu1 %v5030_v52  ;;  %v5034_v51 = vld [vmem:[%s5309_s18 + $0xc] sm:$0xc]  ;;  %v4156_v52 = vor.u32 %v5007_v32, %v4155_v48 }
  0x59   : > { %1662 = vmatpush.bf16.msrb.mxu3 %v5057_v29  ;;  %v4157_v29 = vld [vmem:[%s5309_s18 + $0x20] sm:$0xf0] }
  0x5a   : > { %v1035_v60 = vshrl.u32 %v4156_v52, 16  ;;  %v1038_v61 = vshll.u32 %v4156_v52, 16 }
  0x5b   : > { %847 = vmatmul.bf16.gmra.mxu2 %v5366_v38  ;;  %693 = vmatmul.bf16.gmra.mxu1 %v455_v58  ;;  %v479_v38 = vsel %vm415_vm0, %v474_v59, %v5346_v24  ;;  %v466_v24 = vor.u32 %v464_v5, %v454_v56  ;;  %v1027_v56 = vshrl.u32 %v4148_v49, 16  ;;  %v5036_v58 = vld [vmem:[%s5309_s18 + $0x1c] sm:$0xf]  ;;  %v4309_v59 = vld [vmem:[%s5309_s18 + $0x20] sm:$0xf0]  ;;  %v514_v5 = vor.u32 %v512_v50, %v502_v37 }
  0x5c   : > { %1616 = vmatpush.bf16.msra.mxu2 %v5051_v63  ;;  %1308 = vmatpush.bf16.msra.mxu1 %v5029_v3  ;;  %v1032_v63 = vrot.slane %v1030_v57, 2  ;;  %v1037_v0 = vrot.slane %v1035_v60, 1  ;;  %v4312_v3 = vor.u32 %v5036_v58, %v4309_v59  ;;  %v4325_v57 = vld [vmem:[%s5309_s18 + $0x40] sm:$0xf0] }
  0x5d   : > { %659 = vmatmul.bf16.gmra.mxu0 %v479_v38  ;;  %v471_v8 = vsel %vm415_vm0, %v466_v24, %v470_v7  ;;  %1663 = vmatpush.bf16.msrb.mxu3 %v5056_v43  ;;  %v1029_v62 = vrot.slane %v1027_v56, 1  ;;  %v4304_v38 = vor.u32 %v5034_v51, %v4301_v54  ;;  %v519_v10 = vsel %vm415_vm0, %v514_v5, %v518_v6  ;;  %v4171_v43 = vld [vmem:[%s5309_s18 + $0x38] sm:$0xf]  ;;  %v5040_v56 = vld [vmem:[%s5309_s18 + $0x3c] sm:$0xf] }
  0x5e   : > { %901 = vmatmul.bf16.gmra.mxu3 %v3960_v1  ;;  %v1040_v1 = vrot.slane %v1038_v61, 2  ;;  %v1476_v9 = vrot.slane %v4312_v3, 2  ;;  %v4172_v48 = vor.u32 %v5011_v47, %v4171_v43  ;;  %v5008_v3 = vld [vmem:[%s5309_s18 + $0x2c] sm:$0xf]  ;;  %v5010_v43 = vld [vmem:[%s5309_s18 + $0x3c] sm:$0xf] }
  0x5f   : > { %v1033_v4 = vor.u32 %v1032_v63, %v1029_v62 }
  0x60   : > { %1617 = vmatpush.bf16.msra.mxu2 %v5050_v13  ;;  %v1041_v24 = vor.u32 %v1040_v1, %v1037_v0  ;;  %v1481_v46 = vsel %vm1471_vm2, %v1476_v9, %v1480_v35  ;;  %v1082_v50 = vshll.u32 %v4172_v48, 16  ;;  %v4328_v0 = vor.u32 %v5040_v56, %v4325_v57 }
  0x62   : > { %v1042_v7 = vsel %vm1025_vm1, %v1033_v4, %v1041_v24  ;;  %v1084_v59 = vrot.slane %v1082_v50, 2  ;;  %v4165_v4 = vld [vmem:[%s5309_s18 + $0x30] sm:$0xf0]  ;;  %v4323_v50 = vld [vmem:[%s5309_s18 + $0x38] sm:$0xf] }
  0x64   : > { %1618 = vmatpush.bf16.msra.mxu2 %v5049_v28  ;;  %v5006_v28 = vld [vmem:[%s5309_s18 + $0x1c] sm:$0xf] }
  0x68   : > { %1619 = vmatpush.bf16.msra.mxu2 %v5048_v42 }
  0x6b   : > { %852 = vmatmul.bf16.gmra.mxu2 %v5412_v2  ;;  %698 = vmatmul.bf16.gmra.mxu1 %v471_v8  ;;  %v5028_v2 = vld [vmem:[%s6392_s1 + $0x150] sm:$0xff]  ;;  %v1475_v8 = vrot.slane %v4304_v38, 2 }
  0x6c   : > { %1309 = vmatpush.bf16.msra.mxu1 %v5028_v2 }
  0x6d   : > { %v1477_v13 = vsel %vm1471_vm2, %v1475_v8, %v1476_v9 }
  0x6e   : > { %906 = vmatmul.bf16.gmra.mxu3 %v3968_v15  ;;  %v4164_v15 = vor.u32 %v5009_v14, %v4163_v12  ;;  %v4315_v14 = vld [vmem:[%s5309_s18 + $0x28] sm:$0xf] }
  0x70   : > { %1310 = vmatpush.bf16.msra.mxu1 %v5027_v31  ;;  %v1061_v2 = vshrl.u32 %v4164_v15, 16  ;;  %v1064_v16 = vshll.u32 %v4164_v15, 16  ;;  %v4152_v31 = vor.u32 %v5004_v25, %v4149_v26  ;;  %v5039_v15 = vld [vmem:[%s5309_s18 + $0x2c] sm:$0xf0] }
  0x72   : > { %v1063_v21 = vrot.slane %v1061_v2, 1  ;;  %v1044_v42 = vshrl.u32 %v4152_v31, 16  ;;  %v4179_v2 = vld [vmem:[%s5309_s18 + $0x48] sm:$0xf] }
  0x74   : > { %1311 = vmatpush.bf16.msra.mxu1 %v5026_v45  ;;  %v1046_v51 = vrot.slane %v1044_v42, 1 }
  0x7b   : > { %857 = vmatmul.bf16.gmra.mxu2 %v5456_v36  ;;  %703 = vmatmul.bf16.gmra.mxu1 %v487_v23  ;;  %v498_v36 = vor.u32 %v496_v34, %v486_v22  ;;  %v523_v23 = vshrl.u32 %v5556_v44, 16  ;;  %v4160_v34 = vor.u32 %v5006_v28, %v4157_v29  ;;  %v5042_v29 = vld [vmem:[%s5309_s18 + $0x4c] sm:$0xf] }
  0x7d   : > { %v503_v40 = vsel %vm415_vm0, %v498_v36, %v502_v37  ;;  %v525_v33 = vor.u32 %v523_v23, %v518_v6  ;;  %v4299_v37 = vld [vmem:[%s5309_s18 + $0x8] sm:$0xc]  ;;  %v1055_v45 = vshll.u32 %v4160_v34, 16 }
  0x7e   : > { %911 = vmatmul.bf16.gmra.mxu3 %v3976_v30  ;;  %v4300_v32 = vor.u32 %v5035_v39, %v4299_v37 }
  0x7f   : > { %v1057_v54 = vrot.slane %v1055_v45, 2 }
  0x80   : > { %v1472_v60 = vrot.slane %v4300_v32, 2 }
  0x8b   : > { %862 = vmatmul.bf16.gmra.mxu2 %v5322_v11  ;;  %708 = vmatmul.bf16.gmra.mxu1 %v503_v40  ;;  %v5019_v11 = vld [vmem:[%s6392_s1 + $0x108] sm:$0xff]  ;;  %v4307_v40 = vld [vmem:[%s5309_s18 + $0x18] sm:$0xf] }
  0x8c   : > { %1266 = vmatpush.bf16.msrb.mxu0 %v5019_v11  ;;  %v1052_v11 = vshrl.u32 %v4160_v34, 16  ;;  %v4308_v49 = vor.u32 %v5037_v41, %v4307_v40 }
  0x8e   : > { %916 = vmatmul.bf16.gmra.mxu3 %v5556_v44  ;;  %v1047_v44 = vshll.u32 %v4152_v31, 16  ;;  %v1054_v53 = vrot.slane %v1052_v11, 1  ;;  %v1473_v61 = vrot.slane %v4308_v49, 2 }
  0x90   : > { %1267 = vmatpush.bf16.msrb.mxu0 %v5018_v55  ;;  %v1049_v52 = vrot.slane %v1047_v44, 2  ;;  %v1058_v38 = vor.u32 %v1057_v54, %v1054_v53  ;;  %v1474_v6 = vsel %vm1471_vm2, %v1472_v60, %v1473_v61  ;;  %v4173_v44 = vld [vmem:[%s5309_s18 + $0x40] sm:$0xf0] }
  0x92   : > { %v1050_v1 = vor.u32 %v1049_v52, %v1046_v51  ;;  %v5041_v51 = vld [vmem:[%s5309_s18 + $0x3c] sm:$0xf0]  ;;  %v4187_v52 = vld [vmem:[%s5309_s18 + $0x58] sm:$0xf] }
  0x93   : > { %1268 = vmatmul.bf16.vlgmr.msrb.gmra.mxu0 %v1042_v7  ;;  %v1484_v7 = vrot.slane %v4328_v0, 2 }
  0x94   : > { %v1059_v9 = vsel %vm1025_vm1, %v1050_v1, %v1058_v38 }
  0x95   : > { %v1485_v20 = vsel %vm1471_vm2, %v1480_v35, %v1484_v7 }
  0x9b   : > { %867 = vmatmul.bf16.gmra.mxu2 %v5336_v19  ;;  %713 = vmatmul.bf16.gmra.mxu1 %v519_v10  ;;  %v1066_v19 = vrot.slane %v1064_v16, 2 }
  0x9d   : > { %v1067_v22 = vor.u32 %v1066_v19, %v1063_v21  ;;  %v5013_v21 = vld [vmem:[%s5309_s18 + $0x4c] sm:$0xf0] }
  0x9e   : > { %1664 = vmatmul.bf16.vlgmr.msrb.gmra.mxu3 %v1477_v13  ;;  %v4180_v19 = vor.u32 %v5013_v21, %v4179_v2  ;;  %v5012_v21 = vld [vmem:[%s5309_s18 + $0x4c] sm:$0xf] }
  0x9f   : > { %v1068_v30 = vsel %vm1025_vm1, %v1041_v24, %v1067_v22  ;;  %v4168_v24 = vor.u32 %v5008_v3, %v4165_v4 }
  0xa0   : > { %v1097_v23 = vshrl.u32 %v4180_v19, 16  ;;  %v1100_v25 = vshll.u32 %v4180_v19, 16  ;;  %v4181_v19 = vld [vmem:[%s5309_s18 + $0x50] sm:$0xf0] }
  0xa1   : > { %v1070_v16 = vshrl.u32 %v4168_v24, 16  ;;  %v1073_v18 = vshll.u32 %v4168_v24, 16  ;;  %v4341_v24 = vld [vmem:[%s5309_s18 + $0x60] sm:$0xf0] }
  0xa2   : > { %v1099_v31 = vrot.slane %v1097_v23, 1 }
  0xa3   : > { %1273 = vmatmul.bf16.gmra.mxu0 %v1068_v30  ;;  %v1072_v26 = vrot.slane %v1070_v16, 1  ;;  %v1075_v27 = vrot.slane %v1073_v18, 2  ;;  %v4333_v30 = vld [vmem:[%s5309_s18 + $0x50] sm:$0xf0] }
  0xa4   : > { %v4336_v40 = vor.u32 %v5042_v29, %v4333_v30 }
  0xa5   : > { %v1076_v41 = vor.u32 %v1075_v27, %v1072_v26  ;;  %v4184_v26 = vor.u32 %v5012_v21, %v4181_v19  ;;  %v4339_v19 = vld [vmem:[%s5309_s18 + $0x58] sm:$0xf] }
  0xa6   : > { %v1488_v47 = vrot.slane %v4336_v40, 2 }
  0xa7   : > { %v1077_v32 = vsel %vm1025_vm1, %v1058_v38, %v1076_v41 }
  0xa8   : > { %v5591_v36 = vpop.f32.mrf.mxu1  ;;  %v1489_v57 = vsel %vm1471_vm2, %v1484_v7, %v1488_v47 }
  0xaa   : > { %v645_v13 = vpop.f32.mrf.mxu0 }
  0xab   : > { %872 = vmatmul.bf16.gmra.mxu2 %v5331_v17  ;;  %718 = vmatmul.bf16.gmra.mxu1 %v525_v33  ;;  %v1079_v17 = vshrl.u32 %v4172_v48, 16  ;;  %v1102_v33 = vrot.slane %v1100_v25, 2 }
  0xad   : > { %v1081_v58 = vrot.slane %v1079_v17, 1  ;;  %v1103_v35 = vor.u32 %v1102_v33, %v1099_v31 }
  0xae   : > { %1669 = vmatmul.bf16.gmra.mxu3 %v1481_v46  ;;  %v5614_v10 = vpop.f32.mrf.mxu2  ;;  %v4176_v46 = vor.u32 %v5010_v43, %v4173_v44  ;;  %v5043_v43 = vld [vmem:[%s5309_s18 + $0x4c] sm:$0xf0] }
  0xaf   : > { %v1085_v63 = vor.u32 %v1084_v59, %v1081_v58  ;;  %v5015_v58 = vld [vmem:[%s5309_s18 + $0x5c] sm:$0xf0] }
  0xb0   : > { %v5601_v55 = vpop.f32.mrf.mxu1  ;;  %v1088_v54 = vshrl.u32 %v4176_v46, 16  ;;  %v1091_v56 = vshll.u32 %v4176_v46, 16  ;;  %v4188_v60 = vor.u32 %v5015_v58, %v4187_v52 }
  0xb1   : > { %v5605_v62 = vpop.f32.mrf.mxu3  ;;  %v1086_v5 = vsel %vm1025_vm1, %v1067_v22, %v1085_v63  ;;  %v4316_v22 = vor.u32 %v5039_v15, %v4315_v14  ;;  %v1104_v11 = vsel %vm1025_vm1, %v1085_v63, %v1103_v35 }
  0xb2   : > { %v647_v42 = vpop.f32.mrf.mxu0  ;;  %v1115_v1 = vshrl.u32 %v4188_v60, 16  ;;  %v1118_v38 = vshll.u32 %v4188_v60, 16  ;;  %v1090_v3 = vrot.slane %v1088_v54, 1  ;;  %v1093_v4 = vrot.slane %v1091_v56, 2  ;;  %v5046_v54 = vld [vmem:[%s5309_s18 + $0x6c] sm:$0xf] }
  0xb3   : > { %1278 = vmatmul.bf16.gmra.mxu0 %v1086_v5  ;;  %v1478_v34 = vrot.slane %v4316_v22, 2  ;;  %v4349_v56 = vld [vmem:[%s5309_s18 + $0x70] sm:$0xf0] }
  0xb4   : > { %v1120_v7 = vrot.slane %v1118_v38, 2 }
  0xb5   : > { %v1479_v45 = vsel %vm1471_vm2, %v1473_v61, %v1478_v34  ;;  %v4324_v61 = vor.u32 %v5041_v51, %v4323_v50 }
  0xb6   : > { %v5629_v39 = vpop.f32.mrf.mxu2 }
  0xb7   : > { %v1482_v14 = vrot.slane %v4324_v61, 2 }
  0xb8   : > { %v5611_v8 = vpop.f32.mrf.mxu1 }
  0xb9   : > { %v5616_v12 = vpop.f32.mrf.mxu3  ;;  %v1483_v23 = vsel %vm1471_vm2, %v1478_v34, %v1482_v14  ;;  %v1109_v34 = vshll.u32 %v4184_v26, 16 }
  0xba   : > { %v650_v0 = vpop.f32.mrf.mxu0 }
  0xbb   : > { %1620 = vmatmul.bf16.vlgmr.msra.gmra.mxu2 %v1474_v6  ;;  %1312 = vmatmul.bf16.vlgmr.msra.gmra.mxu1 %v1059_v9  ;;  %v5044_v6 = vld [vmem:[%s5309_s18 + $0x5c] sm:$0xf]  ;;  %v1117_v9 = vrot.slane %v1115_v1, 1  ;;  %v1111_v52 = vrot.slane %v1109_v34, 2  ;;  %v4352_v1 = vor.u32 %v5046_v54, %v4349_v56 }
  0xbc   : > { %v4344_v16 = vor.u32 %v5044_v6, %v4341_v24  ;;  %v5014_v6 = vld [vmem:[%s5309_s18 + $0x5c] sm:$0xf]  ;;  %v4189_v24 = vld [vmem:[%s5309_s18 + $0x60] sm:$0xf0] }
  0xbd   : > { %v1121_v2 = vor.u32 %v1120_v7, %v1117_v9  ;;  %v1496_v7 = vrot.slane %v4352_v1, 2 }
  0xbe   : > { %1674 = vmatmul.bf16.gmra.mxu3 %v1485_v20  ;;  %v1094_v20 = vor.u32 %v1093_v4, %v1090_v3  ;;  %v1492_v27 = vrot.slane %v4344_v16, 2  ;;  %v4192_v16 = vor.u32 %v5014_v6, %v4189_v24  ;;  %v5105_v6 = vld [vmem:[%s6394_s3 + $0xf0] sm:$0xff] }
  0xbf   : > { %v1122_v22 = vsel %vm1025_vm1, %v1103_v35, %v1121_v2  ;;  %v4195_v35 = vld [vmem:[%s5309_s18 + $0x68] sm:$0xf] }
  0xc0   : > { %v5623_v28 = vpop.f32.mrf.mxu1  ;;  %v1095_v30 = vsel %vm1025_vm1, %v1076_v41, %v1094_v20 }
  0xc1   : > { %v5627_v37 = vpop.f32.mrf.mxu3 }
  0xc2   : > { %v652_v31 = vpop.f32.mrf.mxu0 }
  0xc3   : > { %1283 = vmatmul.bf16.gmra.mxu0 %v1104_v11  ;;  %v1493_v11 = vsel %vm1471_vm2, %v1488_v47, %v1492_v27 }
  0xc8   : > { %v689_v48 = vpop.f32.mrf.mxu1 }
  0xc9   : > { %v690_v49 = vadd.f32 %v689_v48, %v645_v13  ;;  %v5636_v17 = vpop.f32.mrf.mxu3 }
  0xca   : > { %v655_v61 = vpop.f32.mrf.mxu0 }
  0xcb   : > { %1625 = vmatmul.bf16.gmra.mxu2 %v1479_v45  ;;  %1317 = vmatmul.bf16.gmra.mxu1 %v1077_v32  ;;  %v5017_v45 = vld [vmem:[%s5309_s18 + $0x6c] sm:$0xf0] }
  0xcc   : > { %v4196_v48 = vor.u32 %v5017_v45, %v4195_v35 }
  0xce   : > { %v843_v53 = vpop.f32.mrf.mxu2  ;;  %1679 = vmatmul.bf16.gmra.mxu3 %v1489_v57  ;;  %v1136_v50 = vshll.u32 %v4196_v48, 16 }
  0xcf   : > { %v844_v59 = vadd.f32 %v843_v53, %v690_v49  ;;  %v1133_v49 = vshrl.u32 %v4196_v48, 16  ;;  %v5016_v48 = vld [vmem:[%s5309_s18 + $0x6c] sm:$0xf] }
  0xd0   : > { %v691_v5 = vpop.f32.mrf.mxu1  ;;  %v1138_v58 = vrot.slane %v1136_v50, 2  ;;  %v5085_v50 = vld [vmem:[%s6394_s3 + $0x78] sm:$0xff] }
  0xd1   : > { %v5644_v63 = vadd.f32 %v5605_v62, %v844_v59  ;;  %v692_v13 = vadd.f32 %v691_v5, %v647_v42  ;;  %v5648_v15 = vpop.f32.mrf.mxu3  ;;  %v4331_v42 = vld [vmem:[%s5309_s18 + $0x48] sm:$0xf]  ;;  %v1135_v57 = vrot.slane %v1133_v49, 1  ;;  %1967 = vmatpush.bf16.msra.mxu0 %v5085_v50 }
  0xd2   : > { %v4332_v32 = vor.u32 %v5043_v43, %v4331_v42  ;;  %v1376_v43 = vld [vmem:[%s5309_s18 + $0x78] sm:$0x11] }
  0xd3   : > { %1288 = vmatmul.bf16.gmra.mxu0 %v1122_v22  ;;  %v5045_v22 = vld [vmem:[%s5309_s18 + $0x5c] sm:$0xf0] }
  0xd4   : > { %v1486_v59 = vrot.slane %v4332_v32, 2  ;;  %v4197_v32 = vld [vmem:[%s5309_s18 + $0x70] sm:$0xf0] }
  0xd5   : > { %v4200_v56 = vor.u32 %v5016_v48, %v4197_v32 }
  0xd6   : > { %v845_v62 = vpop.f32.mrf.mxu2  ;;  %v1487_v5 = vsel %vm1471_vm2, %v1482_v14, %v1486_v59  ;;  %v1497_v14 = vsel %vm1471_vm2, %v1492_v27, %v1496_v7 }
  0xd7   : > { %v846_v18 = vadd.f32 %v845_v62, %v692_v13 }
  0xd8   : > { %v694_v29 = vpop.f32.mrf.mxu1 }
  0xd9   : > { %v5655_v25 = vadd.f32 %v5616_v12, %v846_v18  ;;  %v695_v33 = vadd.f32 %v694_v29, %v650_v0  ;;  %v5658_v40 = vpop.f32.mrf.mxu3  ;;  %v1106_v12 = vshrl.u32 %v4184_v26, 16  ;;  %v1139_v0 = vor.u32 %v1138_v58, %v1135_v57 }
  0xda   : > { %v1124_v26 = vshrl.u32 %v4192_v16, 16  ;;  %v1127_v29 = vshll.u32 %v4192_v16, 16 }
  0xdb   : > { %1630 = vmatmul.bf16.gmra.mxu2 %v1483_v23  ;;  %1322 = vmatmul.bf16.gmra.mxu1 %v1095_v30  ;;  %v1108_v51 = vrot.slane %v1106_v12, 1  ;;  %v1140_v4 = vsel %vm1025_vm1, %v1121_v2, %v1139_v0  ;;  %v4340_v30 = vor.u32 %v5045_v22, %v4339_v19  ;;  %v1454_v12 = vunpack.c.h.b16 %v1376_v43 }
  0xdc   : > { %v1126_v42 = vrot.slane %v1124_v26, 1  ;;  %v1129_v27 = vrot.slane %v1127_v29, 2  ;;  %v1453_v29 = vunpack.c.l.b16 %v1376_v43  ;;  %v5075_v43 = vld [vmem:[%s6394_s3 + $0x28] sm:$0xff] }
  0xdd   : > { %v1112_v3 = vor.u32 %v1111_v52, %v1108_v51  ;;  %v1490_v35 = vrot.slane %v4340_v30, 2  ;;  %v5077_v51 = vld [vmem:[%s6394_s3 + $0x38] sm:$0xff] }
  0xde   : > { %v848_v44 = vpop.f32.mrf.mxu2  ;;  %1684 = vmatmul.bf16.gmra.mxu3 %v1493_v11  ;;  %v1470_v11 = vpack.c.b16 %v1454_v12, %v1454_v12  ;;  %v1130_v45 = vor.u32 %v1129_v27, %v1126_v42  ;;  %2065 = vmatpush.bf16.msrb.mxu1 %v5077_v51  ;;  %v1469_v27 = vpack.c.b16 %v1453_v29, %v1453_v29  ;;  %v5096_v12 = vld [vmem:[%s6394_s3 + $0xa8] sm:$0xff] }
  0xdf   : > { %v849_v46 = vadd.f32 %v848_v44, %v695_v33  ;;  %v1113_v62 = vsel %vm1025_vm1, %v1094_v20, %v1112_v3  ;;  %v5098_v20 = vld [vmem:[%s6394_s3 + $0xb8] sm:$0xff] }
  0xe0   : > { %v696_v53 = vpop.f32.mrf.mxu1  ;;  %2288 = vmatpush.bf16.msrb.mxu2 %v5098_v20  ;;  %v1500_v52 = vrot.slane %v1470_v11, 2  ;;  %v1131_v54 = vsel %vm1025_vm1, %v1112_v3, %v1130_v45  ;;  %v5097_v3 = vld [vmem:[%s6394_s3 + $0xb0] sm:$0xff] }
  0xe1   : > { %v5666_v41 = vadd.f32 %v5627_v37, %v849_v46  ;;  %v697_v47 = vadd.f32 %v696_v53, %v652_v31  ;;  %v5670_v60 = vpop.f32.mrf.mxu3  ;;  %v1491_v46 = vsel %vm1471_vm2, %v1486_v59, %v1490_v35  ;;  %v5047_v59 = vld [vmem:[%s5309_s18 + $0x6c] sm:$0xf0] }
  0xe3   : > { %1293 = vmatmul.bf16.gmra.mxu0 %v1140_v4  ;;  %v1145_v4 = vshll.u32 %v4200_v56, 16 }
  0xe4   : > { %2289 = vmatpush.bf16.msrb.mxu2 %v5097_v3 }
  0xe6   : > { %v850_v37 = vpop.f32.mrf.mxu2 }
  0xe7   : > { %v851_v38 = vadd.f32 %v850_v37, %v697_v47  ;;  %v4347_v47 = vld [vmem:[%s5309_s18 + $0x68] sm:$0xf]  ;;  %v1501_v37 = vsel %vm1471_vm2, %v1496_v7, %v1500_v52  ;;  %v1147_v7 = vrot.slane %v1145_v4, 2 }
  0xe8   : > { %v699_v13 = vpop.f32.mrf.mxu1  ;;  %2290 = vmatpush.bf16.msrb.mxu2 %v5096_v12 }
  0xe9   : > { %v5677_v9 = vadd.f32 %v5636_v17, %v851_v38  ;;  %v700_v18 = vadd.f32 %v699_v13, %v655_v61  ;;  %v5680_v21 = vpop.f32.mrf.mxu3  ;;  %v5685_v17 = vpop.f32.mrf.mxu0  ;;  %v1142_v38 = vshrl.u32 %v4200_v56, 16 }
  0xeb   : > { %1635 = vmatmul.bf16.gmra.mxu2 %v1487_v5  ;;  %1327 = vmatmul.bf16.gmra.mxu1 %v1113_v62  ;;  %v1144_v13 = vrot.slane %v1142_v38, 1  ;;  %v5073_v38 = vld [vmem:[%s6394_s3 + $0x18] sm:$0xff] }
  0xed   : > { %v1148_v22 = vor.u32 %v1147_v7, %v1144_v13 }
  0xee   : > { %v853_v2 = vpop.f32.mrf.mxu2  ;;  %1689 = vmatmul.bf16.gmra.mxu3 %v1497_v14 }
  0xef   : > { %v854_v23 = vadd.f32 %v853_v2, %v700_v18  ;;  %v5076_v18 = vld [vmem:[%s6394_s3 + $0x30] sm:$0xff] }
  0xf0   : > { %v5693_v33 = vpop.f32.mrf.mxu1  ;;  %2066 = vmatpush.bf16.msrb.mxu1 %v5076_v18  ;;  %v5102_v18 = vld [vmem:[%s6394_s3 + $0xd8] sm:$0xff] }
  0xf1   : > { %v5688_v31 = vadd.f32 %v5648_v15, %v854_v23  ;;  %v907_v44 = vpop.f32.mrf.mxu3  ;;  %v5106_v15 = vld [vmem:[%s6394_s3 + $0xf8] sm:$0xff]  ;;  %v660_v49 = vpop.f32.mrf.mxu0  ;;  %v1149_v23 = vsel %vm1025_vm1, %v1130_v45, %v1148_v22 }
  0xf2   : > { %2437 = vmatpush.bf16.msra.mxu3 %v5106_v15 }
  0xf3   : > { %1298 = vmatmul.bf16.gmra.mxu0 %v1139_v0  ;;  %v4348_v0 = vor.u32 %v5047_v59, %v4347_v47 }
  0xf4   : > { %2067 = vmatpush.bf16.msrb.mxu1 %v5075_v43  ;;  %v5093_v43 = vld [vmem:[%s6394_s3 + $0x90] sm:$0xff] }
  0xf5   : > { %v1494_v62 = vrot.slane %v4348_v0, 2 }
  0xf6   : > { %v5699_v34 = vpop.f32.mrf.mxu2  ;;  %2438 = vmatpush.bf16.msra.mxu3 %v5105_v6  ;;  %v5072_v6 = vld [vmem:[%s6394_s3 + $0x10] sm:$0xff] }
  0xf7   : > { %v1495_v2 = vsel %vm1471_vm2, %v1490_v35, %v1494_v62  ;;  %v5104_v35 = vld [vmem:[%s6394_s3 + $0xe8] sm:$0xff] }
  0xf8   : > { %v704_v53 = vpop.f32.mrf.mxu1 }
  0xf9   : > { %v705_v57 = vadd.f32 %v704_v53, %v660_v49  ;;  %v5711_v58 = vpop.f32.mrf.mxu3  ;;  %v5759_v32 = vpop.f32.mrf.mxu0  ;;  %v5095_v53 = vld [vmem:[%s6394_s3 + $0xa0] sm:$0xff] }
  0xfa   : > { %2439 = vmatpush.bf16.msra.mxu3 %v5104_v35  ;;  %2291 = vmatpush.bf16.msrb.mxu2 %v5095_v53 }
  0xfb   : > { %1640 = vmatmul.bf16.gmra.mxu2 %v1491_v46  ;;  %1332 = vmatmul.bf16.gmra.mxu1 %v1131_v54 }
  0xfe   : > { %v858_v61 = vpop.f32.mrf.mxu2  ;;  %1694 = vmatmul.bf16.gmra.mxu3 %v1501_v37  ;;  %v5074_v37 = vld [vmem:[%s6394_s3 + $0x20] sm:$0xff] }
  0xff   : > { %v859_v1 = vadd.f32 %v858_v61, %v705_v57  ;;  %v5082_v61 = vld [vmem:[%s6394_s3 + $0x60] sm:$0xff]  ;;  %2068 = vmatpush.bf16.msrb.mxu1 %v5074_v37 }
 0x100   : > { %v5725_v24 = vpop.f32.mrf.mxu1 }
 0x101   : > { %v5717_v5 = vadd.f32 %v5670_v60, %v859_v1  ;;  %v912_v16 = vpop.f32.mrf.mxu3  ;;  %v5084_v60 = vld [vmem:[%s6394_s3 + $0x70] sm:$0xff] }
 0x102   : > { %1968 = vmatpush.bf16.msra.mxu0 %v5084_v60  ;;  %v5094_v60 = vld [vmem:[%s6394_s3 + $0x98] sm:$0xff] }
 0x103   : > { %2069 = vmatpush.bf16.msrb.mxu1 %v5073_v38  ;;  %2292 = vmatpush.bf16.msrb.mxu2 %v5094_v60  ;;  %v5078_v38 = vld [vmem:[%s6394_s3 + $0x40] sm:$0xff] }
 0x106   : > { %v5733_v19 = vpop.f32.mrf.mxu2 }
 0x107   : > { %2070 = vmatpush.bf16.msrb.mxu1 %v5072_v6  ;;  %2293 = vmatpush.bf16.msrb.mxu2 %v5093_v43 }
 0x108   : > { %v709_v14 = vpop.f32.mrf.mxu1 }
 0x109   : > { %v710_v26 = vadd.f32 %v709_v14, %v5591_v36  ;;  %v5738_v30 = vpop.f32.mrf.mxu3  ;;  %v5083_v36 = vld [vmem:[%s6394_s3 + $0x68] sm:$0xff]  ;;  %v5081_v14 = vld [vmem:[%s6394_s3 + $0x58] sm:$0xff] }
 0x10a   : > { %1969 = vmatpush.bf16.msra.mxu0 %v5083_v36 }
 0x10b   : > { %1645 = vmatmul.bf16.gmra.mxu2 %v1495_v2  ;;  %1337 = vmatmul.bf16.gmra.mxu1 %v1149_v23  ;;  %v5070_v23 = vld [vmem:[%s6394_s3] sm:$0xff] }
 0x10e   : > { %v863_v20 = vpop.f32.mrf.mxu2  ;;  %1970 = vmatpush.bf16.msra.mxu0 %v5082_v61 }
 0x10f   : > { %v864_v42 = vadd.f32 %v863_v20, %v710_v26 }
 0x110   : > { %v5754_v11 = vpop.f32.mrf.mxu1  ;;  %v1269_v57 = vpop.f32.mrf.mxu0 }
 0x111   : > { %v5740_v15 = vadd.f32 %v907_v44, %v864_v42  ;;  %v1498_v44 = vrot.slane %v1469_v27, 2  ;;  %v917_v45 = vpop.f32.mrf.mxu3 }
 0x112   : > { %1971 = vmatpush.bf16.msra.mxu0 %v5081_v14  ;;  %v5100_v14 = vld [vmem:[%s6394_s3 + $0xc8] sm:$0xff] }
 0x113   : > { %v1499_v48 = vsel %vm1471_vm2, %v1494_v62, %v1498_v44  ;;  %v5101_v44 = vld [vmem:[%s6394_s3 + $0xd0] sm:$0xff] }
 0x116   : > { %v5756_v46 = vpop.f32.mrf.mxu2 }
 0x118   : > { %v714_v49 = vpop.f32.mrf.mxu1  ;;  %v1271_v0 = vpop.f32.mrf.mxu0 }
 0x119   : > { %v715_v50 = vadd.f32 %v714_v49, %v5611_v8  ;;  %v5762_v51 = vpop.f32.mrf.mxu3  ;;  %v5103_v8 = vld [vmem:[%s6394_s3 + $0xe0] sm:$0xff] }
 0x11a   : > { %2440 = vmatpush.bf16.msra.mxu3 %v5103_v8 }
 0x11b   : > { %1650 = vmatmul.bf16.gmra.mxu2 %v1499_v48  ;;  %1342 = vmatmul.bf16.gmra.mxu1 %v1148_v22 }
 0x11e   : > { %v868_v52 = vpop.f32.mrf.mxu2  ;;  %2441 = vmatpush.bf16.msra.mxu3 %v5102_v18 }
 0x11f   : > { %v869_v54 = vadd.f32 %v868_v52, %v715_v50  ;;  %v5823_v52 = vld [vmem:[%s6393_s2] ss:$0 sm:$0xff] }
 0x120   : > { %v5769_v47 = vpop.f32.mrf.mxu1  ;;  %v1274_v2 = vpop.f32.mrf.mxu0 }
 0x121   : > { %v5767_v56 = vadd.f32 %v912_v16, %v869_v54  ;;  %v1665_v59 = vpop.f32.mrf.mxu3 }
 0x122   : > { %2442 = vmatpush.bf16.msra.mxu3 %v5101_v44  ;;  %v5099_v44 = vld [vmem:[%s6394_s3 + $0xc0] sm:$0xff] }
 0x126   : > { %v5780_v1 = vpop.f32.mrf.mxu2  ;;  %2443 = vmatpush.bf16.msra.mxu3 %v5100_v14 }
 0x128   : > { %v719_v4 = vpop.f32.mrf.mxu1  ;;  %v1276_v12 = vpop.f32.mrf.mxu0 }
 0x129   : > { %v720_v3 = vadd.f32 %v719_v4, %v5614_v10  ;;  %v1667_v7 = vpop.f32.mrf.mxu3  ;;  %v5071_v10 = vld [vmem:[%s6394_s3 + $0x8] sm:$0xff] }
 0x12a   : > { %2071 = vmatpush.bf16.msrb.mxu1 %v5071_v10  ;;  %v5092_v10 = vld [vmem:[%s6394_s3 + $0x88] sm:$0xff]  ;;  %2444 = vmatpush.bf16.msra.mxu3 %v5099_v44 }
 0x12b   : > { %2294 = vmatpush.bf16.msrb.mxu2 %v5092_v10 }
 0x12e   : > { %v873_v13 = vpop.f32.mrf.mxu2  ;;  %2072 = vmatpush.bf16.msrb.mxu1 %v5070_v23 }
 0x12f   : > { %v874_v62 = vadd.f32 %v873_v13, %v720_v3 }
 0x130   : > { %v5800_v22 = vpop.f32.mrf.mxu1  ;;  %v1279_v37 = vpop.f32.mrf.mxu0 }
 0x131   : > { %v5789_v16 = vadd.f32 %v917_v45, %v874_v62  ;;  %v1670_v29 = vpop.f32.mrf.mxu3  ;;  %v5080_v45 = vld [vmem:[%s6394_s3 + $0x50] sm:$0xff] }
 0x132   : > { %1972 = vmatpush.bf16.msra.mxu0 %v5080_v45 }
 0x136   : > { %v5808_v26 = vpop.f32.mrf.mxu2 }
 0x138   : > { %v1313_v20 = vpop.f32.mrf.mxu1 }
 0x139   : > { %v1314_v42 = vadd.f32 %v1313_v20, %v1269_v57  ;;  %v1672_v48 = vpop.f32.mrf.mxu3  ;;  %v5079_v57 = vld [vmem:[%s6394_s3 + $0x48] sm:$0xff]  ;;  %v1281_v20 = vpop.f32.mrf.mxu0 }
 0x13a   : > { %1973 = vmatpush.bf16.msra.mxu0 %v5079_v57 }
 0x13b   : > { %v1348_v35 = vadd.f32 %v1314_v42, %v5644_v63 }
 0x13e   : > { %v1621_v27 = vpop.f32.mrf.mxu2  ;;  %1974 = vmatpush.bf16.msra.mxu0 %v5078_v38 }
 0x13f   : > { %v1666_v36 = vadd.f32 %v1665_v59, %v1621_v27 }
 0x140   : > { %v1315_v49 = vpop.f32.mrf.mxu1 }
 0x141   : > { %v1316_v50 = vadd.f32 %v1315_v49, %v1271_v0  ;;  %v1700_v63 = vadd.f32 %v1666_v36, %v1348_v35  ;;  %v1675_v3 = vpop.f32.mrf.mxu3 }
 0x143   : > { %v1349_v53 = vadd.f32 %v1316_v50, %v5655_v25  ;;  %v1718_v8 = vadd.f32 %v5823_v52, %v1700_v63  ;;  %v702_v50 = vadd.f32 %v5693_v33, %v5685_v17 }
 0x145   : > { %v1732_v25 = vmax.f32 %v1718_v8, 0.0  ;;  %v856_v8 = vadd.f32 %v5699_v34, %v702_v50 }
 0x146   : > { %v1623_v54 = vpop.f32.mrf.mxu2 }
 0x147   : > { %v1668_v59 = vadd.f32 %v1667_v7, %v1623_v54  ;;  %v1284_v54 = vpop.f32.mrf.mxu0 }
 0x148   : > { %v1318_v0 = vpop.f32.mrf.mxu1 }
 0x149   : > { %v1701_v61 = vadd.f32 %v1668_v59, %v1349_v53  ;;  %v1319_v13 = vadd.f32 %v1318_v0, %v1274_v2  ;;  %v1677_v36 = vpop.f32.mrf.mxu3 }
 0x14b   : > { %v1719_v4 = vadd.f32 %v5823_v52, %v1701_v61  ;;  %v1350_v7 = vadd.f32 %v1319_v13, %v5666_v41  ;;  %v5091_v41 = vld [vmem:[%s6394_s3 + $0x80] sm:$0xff] }
 0x14c   : > { %2295 = vmatpush.bf16.msrb.mxu2 %v5091_v41 }
 0x14d   : > { %v1733_v6 = vmax.f32 %v1719_v4, 0.0 }
 0x14e   : > { %v1626_v62 = vpop.f32.mrf.mxu2 }
 0x14f   : > { %v5162_v60 = vpack.c.bf16 %v1733_v6, %v1732_v25  ;;  %v1671_v18 = vadd.f32 %v1670_v29, %v1626_v62  ;;  %v900_v25 = vadd.f32 %v5658_v40, %v856_v8  ;;  %v707_v40 = vadd.f32 %v5725_v24, %v5759_v32 }
 0x150   : > { %v1320_v23 = vpop.f32.mrf.mxu1 }
 0x151   : > { %5163 = vst [vmem:[#allocation2] sm:$0xff] %v5162_v60   ;;  %v1321_v42 = vadd.f32 %v1320_v23, %v1276_v12  ;;  %v1702_v2 = vadd.f32 %v1671_v18, %v1350_v7  ;;  %v1680_v61 = vpop.f32.mrf.mxu3 }
 0x153   : > { %v1351_v27 = vadd.f32 %v1321_v42, %v5677_v9  ;;  %v1720_v45 = vadd.f32 %v5823_v52, %v1702_v2 }
 0x155   : > { %v1734_v63 = vmax.f32 %v1720_v45, 0.0 }
 0x156   : > { %v1628_v35 = vpop.f32.mrf.mxu2 }
 0x157   : > { %v1673_v29 = vadd.f32 %v1672_v48, %v1628_v35 }
 0x158   : > { %v5064_v43 = vld [vmem:[#allocation2] sm:$0xff]  ;;  %v1323_v12 = vpop.f32.mrf.mxu1 }
 0x159   : > { %v1703_v49 = vadd.f32 %v1673_v29, %v1351_v27  ;;  %2073 = vmatmul.bf16.vlgmr.msrb.gmra.mxu1 %v5064_v43  ;;  %v1324_v48 = vadd.f32 %v1323_v12, %v1279_v37  ;;  %v1861_v13 = vshll.u32 %v5064_v43, 16  ;;  %v1286_v37 = vpop.f32.mrf.mxu0  ;;  %v1682_v14 = vpop.f32.mrf.mxu3  ;;  %v1859_v23 = vshrl.u32 %v5064_v43, 16  ;;  %v2108_v45 = vld [vmem:[#allocation2 + $0x4] sm:$0xe] }
 0x15a   : > { %v2344_v12 = vld [vmem:[#allocation2 + $0x4] sm:$0xc] }
 0x15b   : > { %v1721_v9 = vadd.f32 %v5823_v52, %v1703_v49  ;;  %v1352_v38 = vadd.f32 %v1324_v48, %v5688_v31  ;;  %v1863_v18 = vrot.slane %v1861_v13, 1  ;;  %v2365_v48 = vunpack.c.l.b16 %v2344_v12 }
 0x15d   : > { %v1735_v53 = vmax.f32 %v1721_v9, 0.0  ;;  %v861_v9 = vadd.f32 %v5733_v19, %v707_v40 }
 0x15e   : > { %v1631_v57 = vpop.f32.mrf.mxu2 }
 0x15f   : > { %v5167_v59 = vpack.c.bf16 %v1735_v53, %v1734_v63  ;;  %v1676_v4 = vadd.f32 %v1675_v3, %v1631_v57  ;;  %v2151_v63 = vunpack.c.l.b16 %v2108_v45 }
 0x160   : > { %v1325_v0 = vpop.f32.mrf.mxu1 }
 0x161   : > { %5193 = vst [vmem:[#allocation2 + $0x8] sm:$0xff] %v5167_v59   ;;  %v1326_v6 = vadd.f32 %v1325_v0, %v1281_v20  ;;  %v1704_v62 = vadd.f32 %v1676_v4, %v1352_v38  ;;  %v1864_v20 = vor.u32 %v1863_v18, %v1859_v23  ;;  %v1289_v32 = vpop.f32.mrf.mxu0  ;;  %v1685_v8 = vpop.f32.mrf.mxu3 }
 0x163   : > { %v1353_v17 = vadd.f32 %v1326_v6, %v900_v25  ;;  %v1722_v10 = vadd.f32 %v5823_v52, %v1704_v62 }
 0x165   : > { %v1736_v35 = vmax.f32 %v1722_v10, 0.0 }
 0x166   : > { %v1633_v33 = vpop.f32.mrf.mxu2 }
 0x167   : > { %v1678_v60 = vadd.f32 %v1677_v36, %v1633_v33 }
 0x168   : > { %v5065_v7 = vld [vmem:[#allocation2 + $0x8] sm:$0xff]  ;;  %v1328_v42 = vpop.f32.mrf.mxu1 }
 0x169   : > { %v1705_v34 = vadd.f32 %v1678_v60, %v1353_v17  ;;  %2078 = vmatmul.bf16.gmra.mxu1 %v5065_v7  ;;  %v1866_v31 = vshll.u32 %v5065_v7, 16  ;;  %v2109_v27 = vld [vmem:[#allocation2 + $0x8] sm:$0xf]  ;;  %v1329_v41 = vadd.f32 %v1328_v42, %v1284_v54  ;;  %v905_v54 = vadd.f32 %v5680_v21, %v861_v9  ;;  %v1687_v45 = vpop.f32.mrf.mxu3 }
 0x16a   : > { %v2152_v43 = vunpack.c.l.b16 %v2109_v27  ;;  %v1870_v60 = vshrl.u32 %v5065_v7, 16 }
 0x16b   : > { %v1723_v3 = vadd.f32 %v5823_v52, %v1705_v34  ;;  %v1868_v2 = vrot.slane %v1866_v31, 1  ;;  %v1354_v50 = vadd.f32 %v1329_v41, %v5717_v5  ;;  %v712_v34 = vadd.f32 %v5754_v11, %v5601_v55  ;;  %v1291_v31 = vpop.f32.mrf.mxu0 }
 0x16c   : > { %v2164_v57 = vpack.c.b16 %v2152_v43, %v2151_v63  ;;  %v2367_v4 = vpack.c.b16 %v2152_v43, %v2365_v48 }
 0x16d   : > { %v1737_v36 = vmax.f32 %v1723_v3, 0.0  ;;  %v1869_v44 = vsel %vm415_vm0, %v1864_v20, %v1868_v2  ;;  %v1872_v20 = vor.u32 %v1870_v60, %v1868_v2  ;;  %v866_v9 = vadd.f32 %v5756_v46, %v712_v34 }
 0x16e   : > { %v1636_v29 = vpop.f32.mrf.mxu2  ;;  %1975 = vmatmul.bf16.vlgmr.msra.gmra.mxu0 %v1869_v44  ;;  %v2172_v19 = vshrl.u32 %v2164_v57, 16  ;;  %v2175_v13 = vshll.u32 %v2164_v57, 16  ;;  %v2369_v33 = vrot.slane %v2367_v4, 2 }
 0x16f   : > { %v5172_v49 = vpack.c.bf16 %v1737_v36, %v1736_v35  ;;  %v1681_v24 = vadd.f32 %v1680_v61, %v1636_v29 }
 0x170   : > { %v1330_v53 = vpop.f32.mrf.mxu1  ;;  %v2174_v3 = vrot.slane %v2172_v19, 1  ;;  %v2177_v42 = vrot.slane %v2175_v13, 2 }
 0x171   : > { %5194 = vst [vmem:[#allocation2 + $0x10] sm:$0xff] %v5172_v49   ;;  %v1331_v59 = vadd.f32 %v1330_v53, %v1286_v37  ;;  %v1706_v38 = vadd.f32 %v1681_v24, %v1354_v50 }
 0x172   : > { %v2178_v49 = vor.u32 %v2177_v42, %v2174_v3 }
 0x173   : > { %v1355_v0 = vadd.f32 %v1331_v59, %v905_v54  ;;  %v1724_v61 = vadd.f32 %v5823_v52, %v1706_v38  ;;  %v1294_v48 = vpop.f32.mrf.mxu0  ;;  %v1690_v38 = vpop.f32.mrf.mxu3 }
 0x175   : > { %v1738_v35 = vmax.f32 %v1724_v61, 0.0 }
 0x176   : > { %v1638_v25 = vpop.f32.mrf.mxu2 }
 0x177   : > { %v1683_v6 = vadd.f32 %v1682_v14, %v1638_v25 }
 0x178   : > { %v5863_v62 = vld [vmem:[#allocation2 + $0x10] sm:$0xff]  ;;  %v1333_v23 = vpop.f32.mrf.mxu1 }
 0x179   : > { %v5086_v5 = vld [vmem:[#allocation2 + $0xc] sm:$0xff]  ;;  %v1707_v17 = vadd.f32 %v1683_v6, %v1355_v0  ;;  %2083 = vmatmul.bf16.gmra.mxu1 %v5863_v62  ;;  %v1874_v37 = vshll.u32 %v5863_v62, 16  ;;  %v1334_v41 = vadd.f32 %v1333_v23, %v1289_v32  ;;  %v910_v32 = vadd.f32 %v5711_v58, %v866_v9 }
 0x17a   : > { %v2370_v21 = vrot.slane %v5086_v5, 2  ;;  %v2180_v18 = vshrl.u32 %v5086_v5, 16  ;;  %v2183_v10 = vshll.u32 %v5086_v5, 16  ;;  %v717_v58 = vadd.f32 %v5769_v47, %v5623_v28 }
 0x17b   : > { %v1725_v14 = vadd.f32 %v5823_v52, %v1707_v17  ;;  %v1876_v7 = vrot.slane %v1874_v37, 1  ;;  %v1356_v2 = vadd.f32 %v1334_v41, %v5740_v15  ;;  %v1878_v15 = vshrl.u32 %v5863_v62, 16  ;;  %v1296_v3 = vpop.f32.mrf.mxu0 }
 0x17c   : > { %v2371_v40 = vsel %vm1471_vm2, %v2369_v33, %v2370_v21  ;;  %v2182_v27 = vrot.slane %v2180_v18, 1  ;;  %v2185_v29 = vrot.slane %v2183_v10, 2  ;;  %v871_v47 = vadd.f32 %v5780_v1, %v717_v58  ;;  %v5117_v58 = vld [vmem:[%s6396_s5 + $0x38] sm:$0xff] }
 0x17d   : > { %v1739_v36 = vmax.f32 %v1725_v14, 0.0  ;;  %2445 = vmatmul.bf16.vlgmr.msra.gmra.mxu3 %v2371_v40  ;;  %v1877_v55 = vsel %vm415_vm0, %v1872_v20, %v1876_v7  ;;  %v1880_v33 = vor.u32 %v1878_v15, %v1876_v7  ;;  %v1692_v20 = vpop.f32.mrf.mxu3  ;;  %2690 = vmatpush.bf16.msrb.mxu0 %v5117_v58 }
 0x17e   : > { %v1641_v44 = vpop.f32.mrf.mxu2  ;;  %1980 = vmatmul.bf16.gmra.mxu0 %v1877_v55  ;;  %v2186_v43 = vor.u32 %v2185_v29, %v2182_v27  ;;  %v915_v27 = vadd.f32 %v5738_v30, %v871_v47 }
 0x17f   : > { %v5177_v11 = vpack.c.bf16 %v1739_v36, %v1738_v35  ;;  %v1686_v12 = vadd.f32 %v1685_v8, %v1641_v44 }
 0x180   : > { %v2187_v50 = vsel %vm1025_vm1, %v2178_v49, %v2186_v43  ;;  %v1335_v24 = vpop.f32.mrf.mxu1 }
 0x181   : > { %5195 = vst [vmem:[#allocation2 + $0x18] sm:$0xff] %v5177_v11   ;;  %2296 = vmatmul.bf16.vlgmr.msrb.gmra.mxu2 %v2187_v50  ;;  %v1336_v63 = vadd.f32 %v1335_v24, %v1291_v31  ;;  %v1708_v53 = vadd.f32 %v1686_v12, %v1356_v2  ;;  %v722_v50 = vadd.f32 %v5800_v22, %v5629_v39 }
 0x183   : > { %v1357_v57 = vadd.f32 %v1336_v63, %v910_v32  ;;  %v1726_v46 = vadd.f32 %v5823_v52, %v1708_v53 }
 0x185   : > { %v1740_v18 = vmax.f32 %v1726_v46, 0.0 }
 0x186   : > { %v1643_v54 = vpop.f32.mrf.mxu2 }
 0x187   : > { %v1688_v59 = vadd.f32 %v1687_v45, %v1643_v54  ;;  %v1299_v45 = vpop.f32.mrf.mxu0 }
 0x188   : > { %v5067_v4 = vld [vmem:[#allocation2 + $0x18] sm:$0xff]  ;;  %v1338_v61 = vpop.f32.mrf.mxu1 }
 0x189   : > { %v5087_v0 = vld [vmem:[#allocation2 + $0x14] sm:$0xff]  ;;  %v1709_v25 = vadd.f32 %v1688_v59, %v1357_v57  ;;  %2088 = vmatmul.bf16.gmra.mxu1 %v5067_v4  ;;  %v1882_v6 = vshll.u32 %v5067_v4, 16  ;;  %v1339_v34 = vadd.f32 %v1338_v61, %v1294_v48  ;;  %v1886_v49 = vshrl.u32 %v5067_v4, 16 }
 0x18a   : > { %v2372_v8 = vrot.slane %v5087_v0, 2  ;;  %v2189_v19 = vshrl.u32 %v5087_v0, 16  ;;  %v2192_v13 = vshll.u32 %v5087_v0, 16 }
 0x18b   : > { %v1727_v5 = vadd.f32 %v5823_v52, %v1709_v25  ;;  %v1884_v60 = vrot.slane %v1882_v6, 1  ;;  %v876_v6 = vadd.f32 %v5808_v26, %v722_v50 }
 0x18c   : > { %v2373_v17 = vsel %vm1471_vm2, %v2370_v21, %v2372_v8  ;;  %v2191_v37 = vrot.slane %v2189_v19, 1  ;;  %v2194_v62 = vrot.slane %v2192_v13, 2  ;;  %v1358_v21 = vadd.f32 %v1339_v34, %v5767_v56 }
 0x18d   : > { %v1741_v10 = vmax.f32 %v1727_v5, 0.0  ;;  %2450 = vmatmul.bf16.gmra.mxu3 %v2373_v17  ;;  %v1885_v23 = vsel %vm415_vm0, %v1880_v33, %v1884_v60  ;;  %v1888_v63 = vor.u32 %v1886_v49, %v1884_v60  ;;  %v920_v61 = vadd.f32 %v5762_v51, %v876_v6 }
 0x18e   : > { %v1646_v14 = vpop.f32.mrf.mxu2  ;;  %1985 = vmatmul.bf16.gmra.mxu0 %v1885_v23  ;;  %v2195_v28 = vor.u32 %v2194_v62, %v2191_v37 }
 0x18f   : > { %v5182_v31 = vpack.c.bf16 %v1741_v10, %v1740_v18  ;;  %v1691_v42 = vadd.f32 %v1690_v38, %v1646_v14  ;;  %v1301_v13 = vpop.f32.mrf.mxu0 }
 0x190   : > { %v2196_v40 = vsel %vm1025_vm1, %v2186_v43, %v2195_v28  ;;  %v1340_v7 = vpop.f32.mrf.mxu1  ;;  %v1695_v43 = vpop.f32.mrf.mxu3 }
 0x191   : > { %5196 = vst [vmem:[#allocation2 + $0x20] sm:$0xff] %v5182_v31   ;;  %2301 = vmatmul.bf16.gmra.mxu2 %v2196_v40  ;;  %v1341_v35 = vadd.f32 %v1340_v7, %v1296_v3  ;;  %v1710_v36 = vadd.f32 %v1691_v42, %v1358_v21 }
 0x193   : > { %v1359_v41 = vadd.f32 %v1341_v35, %v915_v27  ;;  %v1728_v1 = vadd.f32 %v5823_v52, %v1710_v36  ;;  %v1776_v35 = vld [vmem:[#allocation2 + $0x34] sm:$0x7] }
 0x195   : > { %v1742_v59 = vmax.f32 %v1728_v1, 0.0 }
 0x196   : > { %v1648_v29 = vpop.f32.mrf.mxu2 }
 0x197   : > { %v1693_v44 = vadd.f32 %v1692_v20, %v1648_v29 }
 0x198   : > { %v5068_v55 = vld [vmem:[#allocation2 + $0x20] sm:$0xff]  ;;  %v1343_v32 = vpop.f32.mrf.mxu1  ;;  %v1697_v33 = vpop.f32.mrf.mxu3 }
 0x199   : > { %v5888_v11 = vld [vmem:[#allocation2 + $0x1c] sm:$0xff]  ;;  %v1711_v56 = vadd.f32 %v1693_v44, %v1359_v41  ;;  %2093 = vmatmul.bf16.gmra.mxu1 %v5068_v55  ;;  %v1890_v2 = vshll.u32 %v5068_v55, 16  ;;  %v1344_v53 = vadd.f32 %v1343_v32, %v1299_v45  ;;  %v1894_v23 = vshrl.u32 %v5068_v55, 16 }
 0x19a   : > { %v2374_v9 = vrot.slane %v5888_v11, 2  ;;  %v2198_v30 = vshrl.u32 %v5888_v11, 16  ;;  %v2201_v12 = vshll.u32 %v5888_v11, 16 }
 0x19b   : > { %v1729_v24 = vadd.f32 %v5823_v52, %v1711_v56  ;;  %v1892_v57 = vrot.slane %v1890_v2, 1  ;;  %v1360_v0 = vadd.f32 %v1344_v53, %v5789_v16 }
 0x19c   : > { %v2375_v48 = vsel %vm1471_vm2, %v2372_v8, %v2374_v9  ;;  %v2200_v54 = vrot.slane %v2198_v30, 1  ;;  %v2203_v4 = vrot.slane %v2201_v12, 2 }
 0x19d   : > { %v1743_v38 = vmax.f32 %v1729_v24, 0.0  ;;  %2455 = vmatmul.bf16.gmra.mxu3 %v2375_v48  ;;  %v1893_v25 = vsel %vm415_vm0, %v1888_v63, %v1892_v57  ;;  %v1896_v21 = vor.u32 %v1894_v23, %v1892_v57  ;;  %v5110_v23 = vld [vmem:[%s6396_s5] sm:$0xff] }
 0x19e   : > { %v1651_v46 = vpop.f32.mrf.mxu2  ;;  %1990 = vmatmul.bf16.gmra.mxu0 %v1893_v25  ;;  %v2204_v22 = vor.u32 %v2203_v4, %v2200_v54 }
 0x19f   : > { %v5187_v15 = vpack.c.bf16 %v1743_v38, %v1742_v59  ;;  %v1696_v39 = vadd.f32 %v1695_v43, %v1651_v46 }
 0x1a0   : > { %v2205_v8 = vsel %vm1025_vm1, %v2195_v28, %v2204_v22  ;;  %v1345_v5 = vpop.f32.mrf.mxu1 }
 0x1a1   : > { %5197 = vst [vmem:[#allocation2 + $0x28] sm:$0xff] %v5187_v15   ;;  %v1712_v19 = vadd.f32 %v1696_v39, %v1360_v0  ;;  %2306 = vmatmul.bf16.gmra.mxu2 %v2205_v8  ;;  %v1346_v17 = vadd.f32 %v1345_v5, %v1301_v13  ;;  %v5116_v0 = vld [vmem:[%s6396_s5 + $0x30] sm:$0xff] }
 0x1a2   : > { %2691 = vmatpush.bf16.msrb.mxu0 %v5116_v0 }
 0x1a3   : > { %v1730_v16 = vadd.f32 %v5823_v52, %v1712_v19  ;;  %v1361_v26 = vadd.f32 %v1346_v17, %v920_v61  ;;  %v5115_v61 = vld [vmem:[%s6396_s5 + $0x28] sm:$0xff] }
 0x1a5   : > { %v1744_v60 = vmax.f32 %v1730_v16, 0.0 }
 0x1a6   : > { %v1653_v37 = vpop.f32.mrf.mxu2  ;;  %2692 = vmatpush.bf16.msrb.mxu0 %v5115_v61 }
 0x1a7   : > { %v1758_v18 = vpack.c.bf16 %v1744_v60, %v1744_v60  ;;  %v1698_v10 = vadd.f32 %v1697_v33, %v1653_v37  ;;  %v5112_v37 = vld [vmem:[%s6396_s5 + $0x10] sm:$0xff] }
 0x1a8   : > { %v5069_v34 = vld [vmem:[#allocation2 + $0x28] sm:$0xff] }
 0x1a9   : > { %v5089_v62 = vld [vmem:[#allocation2 + $0x24] sm:$0xff]  ;;  %1772 = vst [vmem:[#allocation2 + $0x30] sm:$0xf] %v1758_v18  ;;  %v1713_v14 = vadd.f32 %v1698_v10, %v1361_v26  ;;  %2098 = vmatmul.bf16.gmra.mxu1 %v5069_v34  ;;  %v1898_v3 = vshll.u32 %v5069_v34, 16  ;;  %v1902_v12 = vshrl.u32 %v5069_v34, 16  ;;  %v5113_v26 = vld [vmem:[%s6396_s5 + $0x18] sm:$0xff] }
 0x1aa   : > { %v2376_v31 = vrot.slane %v5089_v62, 2  ;;  %v2207_v28 = vshrl.u32 %v5089_v62, 16  ;;  %v2210_v47 = vshll.u32 %v5089_v62, 16  ;;  %2758 = vmatpush.bf16.msra.mxu1 %v5113_v26  ;;  %v5111_v34 = vld [vmem:[%s6396_s5 + $0x8] sm:$0xff]  ;;  %v5121_v62 = vld [vmem:[%s6396_s5 + $0x58] sm:$0xff] }
 0x1ab   : > { %v1731_v51 = vadd.f32 %v5823_v52, %v1713_v14  ;;  %v1900_v40 = vrot.slane %v1898_v3, 1  ;;  %v5128_v14 = vld [vmem:[%s6396_s5 + $0x78] sm:$0xff]  ;;  %2858 = vmatpush.bf16.msra.mxu2 %v5121_v62 }
 0x1ac   : > { %v2377_v42 = vsel %vm1471_vm2, %v2374_v9, %v2376_v31  ;;  %v2209_v20 = vrot.slane %v2207_v28, 1  ;;  %v2212_v7 = vrot.slane %v2210_v47, 2  ;;  %3029 = vmatpush.bf16.msrb.mxu3 %v5128_v14 }
 0x1ad   : > { %v1745_v27 = vmax.f32 %v1731_v51, 0.0  ;;  %2460 = vmatmul.bf16.gmra.mxu3 %v2377_v42  ;;  %v1901_v36 = vsel %vm415_vm0, %v1896_v21, %v1900_v40  ;;  %v1904_v63 = vor.u32 %v1902_v12, %v1900_v40  ;;  %v5950_v40 = vld [vmem:[%s6395_s4] ss:$0 sm:$0xff] }
 0x1ae   : > { %v2213_v41 = vor.u32 %v2212_v7, %v2209_v20  ;;  %1995 = vmatmul.bf16.gmra.mxu0 %v1901_v36  ;;  %2759 = vmatpush.bf16.msra.mxu1 %v5112_v37  ;;  %v5120_v7 = vld [vmem:[%s6396_s5 + $0x50] sm:$0xff]  ;;  %v5114_v36 = vld [vmem:[%s6396_s5 + $0x20] sm:$0xff] }
 0x1af   : > { %v1759_v29 = vpack.c.bf16 %v1745_v27, %v1745_v27  ;;  %2859 = vmatpush.bf16.msra.mxu2 %v5120_v7  ;;  %2693 = vmatpush.bf16.msrb.mxu0 %v5114_v36 }
 0x1b0   : > { %v2214_v52 = vsel %vm1025_vm1, %v2204_v22, %v2213_v41  ;;  %v1791_v44 = vld [vmem:[#allocation2 + $0x30] sm:$0x1] }
 0x1b1   : > { %v1777_v45 = vsel %vm1775_vm5, %v1759_v29, %v1776_v35  ;;  %v1850_v55 = vunpack.c.l.b16 %v1791_v44  ;;  %v5090_v11 = vld [vmem:[#allocation2 + $0x2c] sm:$0xff]  ;;  %2311 = vmatmul.bf16.gmra.mxu2 %v2214_v52  ;;  %vm3758_vm5 = vcmask 1041408  }
 0x1b2   : > { %1778 = vst [vmem:[#allocation2 + $0x34] sm:$0x7] %v1777_v45  ;;  %v2216_v56 = vshrl.u32 %v5090_v11, 16  ;;  %v2219_v49 = vshll.u32 %v5090_v11, 16  ;;  %v2378_v9 = vrot.slane %v5090_v11, 2  ;;  %2760 = vmatpush.bf16.msra.mxu1 %v5111_v34  ;;  %v5119_v29 = vld [vmem:[%s6396_s5 + $0x48] sm:$0xff] }
 0x1b3   : > { %v1857_v1 = vpack.c.b16 %v1850_v55, %v1850_v55  ;;  %2860 = vmatpush.bf16.msra.mxu2 %v5119_v29 }
 0x1b4   : > { %v2218_v2 = vrot.slane %v2216_v56, 1  ;;  %v2221_v30 = vrot.slane %v2219_v49, 2  ;;  %v2379_v32 = vsel %vm1471_vm2, %v2376_v31, %v2378_v9  ;;  %v5118_v49 = vld [vmem:[%s6396_s5 + $0x40] sm:$0xff] }
 0x1b5   : > { %v1906_v43 = vshll.u32 %v1857_v1, 16  ;;  %v1910_v8 = vshrl.u32 %v1857_v1, 16 }
 0x1b6   : > { %v2222_v53 = vor.u32 %v2221_v30, %v2218_v2  ;;  %2761 = vmatpush.bf16.msra.mxu1 %v5110_v23  ;;  %v5127_v30 = vld [vmem:[%s6396_s5 + $0x70] sm:$0xff] }
 0x1b7   : > { %v1908_v50 = vrot.slane %v1906_v43, 1  ;;  %2861 = vmatpush.bf16.msra.mxu2 %v5118_v49  ;;  %3030 = vmatpush.bf16.msrb.mxu3 %v5127_v30 }
 0x1b8   : > { %v2223_v38 = vsel %vm1025_vm1, %v2213_v41, %v2222_v53 }
 0x1b9   : > { %2103 = vmatmul.bf16.gmra.mxu1 %v1857_v1  ;;  %v2120_v24 = vld [vmem:[#allocation2 + $0x34] sm:$0x3]  ;;  %v1909_v54 = vsel %vm415_vm0, %v1904_v63, %v1908_v50 }
 0x1ba   : > { %v2345_v48 = vld [vmem:[#allocation2 + $0x34] sm:$0x7]  ;;  %v2163_v57 = vunpack.c.l.b16 %v2120_v24 }
 0x1bb   : > { %v2366_v59 = vunpack.c.l.b16 %v2345_v48 }
 0x1bc   : > { %v2170_v4 = vpack.c.b16 %v2163_v57, %v2163_v57  ;;  %v5126_v57 = vld [vmem:[%s6396_s5 + $0x68] sm:$0xff] }
 0x1bd   : > { %2465 = vmatmul.bf16.gmra.mxu3 %v2379_v32  ;;  %v2368_v46 = vpack.c.b16 %v2366_v59, %v2366_v59 }
 0x1be   : > { %2000 = vmatmul.bf16.gmra.mxu0 %v1909_v54  ;;  %v2225_v25 = vshrl.u32 %v2170_v4, 16  ;;  %v2228_v15 = vshll.u32 %v2170_v4, 16  ;;  %3031 = vmatpush.bf16.msrb.mxu3 %v5126_v57  ;;  %v5125_v4 = vld [vmem:[%s6396_s5 + $0x60] sm:$0xff] }
 0x1bf   : > { %v2380_v39 = vrot.slane %v2368_v46, 2 }
 0x1c0   : > { %v2227_v22 = vrot.slane %v2225_v25, 1  ;;  %v2230_v6 = vrot.slane %v2228_v15, 2 }
 0x1c1   : > { %2316 = vmatmul.bf16.gmra.mxu2 %v2223_v38  ;;  %v2381_v19 = vsel %vm1471_vm2, %v2378_v9, %v2380_v39 }
 0x1c2   : > { %v2231_v13 = vor.u32 %v2230_v6, %v2227_v22  ;;  %3032 = vmatpush.bf16.msrb.mxu3 %v5125_v4 }
 0x1c4   : > { %v2232_v58 = vsel %vm1025_vm1, %v2222_v53, %v2231_v13 }
 0x1cd   : > { %2470 = vmatmul.bf16.gmra.mxu3 %v2381_v19 }
 0x1ce   : > { %2005 = vmatmul.bf16.gmra.mxu0 %v1910_v8 }
 0x1d1   : > { %2321 = vmatmul.bf16.gmra.mxu2 %v2232_v58  ;;  %v5132_v58 = vld [vmem:[%s6396_s5 + $0x98] sm:$0xff] }
 0x1d2   : > { %3138 = vmatpush.bf16.msra.mxu0 %v5132_v58 }
 0x1d6   : > { %v2074_v16 = vpop.f32.mrf.mxu1 }
 0x1dd   : > { %2475 = vmatmul.bf16.gmra.mxu3 %v2380_v39 }
 0x1de   : > { %v2076_v5 = vpop.f32.mrf.mxu1 }
 0x1e1   : > { %2326 = vmatmul.bf16.gmra.mxu2 %v2227_v22 }
 0x1e6   : > { %v2079_v17 = vpop.f32.mrf.mxu1 }
 0x1eb   : > { %v1976_v33 = vpop.f32.mrf.mxu0 }
 0x1ec   : > { %v2075_v47 = vadd.f32 %v2074_v16, %v1976_v33 }
 0x1ee   : > { %v5923_v60 = vpop.f32.mrf.mxu1 }
 0x1f3   : > { %v1978_v18 = vpop.f32.mrf.mxu0 }
 0x1f4   : > { %v2077_v52 = vadd.f32 %v2076_v5, %v1978_v18 }
 0x1f6   : > { %v5931_v10 = vpop.f32.mrf.mxu1 }
 0x1fb   : > { %v1981_v31 = vpop.f32.mrf.mxu0 }
 0x1fc   : > { %v2080_v12 = vadd.f32 %v2079_v17, %v1981_v31 }
 0x1fe   : > { %v5945_v3 = vpop.f32.mrf.mxu1 }
 0x200   : > { %v2446_v28 = vpop.f32.mrf.mxu3 }
 0x203   : > { %v1983_v51 = vpop.f32.mrf.mxu0 }
 0x204   : > { %v2297_v21 = vpop.f32.mrf.mxu2  ;;  %v2082_v0 = vadd.f32 %v5923_v60, %v1983_v51 }
 0x205   : > { %v2331_v42 = vadd.f32 %v2297_v21, %v2075_v47 }
 0x206   : > { %v5952_v20 = vpop.f32.mrf.mxu1 }
 0x207   : > { %v2480_v27 = vadd.f32 %v2446_v28, %v2331_v42 }
 0x208   : > { %v2448_v35 = vpop.f32.mrf.mxu3 }
 0x209   : > { %v2497_v41 = vadd.f32 %v5950_v40, %v2480_v27 }
 0x20b   : > { %v2510_v44 = vmax.f32 %v2497_v41, 0.0  ;;  %v1986_v45 = vpop.f32.mrf.mxu0 }
 0x20c   : > { %v2299_v55 = vpop.f32.mrf.mxu2  ;;  %v2085_v5 = vadd.f32 %v5931_v10, %v1986_v45 }
 0x20d   : > { %v2523_v11 = vpack.c.bf16 %v2510_v44, %v2510_v44  ;;  %v2332_v1 = vadd.f32 %v2299_v55, %v2077_v52 }
 0x20e   : > { %v5964_v56 = vpop.f32.mrf.mxu1 }
 0x20f   : > { %2537 = vst.msk [vmem:[#allocation3] sm:$0xf] %vm2536_vm6, %v2523_v11  ;;  %v2481_v43 = vadd.f32 %v2448_v35, %v2332_v1 }
 0x210   : > { %v2451_v9 = vpop.f32.mrf.mxu3 }
 0x211   : > { %v2498_v2 = vadd.f32 %v5950_v40, %v2481_v43 }
 0x213   : > { %v2511_v50 = vmax.f32 %v2498_v2, 0.0  ;;  %v1988_v24 = vpop.f32.mrf.mxu0 }
 0x214   : > { %v2302_v32 = vpop.f32.mrf.mxu2  ;;  %v2087_v10 = vadd.f32 %v5945_v3, %v1988_v24 }
 0x215   : > { %v2524_v63 = vpack.c.bf16 %v2511_v50, %v2511_v50  ;;  %v2333_v53 = vadd.f32 %v2302_v32, %v2080_v12 }
 0x216   : > { %v5974_v48 = vpop.f32.mrf.mxu1  ;;  %v5199_v51 = vld [vmem:[#allocation3] sm:$0xe] }
 0x217   : > { %2538 = vst.msk [vmem:[#allocation3 + $0x4] sm:$0xf] %vm2536_vm6, %v2524_v63  ;;  %v2482_v54 = vadd.f32 %v2451_v9, %v2333_v53 }
 0x218   : > { %v2453_v59 = vpop.f32.mrf.mxu3 }
 0x219   : > { %v2499_v38 = vadd.f32 %v5950_v40, %v2482_v54 }
 0x21b   : > { %v2512_v46 = vmax.f32 %v2499_v38, 0.0  ;;  %v1991_v25 = vpop.f32.mrf.mxu0 }
 0x21c   : > { %v2304_v15 = vpop.f32.mrf.mxu2  ;;  %v2090_v50 = vadd.f32 %v5952_v20, %v1991_v25  ;;  %v5131_v25 = vld [vmem:[%s6396_s5 + $0x90] sm:$0xff] }
 0x21d   : > { %v2525_v39 = vpack.c.bf16 %v2512_v46, %v2512_v46  ;;  %v2334_v22 = vadd.f32 %v2304_v15, %v2082_v0  ;;  %3139 = vmatpush.bf16.msra.mxu0 %v5131_v25 }
 0x21e   : > { %v5985_v6 = vpop.f32.mrf.mxu1  ;;  %v5190_v19 = vld [vmem:[#allocation3] sm:$0xff]  }
 0x21f   : > { %2539 = vst.msk [vmem:[#allocation3 + $0x8] sm:$0xf] %vm2536_vm6, %v2525_v39  ;;  %v2483_v8 = vadd.f32 %v2453_v59, %v2334_v22  ;;  %4694 = vmatmul.msk.bf16.vlgmr.msra.gmra.mxu1 %vm2670_vm7, %v5190_v19  ;;  %v5198_v14 = vld [vmem:[#allocation3] sm:$0xf0]  ;;  %v2610_v31 = vshll.u32 %v5190_v19, 16  ;;  %v2608_v45 = vshrl.u32 %v5190_v19, 16 }
 0x220   : > { %v2456_v13 = vpop.f32.mrf.mxu3  ;;  %v2898_v21 = vld [vmem:[#allocation3 + $0x4] sm:$0xe]  ;;  %v5200_v7 = vor.u32 %v5199_v51, %v5198_v14 }
 0x221   : > { %v2500_v16 = vadd.f32 %v5950_v40, %v2483_v8  ;;  %v2612_v41 = vrot.slane %v2610_v31, 1  ;;  %v2927_v44 = vunpack.c.l.b16 %v2898_v21 }
 0x222   : > { %v2806_v11 = vrot.slane %v5200_v7, 1 }
 0x223   : > { %v2513_v61 = vmax.f32 %v2500_v16, 0.0  ;;  %v5994_v17 = vpop.f32.mrf.mxu0  ;;  %v2613_v2 = vor.u32 %v2612_v41, %v2608_v45 }
 0x224   : > { %v2307_v33 = vpop.f32.mrf.mxu2  ;;  %v2092_v16 = vadd.f32 %v5964_v56, %v5994_v17 }
 0x225   : > { %v2526_v60 = vpack.c.bf16 %v2513_v61, %v2513_v61  ;;  %v2335_v26 = vadd.f32 %v2307_v33, %v2085_v5 }
 0x226   : > { %v5996_v37 = vpop.f32.mrf.mxu1  ;;  %v6000_v23 = vld [vmem:[#allocation3 + $0x8] sm:$0xf] }
 0x227   : > { %2540 = vst.msk [vmem:[#allocation3 + $0xc] sm:$0xf] %vm2536_vm6, %v2526_v60  ;;  %v2484_v18 = vadd.f32 %v2456_v13, %v2335_v26  ;;  %v2928_v27 = vunpack.c.l.b16 %v6000_v23 }
 0x228   : > { %v2458_v34 = vpop.f32.mrf.mxu3 }
 0x229   : > { %v2501_v62 = vadd.f32 %v5950_v40, %v2484_v18  ;;  %v2937_v43 = vpack.c.b16 %v2928_v27, %v2927_v44 }
 0x22b   : > { %v2514_v28 = vmax.f32 %v2501_v62, 0.0  ;;  %v6003_v47 = vpop.f32.mrf.mxu0  ;;  %v2943_v57 = vshrl.u32 %v2937_v43, 16  ;;  %v2946_v54 = vshll.u32 %v2937_v43, 16  ;;  %v5135_v43 = vld [vmem:[%s6396_s5 + $0xb0] sm:$0xff] }
 0x22c   : > { %v2309_v42 = vpop.f32.mrf.mxu2 }
 0x22d   : > { %v2527_v35 = vpack.c.bf16 %v2514_v28, %v2514_v28  ;;  %v2336_v36 = vadd.f32 %v2309_v42, %v2087_v10  ;;  %v2945_v15 = vrot.slane %v2943_v57, 1  ;;  %v2948_v39 = vrot.slane %v2946_v54, 2 }
 0x22e   : > { %v6006_v29 = vpop.f32.mrf.mxu1  ;;  %v6008_v52 = vld [vmem:[#allocation3 + $0x8] sm:$0xff] }
 0x22f   : > { %2541 = vst.msk [vmem:[#allocation3 + $0x10] sm:$0xf] %vm2536_vm6, %v2527_v35  ;;  %v2485_v3 = vadd.f32 %v2458_v34, %v2336_v36  ;;  %4695 = vmatmul.msk.bf16.gmra.mxu1 %vm2670_vm7, %v6008_v52  ;;  %v2807_v1 = vrot.slane %v6008_v52, 1  ;;  %v2615_v49 = vshll.u32 %v6008_v52, 16  ;;  %v2949_v60 = vor.u32 %v2948_v39, %v2945_v15 }
 0x230   : > { %v2461_v55 = vpop.f32.mrf.mxu3  ;;  %v2619_v17 = vshrl.u32 %v6008_v52, 16  ;;  %v2095_v36 = vadd.f32 %v5974_v48, %v6003_v47  ;;  %v5136_v52 = vld [vmem:[%s6396_s5 + $0xb8] sm:$0xff] }
 0x231   : > { %v2502_v9 = vadd.f32 %v5950_v40, %v2485_v3  ;;  %v2808_v30 = vsel %vm2805_vm8, %v2806_v11, %v2807_v1  ;;  %v2617_v12 = vrot.slane %v2615_v49, 1  ;;  %3260 = vmatpush.bf16.msrb.mxu1 %v5136_v52  ;;  %v5130_v49 = vld [vmem:[%s6396_s5 + $0x88] sm:$0xff] }
 0x232   : > { %4723 = vmatmul.msk.bf16.vlgmr.msra.gmra.mxu2 %vm2670_vm7, %v2808_v30  ;;  %3140 = vmatpush.bf16.msra.mxu0 %v5130_v49 }
 0x233   : > { %v2515_v24 = vmax.f32 %v2502_v9, 0.0  ;;  %v6020_v32 = vpop.f32.mrf.mxu0  ;;  %v2618_v53 = vsel %vm415_vm0, %v2613_v2, %v2617_v12  ;;  %v2621_v7 = vor.u32 %v2619_v17, %v2617_v12 }
 0x234   : > { %v2312_v63 = vpop.f32.mrf.mxu2  ;;  %4673 = vmatmul.msk.bf16.vlgmr.msrb.gmra.mxu0 %vm2670_vm7, %v2618_v53  ;;  %v2097_v53 = vadd.f32 %v5985_v6, %v6020_v32 }
 0x235   : > { %v2528_v59 = vpack.c.bf16 %v2515_v24, %v2515_v24  ;;  %v2337_v38 = vadd.f32 %v2312_v63, %v2090_v50  ;;  %3261 = vmatpush.bf16.msrb.mxu1 %v5135_v43  ;;  %v5143_v43 = vld [vmem:[%s6396_s5 + $0xc8] sm:$0xff] }
 0x236   : > { %v6025_v4 = vpop.f32.mrf.mxu1  ;;  %v6027_v0 = vld [vmem:[#allocation3 + $0xc] sm:$0xff] }
 0x237   : > { %2542 = vst.msk [vmem:[#allocation3 + $0x14] sm:$0xf] %vm2536_vm6, %v2528_v59  ;;  %v2486_v20 = vadd.f32 %v2461_v55, %v2337_v38  ;;  %v2951_v22 = vshrl.u32 %v6027_v0, 16  ;;  %v2954_v19 = vshll.u32 %v6027_v0, 16  ;;  %v3087_v50 = vrot.slane %v6027_v0, 2  ;;  %v5134_v59 = vld [vmem:[%s6396_s5 + $0xa8] sm:$0xff] }
 0x238   : > { %v2463_v46 = vpop.f32.mrf.mxu3  ;;  %v5156_v0 = vld [vmem:[%s6396_s5 + $0x108] sm:$0xff] }
 0x239   : > { %v2503_v8 = vadd.f32 %v5950_v40, %v2486_v20  ;;  %v2953_v13 = vrot.slane %v2951_v22, 1  ;;  %v2956_v58 = vrot.slane %v2954_v19, 2  ;;  %3262 = vmatpush.bf16.msrb.mxu1 %v5134_v59 }
 0x23b   : > { %v2516_v5 = vmax.f32 %v2503_v8, 0.0  ;;  %v6042_v61 = vpop.f32.mrf.mxu0  ;;  %v2957_v26 = vor.u32 %v2956_v58, %v2953_v13  ;;  %v5133_v13 = vld [vmem:[%s6396_s5 + $0xa0] sm:$0xff] }
 0x23c   : > { %v2314_v33 = vpop.f32.mrf.mxu2 }
 0x23d   : > { %v2529_v18 = vpack.c.bf16 %v2516_v5, %v2516_v5  ;;  %v2338_v34 = vadd.f32 %v2314_v33, %v2092_v16  ;;  %v2958_v14 = vsel %vm1025_vm1, %v2949_v60, %v2957_v26  ;;  %3263 = vmatpush.bf16.msrb.mxu1 %v5133_v13 }
 0x23e   : > { %v2106_v62 = vpop.f32.mrf.mxu1  ;;  %v6045_v31 = vld [vmem:[#allocation3 + $0x10] sm:$0xff]  ;;  %4764 = vmatmul.msk.bf16.vlgmr.msrb.gmra.mxu3 %vm2670_vm7, %v2958_v14 }
 0x23f   : > { %2543 = vst.msk [vmem:[#allocation3 + $0x18] sm:$0xf] %vm2536_vm6, %v2529_v18  ;;  %v2487_v10 = vadd.f32 %v2463_v46, %v2338_v34  ;;  %4696 = vmatmul.msk.bf16.gmra.mxu1 %vm2670_vm7, %v6045_v31  ;;  %v2809_v56 = vrot.slane %v6045_v31, 1  ;;  %v2623_v51 = vshll.u32 %v6045_v31, 16  ;;  %v2627_v16 = vshrl.u32 %v6045_v31, 16  ;;  %v5129_v31 = vld [vmem:[%s6396_s5 + $0x80] sm:$0xff] }
 0x240   : > { %v2466_v28 = vpop.f32.mrf.mxu3  ;;  %v2100_v34 = vadd.f32 %v5996_v37, %v6042_v61  ;;  %3141 = vmatpush.bf16.msra.mxu0 %v5129_v31  ;;  %v5145_v37 = vld [vmem:[%s6396_s5 + $0xd8] sm:$0xff] }
 0x241   : > { %v2504_v21 = vadd.f32 %v5950_v40, %v2487_v10  ;;  %v2810_v42 = vsel %vm2805_vm8, %v2807_v1, %v2809_v56  ;;  %v2625_v35 = vrot.slane %v2623_v51, 1  ;;  %3397 = vmatpush.bf16.msrb.mxu2 %v5145_v37 }
 0x242   : > { %4724 = vmatmul.msk.bf16.gmra.mxu2 %vm2670_vm7, %v2810_v42 }
 0x243   : > { %v2517_v41 = vmax.f32 %v2504_v21, 0.0  ;;  %v6058_v44 = vpop.f32.mrf.mxu0  ;;  %v2626_v3 = vsel %vm415_vm0, %v2621_v7, %v2625_v35 }
 0x244   : > { %v2317_v45 = vpop.f32.mrf.mxu2  ;;  %4674 = vmatmul.msk.bf16.gmra.mxu0 %vm2670_vm7, %v2626_v3 }
 0x245   : > { %v2530_v55 = vpack.c.bf16 %v2517_v41, %v2517_v41  ;;  %v2339_v11 = vadd.f32 %v2317_v45, %v2095_v36  ;;  %v5149_v36 = vld [vmem:[%s6396_s5 + $0xf8] sm:$0xff] }
 0x246   : > { %v6066_v1 = vld [vmem:[#allocation3 + $0x14] sm:$0xff]  ;;  %3534 = vmatpush.bf16.msra.mxu3 %v5149_v36 }
 0x247   : > { %2544 = vst.msk [vmem:[#allocation3 + $0x1c] sm:$0xf] %vm2536_vm6, %v2530_v55  ;;  %v2488_v48 = vadd.f32 %v2466_v28, %v2339_v11  ;;  %v2960_v9 = vshrl.u32 %v6066_v1, 16  ;;  %v2963_v2 = vshll.u32 %v6066_v1, 16  ;;  %v3089_v30 = vrot.slane %v6066_v1, 2 }
 0x248   : > { %v2468_v47 = vpop.f32.mrf.mxu3  ;;  %v2102_v55 = vadd.f32 %v6006_v29, %v6058_v44 }
 0x249   : > { %v2505_v12 = vadd.f32 %v5950_v40, %v2488_v48  ;;  %v2962_v24 = vrot.slane %v2960_v9, 1  ;;  %v2965_v63 = vrot.slane %v2963_v2, 2  ;;  %v6094_v38 = vsel %vm1471_vm2, %v3087_v50, %v3089_v30 }
 0x24b   : > { %v2518_v57 = vmax.f32 %v2505_v12, 0.0  ;;  %v6086_v54 = vpop.f32.mrf.mxu0  ;;  %v2966_v46 = vor.u32 %v2965_v63, %v2962_v24 }
 0x24c   : > { %v2319_v20 = vpop.f32.mrf.mxu2 }
 0x24d   : > { %v2531_v25 = vpack.c.bf16 %v2518_v57, %v2518_v57  ;;  %v2340_v15 = vadd.f32 %v2319_v20, %v2097_v53  ;;  %v2967_v39 = vsel %vm1025_vm1, %v2957_v26, %v2966_v46  ;;  %v2629_v26 = vor.u32 %v2627_v16, %v2625_v35  ;;  %v5144_v35 = vld [vmem:[%s6396_s5 + $0xd0] sm:$0xff] }
 0x24e   : > { %v6097_v6 = vld [vmem:[#allocation3 + $0x18] sm:$0xff]  ;;  %4765 = vmatmul.msk.bf16.gmra.mxu3 %vm2670_vm7, %v2967_v39  ;;  %3398 = vmatpush.bf16.msrb.mxu2 %v5144_v35  ;;  %v2105_v16 = vadd.f32 %v6025_v4, %v6086_v54 }
 0x24f   : > { %2545 = vst.msk [vmem:[#allocation3 + $0x20] sm:$0xf] %vm2536_vm6, %v2531_v25  ;;  %v2489_v32 = vadd.f32 %v2468_v47, %v2340_v15  ;;  %4697 = vmatmul.msk.bf16.gmra.mxu1 %vm2670_vm7, %v6097_v6  ;;  %v2811_v58 = vrot.slane %v6097_v6, 1  ;;  %v2631_v5 = vshll.u32 %v6097_v6, 16  ;;  %v3069_v15 = vld [vmem:[#allocation3 + $0x4] sm:$0xc] }
 0x250   : > { %v2471_v8 = vpop.f32.mrf.mxu3  ;;  %v3082_v13 = vunpack.c.l.b16 %v3069_v15 }
 0x251   : > { %v2506_v33 = vadd.f32 %v5950_v40, %v2489_v32  ;;  %v2812_v60 = vsel %vm2805_vm8, %v2809_v56, %v2811_v58  ;;  %v2633_v18 = vrot.slane %v2631_v5, 1 }
 0x252   : > { %4725 = vmatmul.msk.bf16.gmra.mxu2 %vm2670_vm7, %v2812_v60 }
 0x253   : > { %v2519_v62 = vmax.f32 %v2506_v33, 0.0  ;;  %v2008_v14 = vpop.f32.mrf.mxu0  ;;  %v2634_v28 = vsel %vm415_vm0, %v2629_v26, %v2633_v18  ;;  %3399 = vmatpush.bf16.msrb.mxu2 %v5143_v43  ;;  %v5142_v26 = vld [vmem:[%s6396_s5 + $0xc0] sm:$0xff] }
 0x254   : > { %v2322_v10 = vpop.f32.mrf.mxu2  ;;  %4675 = vmatmul.msk.bf16.gmra.mxu0 %vm2670_vm7, %v2634_v28  ;;  %v6177_v14 = vpack.c.b16 %v2928_v27, %v3082_v13  ;;  %v5157_v13 = vld [vmem:[%s6396_s5 + $0x110] sm:$0xff] }
 0x255   : > { %v2532_v17 = vpack.c.bf16 %v2519_v62, %v2519_v62  ;;  %v2341_v51 = vadd.f32 %v2322_v10, %v2100_v34 }
 0x256   : > { %v6121_v56 = vld [vmem:[#allocation3 + $0x1c] sm:$0xff]  ;;  %v3192_v37 = vshll.u32 %v6177_v14, 16 }
 0x257   : > { %2546 = vst.msk [vmem:[#allocation3 + $0x24] sm:$0xf] %vm2536_vm6, %v2532_v17  ;;  %v2490_v61 = vadd.f32 %v2471_v8, %v2341_v51  ;;  %v2969_v42 = vshrl.u32 %v6121_v56, 16  ;;  %v2972_v7 = vshll.u32 %v6121_v56, 16  ;;  %v3091_v41 = vrot.slane %v6121_v56, 2  ;;  %3400 = vmatpush.bf16.msrb.mxu2 %v5142_v26  ;;  %v5148_v17 = vld [vmem:[%s6396_s5 + $0xf0] sm:$0xff] }
 0x258   : > { %v2473_v21 = vpop.f32.mrf.mxu3  ;;  %v2635_v8 = vshrl.u32 %v6097_v6, 16  ;;  %3535 = vmatpush.bf16.msra.mxu3 %v5148_v17 }
 0x259   : > { %v2507_v52 = vadd.f32 %v5950_v40, %v2490_v61  ;;  %v2971_v45 = vrot.slane %v2969_v42, 1  ;;  %v2974_v3 = vrot.slane %v2972_v7, 2  ;;  %v6146_v48 = vsel %vm1471_vm2, %v3089_v30, %v3091_v41  ;;  %v5158_v61 = vld [vmem:[%s6396_s5 + $0x118] sm:$0xff] }
 0x25a   : > { %v2637_v62 = vor.u32 %v2635_v8, %v2633_v18  ;;  %3661 = vmatpush.bf16.msrb.mxu0 %v5158_v61  ;;  %v3201_v8 = vrot.slane %v2963_v2, 3  ;;  %v3086_v2 = vrot.slane %v6177_v14, 2  ;;  %v3204_v17 = vrot.slane %v2969_v42, 2 }
 0x25b   : > { %v2520_v11 = vmax.f32 %v2507_v52, 0.0  ;;  %v6148_v49 = vor.u32 %v2974_v3, %v2971_v45  ;;  %v3196_v52 = vrot.slane %v2951_v22, 2  ;;  %v3197_v45 = vrot.slane %v2954_v19, 3  ;;  %v5146_v22 = vld [vmem:[%s6396_s5 + $0xe0] sm:$0xff] }
 0x25c   : > { %v2324_v47 = vpop.f32.mrf.mxu2 }
 0x25d   : > { %v2533_v12 = vpack.c.bf16 %v2520_v11, %v2520_v11  ;;  %v2342_v24 = vadd.f32 %v2324_v47, %v2102_v55  ;;  %v2976_v63 = vsel %vm1025_vm1, %v2966_v46, %v6148_v49 }
 0x25e   : > { %v6155_v29 = vld [vmem:[#allocation3 + $0x20] sm:$0xff]   ;;  %4766 = vmatmul.msk.bf16.gmra.mxu3 %vm2670_vm7, %v2976_v63  ;;  %3662 = vmatpush.bf16.msrb.mxu0 %v5157_v13 }
 0x25f   : > { %v2564_v44 = vld [vmem:[#allocation3 + $0x24] sm:$0x1]  ;;  %2547 = vst.msk [vmem:[#allocation3 + $0x28] sm:$0xf] %vm2536_vm6, %v2533_v12  ;;  %v2491_v30 = vadd.f32 %v2473_v21, %v2342_v24  ;;  %v2600_v59 = vunpack.c.l.b16 %v6155_v29  ;;  %v2935_v51 = vunpack.c.h.b16 %v6155_v29  ;;  %v5147_v21 = vld [vmem:[%s6396_s5 + $0xe8] sm:$0xff]  ;;  %v3194_v24 = vrot.slane %v3192_v37, 3 }
 0x260   : > { %v2789_v53 = vld [vmem:[#allocation3 + $0x24] sm:$0x3]  ;;  %v2476_v57 = vpop.f32.mrf.mxu3  ;;  %v2601_v20 = vunpack.c.l.b16 %v2564_v44  ;;  %3536 = vmatpush.bf16.msra.mxu3 %v5147_v21 }
 0x261   : > { %v2802_v25 = vunpack.c.l.b16 %v2789_v53  ;;  %v2508_v39 = vadd.f32 %v5950_v40, %v2491_v30  ;;  %v3198_v53 = vor.u32 %v3197_v45, %v3196_v52 }
 0x262   : > { %v6161_v32 = vpack.c.b16 %v2601_v20, %v2600_v59  ;;  %3663 = vmatpush.bf16.msrb.mxu0 %v5156_v0 }
 0x263   : > { %v6163_v46 = vpack.c.b16 %v2802_v25, %v2600_v59  ;;  %v2521_v5 = vmax.f32 %v2508_v39, 0.0 }
 0x264   : > { %4698 = vmatmul.msk.bf16.gmra.mxu1 %vm2670_vm7, %v6161_v32  ;;  %v2639_v60 = vshll.u32 %v6161_v32, 16  ;;  %v2327_v34 = vpop.f32.mrf.mxu2  ;;  %3537 = vmatpush.bf16.msra.mxu3 %v5146_v22  ;;  %v2643_v15 = vshrl.u32 %v6161_v32, 16 }
 0x265   : > { %v2813_v33 = vrot.slane %v6163_v46, 1  ;;  %v2534_v31 = vpack.c.bf16 %v2521_v5, %v2521_v5  ;;  %v2343_v4 = vadd.f32 %v2327_v34, %v2105_v16  ;;  %v3200_v46 = vrot.slane %v2960_v9, 2  ;;  %v5138_v16 = vld [vmem:[#allocation3 + $0x10] sm:$0xff] }
 0x266   : > { %v2641_v10 = vrot.slane %v2639_v60, 1  ;;  %v2907_v28 = vld [vmem:[#allocation3 + $0x28] sm:$0x3]  ;;  %v4837_v60 = vld [vmem:[#allocation3 + $0x8] sm:$0x8]  ;;  %v3456_v34 = vshrl.u32 %v5138_v16, 16 }
 0x267   : > { %v2814_v54 = vsel %vm2805_vm8, %v2811_v58, %v2813_v33  ;;  %2548 = vst.msk [vmem:[#allocation3 + $0x2c] sm:$0xf] %vm2536_vm6, %v2534_v31  ;;  %v2492_v23 = vadd.f32 %v2476_v57, %v2343_v4  ;;  %v2936_v6 = vunpack.c.l.b16 %v2907_v28  ;;  %v3189_v58 = vshrl.u32 %v6177_v14, 16 }
 0x268   : > { %4726 = vmatmul.msk.bf16.gmra.mxu2 %vm2670_vm7, %v2814_v54  ;;  %v2478_v27 = vpop.f32.mrf.mxu3  ;;  %v2642_v18 = vsel %vm415_vm0, %v2637_v62, %v2641_v10  ;;  %v2645_v39 = vor.u32 %v2643_v15, %v2641_v10  ;;  %v3202_v5 = vor.u32 %v3201_v8, %v3200_v46  ;;  %v3459_v62 = vshll.u32 %v5138_v16, 16  ;;  %vm3750_vm0 = vmand %vm2536_vm6, %vm3749_vm15 }
 0x269   : > { %4676 = vmatmul.msk.bf16.gmra.mxu0 %vm2670_vm7, %v2642_v18  ;;  %v2509_v35 = vadd.f32 %v5950_v40, %v2492_v23  ;;  %v2941_v36 = vpack.c.b16 %v2936_v6, %v2935_v51  ;;  %v2552_v40 = vld [vmem:[#allocation3 + $0x30] sm:$0x1]  ;;  %v3191_v12 = vrot.slane %v3189_v58, 2  ;;  %v3088_v31 = vsel %vm1471_vm2, %v3086_v2, %v3087_v50  ;;  %v3070_v18 = vld [vmem:[#allocation3 + $0x28] sm:$0x7]  ;;  %v5139_v58 = vld [vmem:[#allocation3 + $0x18] sm:$0xff] }
 0x26a   : > { %v3203_v26 = vsel %vm3187_vm12, %v3198_v53, %v3202_v5  ;;  %v3458_v10 = vrot.slane %v3456_v34, 3  ;;  %v3461_v28 = vrot.slane %v3459_v62, 4  ;;  %v3205_v14 = vrot.slane %v2972_v7, 3 }
 0x26b   : > { %v2522_v3 = vmax.f32 %v2509_v35, 0.0  ;;  %v2978_v55 = vshrl.u32 %v2941_v36, 16  ;;  %v2981_v11 = vshll.u32 %v2941_v36, 16  ;;  %v3195_v59 = vor.u32 %v3194_v24, %v3191_v12  ;;  %v5140_v12 = vld [vmem:[#allocation3 + $0x20] sm:$0xff] }
 0x26c   : > { %v2329_v43 = vpop.f32.mrf.mxu2  ;;  %v3462_v6 = vor.u32 %v3461_v28, %v3458_v10  ;;  %v3206_v50 = vor.u32 %v3205_v14, %v3204_v17  ;;  %v3083_v37 = vunpack.c.l.b16 %v3070_v18  ;;  %v3348_v42 = vrot.slane %v5139_v58, 3 }
 0x26d   : > { %v2535_v63 = vpack.c.bf16 %v2522_v3, %v2522_v3  ;;  %v2980_v19 = vrot.slane %v2978_v55, 1  ;;  %v2983_v44 = vrot.slane %v2981_v11, 2  ;;  %v3199_v25 = vsel %vm3187_vm12, %v3195_v59, %v3198_v53 }
 0x26e   : > { %v3207_v7 = vsel %vm3187_vm12, %v3202_v5, %v3206_v50  ;;  %v6252_v35 = vpack.c.b16 %v3083_v37, %v2935_v51  ;;  %v3465_v52 = vshrl.u32 %v5139_v58, 16  ;;  %v3468_v45 = vshll.u32 %v5139_v58, 16 }
 0x26f   : > { %v2553_v30 = vsel %vm6206_vm11, %v2535_v63, %v2552_v40  ;;  %v2984_v57 = vor.u32 %v2983_v44, %v2980_v19  ;;  %v3350_v63 = vrot.slane %v5140_v12, 3  ;;  %vm3773_vm8 = vcmask 518144  }
 0x270   : > { %2554 = vst [vmem:[#allocation3 + $0x30] sm:$0x1] %v2553_v30  ;;  %v3209_v3 = vshrl.u32 %v6252_v35, 16  ;;  %v3212_v55 = vshll.u32 %v6252_v35, 16  ;;  %v3467_v11 = vrot.slane %v3465_v52, 3  ;;  %v3470_v40 = vrot.slane %v3468_v45, 4 }
 0x271   : > { %v2985_v20 = vsel %vm1025_vm1, %v6148_v49, %v2984_v57  ;;  %v5137_v49 = vld [vmem:[#allocation3 + $0x8] sm:$0xf0]  ;;  %v3351_v53 = vsel %vm3344_vm13, %v3348_v42, %v3350_v63  ;;  %v3474_v30 = vshrl.u32 %v5140_v12, 16  ;;  %vm3767_vm1 = vcmask 519171  }
 0x272   : > { %4767 = vmatmul.msk.bf16.gmra.mxu3 %vm2670_vm7, %v2985_v20  ;;  %v4838_v32 = vor.u32 %v5137_v49, %v4837_v60  ;;  %v3211_v29 = vrot.slane %v3209_v3, 2  ;;  %v3214_v51 = vrot.slane %v3212_v55, 3  ;;  %v3471_v43 = vor.u32 %v3470_v40, %v3467_v11  ;;  %v5150_v45 = vld [vmem:[#allocation3 + $0xc] sm:$0xff] }
 0x273   : > { %v3476_v59 = vrot.slane %v3474_v30, 3  ;;  %vm3796_vm15 = vcmask 517120  }
 0x274   : > { %4822 = vmatmul.msk.bf16.vlgmr.msrb.gmra.mxu1 %vm2670_vm7, %v3199_v25  ;;  %v3345_v1 = vrot.slane %v4838_v32, 3  ;;  %v3448_v4 = vshrl.u32 %v4838_v32, 16  ;;  %v3451_v54 = vshll.u32 %v4838_v32, 16  ;;  %v3215_v24 = vor.u32 %v3214_v51, %v3211_v29 }
 0x275   : > { %v3472_v22 = vsel %vm3446_vm14, %v3462_v6, %v3471_v43 }
 0x276   : > { %v3450_v23 = vrot.slane %v3448_v4, 3  ;;  %v3453_v27 = vrot.slane %v3451_v54, 4  ;;  %v3216_v19 = vsel %vm3187_vm12, %v3206_v50, %v3215_v24  ;;  %vm3780_vm12 = vmand %vm3773_vm8, %vm1774_vm4  ;;  %vm3791_vm4 = vsmask.f32 7946 }
 0x278   : > { %4727 = vmatmul.msk.bf16.gmra.mxu2 %vm2670_vm7, %v2813_v33  ;;  %v3346_v33 = vrot.slane %v5138_v16, 3  ;;  %v3454_v61 = vor.u32 %v3453_v27, %v3450_v23  ;;  %v3093_v16 = vrot.slane %v6252_v35, 2 }
 0x279   : > { %4677 = vmatmul.msk.bf16.gmra.mxu0 %vm2670_vm7, %v2645_v39  ;;  %v5141_v39 = vld [vmem:[#allocation3 + $0x28] sm:$0xff] }
 0x27a   : > { %v3347_v9 = vsel %vm3344_vm13, %v3345_v1, %v3346_v33  ;;  %v3463_v21 = vsel %vm3446_vm14, %v3454_v61, %v3462_v6  ;;  %v3349_v36 = vsel %vm3344_vm13, %v3346_v33, %v3348_v42  ;;  %v3352_v8 = vrot.slane %v5141_v39, 3 }
 0x27b   : > { %v3483_v60 = vshrl.u32 %v5141_v39, 16  ;;  %v3094_v1 = vsel %vm1471_vm2, %v3091_v41, %v3093_v16  ;;  %vm3768_vm2 = vsmask.f32 7950 }
 0x27c   : > { %v3353_v5 = vsel %vm3344_vm13, %v3350_v63, %v3352_v8  ;;  %vm3769_vm3 = vmand %vm3767_vm1, %vm3768_vm2  ;;  %vm3790_vm13 = vcmask 519170   ;;  %vm3819_vm2 = vcmask 519169  }
 0x282   : > { %4768 = vmatmul.msk.bf16.gmra.mxu3 %vm2670_vm7, %v2984_v57  ;;  %v3477_v57 = vshll.u32 %v5140_v12, 16 }
 0x284   : > { %4823 = vmatmul.msk.bf16.gmra.mxu1 %vm2670_vm7, %v3203_v26  ;;  %v3479_v20 = vrot.slane %v3477_v57, 4 }
 0x286   : > { %v3480_v15 = vor.u32 %v3479_v20, %v3476_v59 }
 0x288   : > { %4871 = vmatmul.msk.bf16.vlgmr.msrb.gmra.mxu2 %vm2670_vm7, %v3347_v9  ;;  %v3481_v46 = vsel %vm3446_vm14, %v3471_v43, %v3480_v15  ;;  %v3485_v9 = vrot.slane %v3483_v60, 3 }
 0x289   : > { %4793 = vmatmul.msk.bf16.vlgmr.msra.gmra.mxu0 %vm2670_vm7, %v3088_v31 }
 0x292   : > { %4900 = vmatmul.msk.bf16.vlgmr.msra.gmra.mxu3 %vm2670_vm7, %v3463_v21 }
 0x294   : > { %4824 = vmatmul.msk.bf16.gmra.mxu1 %vm2670_vm7, %v3207_v7 }
 0x298   : > { %4872 = vmatmul.msk.bf16.gmra.mxu2 %vm2670_vm7, %v3349_v36 }
 0x299   : > { %4794 = vmatmul.msk.bf16.gmra.mxu0 %vm2670_vm7, %v6094_v38  ;;  %v5155_v38 = vld [vmem:[%s6396_s5 + $0x100] sm:$0xff] }
 0x29a   : > { %3664 = vmatpush.bf16.msrb.mxu0 %v5155_v38 }
 0x29c   : > { %v2763_v44 = vpop.f32.mrf.mxu1 }
 0x2a2   : > { %4901 = vmatmul.msk.bf16.gmra.mxu3 %vm2670_vm7, %v3472_v22 }
 0x2a4   : > { %4825 = vmatmul.msk.bf16.gmra.mxu1 %vm2670_vm7, %v3216_v19  ;;  %v2765_v25 = vpop.f32.mrf.mxu1 }
 0x2a8   : > { %4873 = vmatmul.msk.bf16.gmra.mxu2 %vm2670_vm7, %v3351_v53 }
 0x2a9   : > { %4795 = vmatmul.msk.bf16.gmra.mxu0 %vm2670_vm7, %v6146_v48  ;;  %v3486_v48 = vshll.u32 %v5141_v39, 16 }
 0x2ab   : > { %v3488_v2 = vrot.slane %v3486_v48, 4 }
 0x2ac   : > { %v2768_v33 = vpop.f32.mrf.mxu1 }
 0x2ad   : > { %v3489_v31 = vor.u32 %v3488_v2, %v3485_v9 }
 0x2af   : > { %v3490_v28 = vsel %vm3446_vm14, %v3480_v15, %v3489_v31  ;;  %vm3792_vm14 = vmand %vm3790_vm13, %vm3791_vm4 }
 0x2b1   : > { %v2695_v49 = vpop.f32.mrf.mxu0 }
 0x2b2   : > { %4902 = vmatmul.msk.bf16.gmra.mxu3 %vm2670_vm7, %v3481_v46  ;;  %v2764_v13 = vadd.f32 %v2763_v44, %v2695_v49  ;;  %v5151_v44 = vld [vmem:[#allocation3 + $0x14] sm:$0xff] }
 0x2b4   : > { %4826 = vmatmul.msk.bf16.gmra.mxu1 %vm2670_vm7, %v3215_v24  ;;  %v2770_v10 = vpop.f32.mrf.mxu1 }
 0x2b5   : > { %v2863_v32 = vpop.f32.mrf.mxu2 }
 0x2b6   : > { %v2888_v26 = vadd.f32 %v2863_v32, %v2764_v13 }
 0x2b8   : > { %4874 = vmatmul.msk.bf16.gmra.mxu2 %vm2670_vm7, %v3353_v5  ;;  %v5152_v5 = vld [vmem:[#allocation3 + $0x1c] sm:$0xff] }
 0x2b9   : > { %4796 = vmatmul.msk.bf16.gmra.mxu0 %vm2670_vm7, %v3094_v1  ;;  %v2697_v34 = vpop.f32.mrf.mxu0 }
 0x2ba   : > { %v2766_v62 = vadd.f32 %v2765_v25, %v2697_v34 }
 0x2bc   : > { %v2773_v50 = vpop.f32.mrf.mxu1 }
 0x2bd   : > { %v2865_v4 = vpop.f32.mrf.mxu2 }
 0x2be   : > { %v2889_v54 = vadd.f32 %v2865_v4, %v2766_v62 }
 0x2c1   : > { %v2700_v17 = vpop.f32.mrf.mxu0  ;;  %v3034_v14 = vpop.f32.mrf.mxu3 }
 0x2c2   : > { %4903 = vmatmul.msk.bf16.gmra.mxu3 %vm2670_vm7, %v3490_v28  ;;  %v2769_v23 = vadd.f32 %v2768_v33, %v2700_v17  ;;  %v6284_v56 = vadd.f32 %v3034_v14, %v2888_v26 }
 0x2c4   : > { %v2775_v36 = vpop.f32.mrf.mxu1 }
 0x2c5   : > { %v2868_v41 = vpop.f32.mrf.mxu2 }
 0x2c6   : > { %v2890_v27 = vadd.f32 %v2868_v41, %v2769_v23  ;;  %v5154_v41 = vld [vmem:[#allocation3 + $0x2c] sm:$0x10] }
 0x2c8   : > { %4875 = vmatmul.msk.bf16.gmra.mxu2 %vm2670_vm7, %v3352_v8 }
 0x2c9   : > { %4797 = vmatmul.msk.bf16.gmra.mxu0 %vm2670_vm7, %v3093_v16  ;;  %v2702_v18 = vpop.f32.mrf.mxu0  ;;  %v3036_v6 = vpop.f32.mrf.mxu3 }
 0x2ca   : > { %v2771_v58 = vadd.f32 %v2770_v10, %v2702_v18  ;;  %v3060_v0 = vadd.f32 %v3036_v6, %v2889_v54  ;;  %v5153_v10 = vld [vmem:[#allocation3 + $0x24] sm:$0xff]  ;;  %v4931_v18 = vld [vmem:[#allocation3 + $0x2c] sm:$0xf] }
 0x2cc   : > { %v2778_v12 = vpop.f32.mrf.mxu1 }
 0x2cd   : > { %v2870_v37 = vpop.f32.mrf.mxu2 }
 0x2ce   : > { %v2891_v61 = vadd.f32 %v2870_v37, %v2771_v58  ;;  %v4932_v58 = vor.u32 %v5154_v41, %v4931_v18 }
 0x2d1   : > { %v2705_v21 = vpop.f32.mrf.mxu0  ;;  %v3039_v42 = vpop.f32.mrf.mxu3 }
 0x2d2   : > { %4904 = vmatmul.msk.bf16.gmra.mxu3 %vm2670_vm7, %v3489_v31  ;;  %v2774_v7 = vadd.f32 %v2773_v50, %v2705_v21  ;;  %v3061_v35 = vadd.f32 %v3039_v42, %v2890_v27 }
 0x2d4   : > { %v2780_v53 = vpop.f32.mrf.mxu1 }
 0x2d5   : > { %v2873_v52 = vpop.f32.mrf.mxu2 }
 0x2d6   : > { %v2892_v3 = vadd.f32 %v2873_v52, %v2774_v7 }
 0x2d9   : > { %4949 = vmatmul.msk.bf16.vlgmr.msrb.gmra.mxu0 %vm2670_vm7, %v5150_v45  ;;  %v2707_v55 = vpop.f32.mrf.mxu0  ;;  %v3041_v11 = vpop.f32.mrf.mxu3 }
 0x2da   : > { %v2776_v40 = vadd.f32 %v2775_v36, %v2707_v55  ;;  %v3062_v29 = vadd.f32 %v3041_v11, %v2891_v61 }
 0x2dd   : > { %v2875_v51 = vpop.f32.mrf.mxu2 }
 0x2de   : > { %v2893_v43 = vadd.f32 %v2875_v51, %v2776_v40 }
 0x2e1   : > { %v3044_v24 = vpop.f32.mrf.mxu3  ;;  %v2783_v39 = vpop.f32.mrf.mxu1 }
 0x2e2   : > { %v3063_v22 = vadd.f32 %v3044_v24, %v2892_v3 }
 0x2e6   : > { %v2710_v63 = vpop.f32.mrf.mxu0 }
 0x2e7   : > { %v2779_v19 = vadd.f32 %v2778_v12, %v2710_v63 }
 0x2e9   : > { %4950 = vmatmul.msk.bf16.gmra.mxu0 %vm2670_vm7, %v5151_v44  ;;  %v3046_v57 = vpop.f32.mrf.mxu3  ;;  %v2785_v32 = vpop.f32.mrf.mxu1 }
 0x2ea   : > { %v3064_v59 = vadd.f32 %v3046_v57, %v2893_v43 }
 0x2eb   : > { %v2878_v38 = vpop.f32.mrf.mxu2 }
 0x2ec   : > { %v2894_v30 = vadd.f32 %v2878_v38, %v2779_v19 }
 0x2ee   : > { %v2712_v20 = vpop.f32.mrf.mxu0 }
 0x2ef   : > { %v2781_v25 = vadd.f32 %v2780_v53, %v2712_v20  ;;  %v6310_v53 = vld [vmem:[%s6397_s6] ss:$0 sm:$0xff] }
 0x2f1   : > { %v3265_v52 = vpop.f32.mrf.mxu1 }
 0x2f3   : > { %v2880_v15 = vpop.f32.mrf.mxu2 }
 0x2f4   : > { %v2895_v46 = vadd.f32 %v2880_v15, %v2781_v25 }
 0x2f5   : > { %v3049_v49 = vpop.f32.mrf.mxu3 }
 0x2f6   : > { %v2715_v8 = vpop.f32.mrf.mxu0  ;;  %v3065_v16 = vadd.f32 %v3049_v49, %v2894_v30 }
 0x2f7   : > { %v2784_v13 = vadd.f32 %v2783_v39, %v2715_v8 }
 0x2f9   : > { %4951 = vmatmul.msk.bf16.gmra.mxu0 %vm2670_vm7, %v5152_v5  ;;  %v3267_v55 = vpop.f32.mrf.mxu1 }
 0x2fb   : > { %v2883_v60 = vpop.f32.mrf.mxu2 }
 0x2fc   : > { %v2896_v48 = vadd.f32 %v2883_v60, %v2784_v13 }
 0x2fd   : > { %v3051_v26 = vpop.f32.mrf.mxu3 }
 0x2fe   : > { %v2717_v33 = vpop.f32.mrf.mxu0  ;;  %v3066_v9 = vadd.f32 %v3051_v26, %v2895_v46 }
 0x2ff   : > { %v2786_v1 = vadd.f32 %v2785_v32, %v2717_v33 }
 0x303   : > { %v2885_v2 = vpop.f32.mrf.mxu2 }
 0x304   : > { %v2897_v34 = vadd.f32 %v2885_v2, %v2786_v1  ;;  %v3751_v1 = vld [vmem:[%s6318_s12] sm:$0xf] }
 0x305   : > { %v3054_v62 = vpop.f32.mrf.mxu3 }
 0x306   : > { %v3143_v31 = vpop.f32.mrf.mxu0  ;;  %v3067_v4 = vadd.f32 %v3054_v62, %v2896_v48 }
 0x307   : > { %v3168_v54 = vadd.f32 %v3143_v31, %v6284_v56 }
 0x309   : > { %4952 = vmatmul.msk.bf16.gmra.mxu0 %vm2670_vm7, %v5153_v10  ;;  %v3290_v12 = vadd.f32 %v3265_v52, %v3168_v54 }
 0x30d   : > { %v3056_v28 = vpop.f32.mrf.mxu3 }
 0x30e   : > { %v3145_v17 = vpop.f32.mrf.mxu0  ;;  %v3068_v14 = vadd.f32 %v3056_v28, %v2897_v34 }
 0x30f   : > { %v3169_v23 = vadd.f32 %v3145_v17, %v3060_v0  ;;  %v3402_v0 = vpop.f32.mrf.mxu2 }
 0x310   : > { %v3427_v19 = vadd.f32 %v3402_v0, %v3290_v12 }
 0x311   : > { %v3291_v57 = vadd.f32 %v3267_v55, %v3169_v23 }
 0x316   : > { %v3148_v27 = vpop.f32.mrf.mxu0 }
 0x317   : > { %v3170_v6 = vadd.f32 %v3148_v27, %v3061_v35  ;;  %v3539_v35 = vpop.f32.mrf.mxu3 }
 0x318   : > { %v3564_v38 = vadd.f32 %v3539_v35, %v3427_v19 }
 0x319   : > { %4953 = vmatmul.msk.bf16.gmra.mxu0 %vm2670_vm7, %v4932_v58  ;;  %vm3759_vm7 = vcmask 1045508  }
 0x31a   : > { %vm6332_vm10 = vmor %vm3758_vm5, %vm3759_vm7 }
 0x31e   : > { %v3150_v50 = vpop.f32.mrf.mxu0 }
 0x31f   : > { %v3171_v37 = vadd.f32 %v3150_v50, %v3062_v29  ;;  %v3404_v29 = vpop.f32.mrf.mxu2  ;;  %v3541_v51 = vpop.f32.mrf.mxu3 }
 0x320   : > { %v3428_v15 = vadd.f32 %v3404_v29, %v3291_v57 }
 0x322   : > { %v3565_v8 = vadd.f32 %v3541_v51, %v3428_v15  ;;  %v3831_v51 = vld [vmem:[%s6318_s12 + $0x18] sm:$0x1] }
 0x326   : > { %v3153_v61 = vpop.f32.mrf.mxu0 }
 0x327   : > { %v6295_v21 = vadd.f32 %v3153_v61, %v3063_v22  ;;  %v3270_v22 = vpop.f32.mrf.mxu1  ;;  %v3407_v63 = vpop.f32.mrf.mxu2 }
 0x328   : > { %v3544_v44 = vpop.f32.mrf.mxu3  ;;  %v3292_v5 = vadd.f32 %v3270_v22, %v3170_v6 }
 0x32a   : > { %v3429_v32 = vadd.f32 %v3407_v63, %v3292_v5 }
 0x32e   : > { %v3155_v56 = vpop.f32.mrf.mxu0 }
 0x32f   : > { %v6297_v42 = vadd.f32 %v3155_v56, %v3064_v59  ;;  %v3272_v25 = vpop.f32.mrf.mxu1  ;;  %v3409_v46 = vpop.f32.mrf.mxu2 }
 0x330   : > { %v3546_v13 = vpop.f32.mrf.mxu3 }
 0x336   : > { %v3158_v7 = vpop.f32.mrf.mxu0 }
 0x337   : > { %v6299_v36 = vadd.f32 %v3158_v7, %v3065_v16  ;;  %v3275_v26 = vpop.f32.mrf.mxu1  ;;  %v3412_v34 = vpop.f32.mrf.mxu2 }
 0x338   : > { %v3549_v28 = vpop.f32.mrf.mxu3  ;;  %v3294_v50 = vadd.f32 %v3275_v26, %v6295_v21 }
 0x33a   : > { %v3431_v35 = vadd.f32 %v3412_v34, %v3294_v50 }
 0x33e   : > { %v3160_v45 = vpop.f32.mrf.mxu0 }
 0x33f   : > { %v6301_v3 = vadd.f32 %v3160_v45, %v3066_v9  ;;  %v3566_v9 = vadd.f32 %v3544_v44, %v3429_v32  ;;  %v3277_v18 = vpop.f32.mrf.mxu1  ;;  %v3414_v7 = vpop.f32.mrf.mxu2 }
 0x340   : > { %v3551_v45 = vpop.f32.mrf.mxu3  ;;  %v3295_v22 = vadd.f32 %v3277_v18, %v6297_v42 }
 0x346   : > { %v3163_v11 = vpop.f32.mrf.mxu0 }
 0x347   : > { %v6303_v40 = vadd.f32 %v3163_v11, %v3067_v4  ;;  %v3293_v4 = vadd.f32 %v3272_v25, %v3171_v37  ;;  %v3568_v11 = vadd.f32 %v3549_v28, %v3431_v35 }
 0x348   : > { %v3554_v25 = vpop.f32.mrf.mxu3 }
 0x34e   : > { %v3165_v43 = vpop.f32.mrf.mxu0 }
 0x34f   : > { %v6305_v24 = vadd.f32 %v3165_v43, %v3068_v14  ;;  %v3430_v14 = vadd.f32 %v3409_v46, %v3293_v4 }
 0x351   : > { %v3567_v41 = vadd.f32 %v3546_v13, %v3430_v14 }
 0x356   : > { %v3666_v30 = vpop.f32.mrf.mxu0 }
 0x357   : > { %v3691_v59 = vadd.f32 %v3666_v30, %v3564_v38  ;;  %v3280_v38 = vpop.f32.mrf.mxu1 }
 0x359   : > { %v3705_v20 = vadd.f32 %v6310_v53, %v3691_v59  ;;  %v3417_v59 = vpop.f32.mrf.mxu2 }
 0x35b   : > { %v3715_v39 = vmax.f32 %v3705_v20, 0.0  ;;  %v3432_v20 = vadd.f32 %v3414_v7, %v3295_v22 }
 0x35d   : > { %v3725_v49 = vpack.c.bf16 %v3715_v39, %v3715_v39  ;;  %v3569_v15 = vadd.f32 %v3551_v45, %v3432_v20  ;;  %v3781_v39 = vld [vmem:[%s6318_s12 + $0x8] sm:$0x7]  ;;  %v3805_v45 = vld [vmem:[%s6318_s12 + $0x10] sm:$0x3] }
 0x35e   : > { %v3668_v16 = vpop.f32.mrf.mxu0 }
 0x35f   : > { %3735 = vst.msk [vmem:[#allocation4] sm:$0xf] %vm2536_vm6, %v3725_v49  ;;  %v3692_v60 = vadd.f32 %v3668_v16, %v3565_v8  ;;  %v3296_v49 = vadd.f32 %v3280_v38, %v6299_v36 }
 0x361   : > { %v3706_v48 = vadd.f32 %v6310_v53, %v3692_v60  ;;  %v3433_v32 = vadd.f32 %v3417_v59, %v3296_v49  ;;  %v3419_v26 = vpop.f32.mrf.mxu2 }
 0x363   : > { %v3716_v33 = vmax.f32 %v3706_v48, 0.0  ;;  %v3282_v48 = vpop.f32.mrf.mxu1 }
 0x365   : > { %v3726_v2 = vpack.c.bf16 %v3716_v33, %v3716_v33 }
 0x366   : > { %v3747_v62 = vld [vmem:[#allocation4] sm:$0xf]  ;;  %v3671_v31 = vpop.f32.mrf.mxu0 }
 0x367   : > { %v3752_v54 = vsel %vm3750_vm0, %v3747_v62, %v3751_v1  ;;  %3736 = vst.msk [vmem:[#allocation4 + $0x4] sm:$0xf] %vm2536_vm6, %v3726_v2  ;;  %v3693_v10 = vadd.f32 %v3671_v31, %v3566_v9  ;;  %v3570_v1 = vadd.f32 %v3554_v25, %v3433_v32  ;;  %v3556_v2 = vpop.f32.mrf.mxu3  ;;  %v3297_v62 = vadd.f32 %v3282_v48, %v6301_v3 }
 0x368   : > { %3753 = vst [vmem:[%s6318_s12] sm:$0xf] %v3752_v54  ;;  %vm3803_vm0 = vsmask.f32 1280 }
 0x369   : > { %v3707_v17 = vadd.f32 %v6310_v53, %v3693_v10  ;;  %v3434_v14 = vadd.f32 %v3419_v26, %v3297_v62  ;;  %v3422_v18 = vpop.f32.mrf.mxu2 }
 0x36b   : > { %v3717_v23 = vmax.f32 %v3707_v17, 0.0 }
 0x36d   : > { %v3727_v27 = vpack.c.bf16 %v3717_v23, %v3717_v23 }
 0x36e   : > { %v3754_v6 = vld [vmem:[#allocation4 + $0x4] sm:$0xe]  ;;  %v3673_v58 = vpop.f32.mrf.mxu0 }
 0x36f   : > { %v3761_v37 = vrot.slane %v3754_v6, 6  ;;  %3737 = vst.msk [vmem:[#allocation4 + $0x8] sm:$0xf] %vm2536_vm6, %v3727_v27  ;;  %v3770_v61 = vld [vmem:[%s6318_s12] sm:$0x8]  ;;  %v3694_v56 = vadd.f32 %v3673_v58, %v3567_v41  ;;  %v3285_v41 = vpop.f32.mrf.mxu1  ;;  %v3571_v27 = vadd.f32 %v3556_v2, %v3434_v14 }
 0x370   : > { %v3298_v50 = vadd.f32 %v3285_v41, %v6303_v40 }
 0x371   : > { %v3771_v52 = vsel %vm3769_vm3, %v3761_v37, %v3770_v61  ;;  %v3708_v0 = vadd.f32 %v6310_v53, %v3694_v56  ;;  %v3762_v63 = vrot.slane %v3761_v37, 4  ;;  %v3559_v61 = vpop.f32.mrf.mxu3  ;;  %vm3820_vm3 = vsmask.f32 7942 }
 0x372   : > { %3772 = vst [vmem:[%s6318_s12] sm:$0x8] %v3771_v52  ;;  %v3435_v7 = vadd.f32 %v3422_v18, %v3298_v50  ;;  %vm3821_vm5 = vmand %vm3819_vm2, %vm3820_vm3 }
 0x373   : > { %v3718_v55 = vmax.f32 %v3708_v0, 0.0 }
 0x374   : > { %v3572_v0 = vadd.f32 %v3559_v61, %v3435_v7 }
 0x375   : > { %v3728_v29 = vpack.c.bf16 %v3718_v55, %v3718_v55 }
 0x376   : > { %v3755_v21 = vld [vmem:[#allocation4 + $0x8] sm:$0x1]  ;;  %v3775_v43 = vld [vmem:[#allocation4 + $0x8] sm:$0x8]  ;;  %v3676_v12 = vpop.f32.mrf.mxu0 }
 0x377   : > { %v3763_v19 = vrot.slane %v3755_v21, 6  ;;  %3778 = vst.msk [vmem:[%s6318_s12 + $0x4] sm:$0x8] %vm3767_vm1, %v3775_v43  ;;  %v3695_v44 = vadd.f32 %v3676_v12, %v3568_v11  ;;  %vm3804_vm1 = vmand %vm3796_vm15, %vm3803_vm0  ;;  %v3287_v55 = vpop.f32.mrf.mxu1  ;;  %v3424_v43 = vpop.f32.mrf.mxu2 }
 0x378   : > { %3738 = vst.msk [vmem:[#allocation4 + $0xc] sm:$0xf] %vm2536_vm6, %v3728_v29  ;;  %v3299_v40 = vadd.f32 %v3287_v55, %v6305_v24 }
 0x379   : > { %v3764_v30 = vsel %vm6332_vm10, %v3762_v63, %v3763_v19  ;;  %v3709_v57 = vadd.f32 %v6310_v53, %v3695_v44  ;;  %v3561_v63 = vpop.f32.mrf.mxu3 }
 0x37a   : > { %3774 = vst.msk [vmem:[%s6318_s12 + $0x4] sm:$0x7] %vm3773_vm8, %v3764_v30  ;;  %v3436_v19 = vadd.f32 %v3424_v43, %v3299_v40 }
 0x37b   : > { %v3719_v42 = vmax.f32 %v3709_v57, 0.0 }
 0x37c   : > { %v3573_v30 = vadd.f32 %v3561_v63, %v3436_v19 }
 0x37d   : > { %v3729_v46 = vpack.c.bf16 %v3719_v42, %v3719_v42 }
 0x37e   : > { %v3678_v8 = vpop.f32.mrf.mxu0 }
 0x37f   : > { %v3776_v13 = vld [vmem:[#allocation4 + $0xc] sm:$0x7]  ;;  %3739 = vst.msk [vmem:[#allocation4 + $0x10] sm:$0xf] %vm2536_vm6, %v3729_v46  ;;  %v3696_v16 = vadd.f32 %v3678_v8, %v3569_v15 }
 0x380   : > { %v3782_v5 = vsel %vm3780_vm12, %v3776_v13, %v3781_v39 }
 0x381   : > { %3783 = vst [vmem:[%s6318_s12 + $0x8] sm:$0x7] %v3782_v5  ;;  %v3710_v60 = vadd.f32 %v6310_v53, %v3696_v16  ;;  %v3744_v16 = vld [vmem:[#allocation4 + $0x24] sm:$0x1] }
 0x383   : > { %v3720_v33 = vmax.f32 %v3710_v60, 0.0 }
 0x385   : > { %v3730_v9 = vpack.c.bf16 %v3720_v33, %v3720_v33 }
 0x386   : > { %v3784_v36 = vld [vmem:[#allocation4 + $0x10] sm:$0xf]  ;;  %v3681_v34 = vpop.f32.mrf.mxu0 }
 0x387   : > { %v3786_v31 = vrot.slane %v3784_v36, 6  ;;  %3740 = vst.msk [vmem:[#allocation4 + $0x14] sm:$0xf] %vm2536_vm6, %v3730_v9  ;;  %v3697_v4 = vadd.f32 %v3681_v34, %v3570_v1 }
 0x388   : > { %v3793_v54 = vld [vmem:[%s6318_s12 + $0x8] sm:$0xc] }
 0x389   : > { %v3787_v10 = vrot.slane %v3786_v31, 4  ;;  %v3794_v28 = vsel %vm3792_vm14, %v3786_v31, %v3793_v54  ;;  %v3711_v17 = vadd.f32 %v6310_v53, %v3697_v4 }
 0x38a   : > { %3795 = vst [vmem:[%s6318_s12 + $0x8] sm:$0xc] %v3794_v28 }
 0x38b   : > { %v3721_v23 = vmax.f32 %v3711_v17, 0.0  ;;  %3797 = vst.msk [vmem:[%s6318_s12 + $0xc] sm:$0x3] %vm3796_vm15, %v3787_v10 }
 0x38d   : > { %v3731_v3 = vpack.c.bf16 %v3721_v23, %v3721_v23 }
 0x38e   : > { %v3798_v6 = vld [vmem:[#allocation4 + $0x14] sm:$0xc]  ;;  %v3683_v58 = vpop.f32.mrf.mxu0 }
 0x38f   : > { %3801 = vst.msk [vmem:[%s6318_s12 + $0xc] sm:$0xc] %vm3790_vm13, %v3798_v6  ;;  %v3698_v37 = vadd.f32 %v3683_v58, %v3571_v27 }
 0x390   : > { %3741 = vst.msk [vmem:[#allocation4 + $0x18] sm:$0xf] %vm2536_vm6, %v3731_v3 }
 0x391   : > { %v3712_v56 = vadd.f32 %v6310_v53, %v3698_v37 }
 0x393   : > { %v3722_v52 = vmax.f32 %v3712_v56, 0.0 }
 0x395   : > { %v3732_v35 = vpack.c.bf16 %v3722_v52, %v3722_v52 }
 0x396   : > { %v3686_v11 = vpop.f32.mrf.mxu0 }
 0x397   : > { %v3799_v29 = vld [vmem:[#allocation4 + $0x18] sm:$0x3]  ;;  %3742 = vst.msk [vmem:[#allocation4 + $0x1c] sm:$0xf] %vm2536_vm6, %v3732_v35  ;;  %v3699_v21 = vadd.f32 %v3686_v11, %v3572_v0  ;;  %v3808_v38 = vld [vmem:[#allocation4 + $0x18] sm:$0x8] }
 0x398   : > { %v3806_v12 = vsel %vm3804_vm1, %v3799_v29, %v3805_v45  ;;  %v4954_v20 = vrot.slane %v3808_v38, 10 }
 0x399   : > { %3807 = vst [vmem:[%s6318_s12 + $0x10] sm:$0x3] %v3806_v12  ;;  %v3713_v22 = vadd.f32 %v6310_v53, %v3699_v21 }
 0x39b   : > { %v3723_v44 = vmax.f32 %v3713_v22, 0.0 }
 0x39d   : > { %v3733_v24 = vpack.c.bf16 %v3723_v44, %v3723_v44 }
 0x39e   : > { %v3809_v57 = vld [vmem:[#allocation4 + $0x1c] sm:$0x7]  ;;  %v3688_v59 = vpop.f32.mrf.mxu0 }
 0x39f   : > { %v3814_v42 = vrot.slane %v3809_v57, 6  ;;  %3743 = vst.msk [vmem:[#allocation4 + $0x20] sm:$0xf] %vm2536_vm6, %v3733_v24  ;;  %v3700_v25 = vadd.f32 %v3688_v59, %v3573_v30 }
 0x3a0   : > { %v3822_v46 = vld [vmem:[%s6318_s12 + $0x10] sm:$0xe] }
 0x3a1   : > { %v3815_v15 = vsel %vm6332_vm10, %v4954_v20, %v3814_v42  ;;  %v3816_v39 = vrot.slane %v3814_v42, 4  ;;  %v3714_v8 = vadd.f32 %v6310_v53, %v3700_v25 }
 0x3a2   : > { %v3823_v49 = vsel %vm3821_vm5, %v3815_v15, %v3822_v46 }
 0x3a3   : > { %3826 = vst.msk [vmem:[%s6318_s12 + $0x14] sm:$0x1] %vm2549_vm9, %v3816_v39  ;;  %v3724_v13 = vmax.f32 %v3714_v8, 0.0 }
 0x3a4   : > { %3824 = vst [vmem:[%s6318_s12 + $0x10] sm:$0xe] %v3823_v49 }
 0x3a5   : > { %v3734_v5 = vpack.c.bf16 %v3724_v13, %v3724_v13 }
 0x3a6   : > { %v3827_v60 = vld [vmem:[#allocation4 + $0x20] sm:$0xe] }
 0x3a7   : > { %3830 = vst.msk [vmem:[%s6318_s12 + $0x14] sm:$0xe] %vm3819_vm2, %v3827_v60  ;;  %v3745_v48 = vsel %vm6206_vm11, %v3734_v5, %v3744_v16 }
 0x3a8   : > { %3746 = vst [vmem:[#allocation4 + $0x24] sm:$0x1] %v3745_v48 }
 0x3af   : > { %v3828_v32 = vld [vmem:[#allocation4 + $0x24] sm:$0x1] }
 0x3b0   : > { %v3832_v33 = vsel %vm6206_vm11, %v3828_v32, %v3831_v51 }
 0x3b1   : > { %3833 = vst [vmem:[%s6318_s12 + $0x18] sm:$0x1] %v3832_v33 }
 0x3b2 PF: > { %s17_s24 = sadd.s32 1, %s5235_s24  }
 0x3b3   : > { %p14_p4 = scmp.ge.s32.totalorder %s17_s24, 4  }
 0x3b5   :  { %16 = sbr.rel (!%p14_p4) target bundleno = 1 (0x1), region = 92 }

// kernel: q_net_forward.3
= control target key start
LH: loop header
LB: loop body
LE: loop exit
PB: predicated region body
PF: predicated region fallthrough
CT: control target
= control target key end

     0   :  { %s7073_s18 = smov 0   ;;  %s7075_s19 = smov 0   ;;  %s8308_s0 = inlined_call_operand.vmem [shape: bf16[16,3136], index: 0, kind: input, shape index: {}]   ;;  %s8309_s1 = inlined_call_operand.vmem [shape: bf16[3136,512], index: 1, kind: input, shape index: {}]   ;;  %s8310_s2 = inlined_call_operand.vmem [shape: f32[1,512], index: 2, kind: input, shape index: {}]   ;;  %s8311_s3 = inlined_call_operand.vmem [shape: bf16[512,128], index: 3, kind: input, shape index: {}]   ;;  %s8312_s4 = inlined_call_operand.vmem [shape: f32[1,128], index: 4, kind: input, shape index: {}]   ;;  %s8313_s5 = inlined_call_operand.vmem [shape: f32[16,128], index: 5, kind: output, shape index: {}]  }
   0x1   :  { %s7077_s20 = smov 0   ;;  %s7079_s21 = smov 0  }
   0x2   :  { %s7081_s22 = smov 0  }
   0x3 LB: > { %s24_s23 = sadd.s32 1, %s7036_s21  ;;  %p67_p1 = scmp.ne.s32.totalorder %s7028_s19, %s7024_s18  ;;  %s7040_s22 = sphi %s7081_s22, %s15_s22   ;;  %s7036_s21 = sphi %s7079_s21, %s8317_s21   ;;  %s7032_s20 = sphi %s7077_s20, %s8316_s20   ;;  %s7028_s19 = sphi %s7075_s19, %s8315_s19   ;;  %s7024_s18 = sphi %s7073_s18, %s8314_s18  }
   0x4   : > { %p25_p0 = scmp.ge.s32.totalorder %s24_s23, 4  ;;  %p68_p2 = scmp.eq.s32.totalorder %s7040_s22, 0 }
   0x5   : > { %s60_s25 = sadd.s32 1, %s7028_s19  ;;  %p5800_p5 = scmp.ge.s32.totalorder %s7040_s22, 4 }
   0x6   : > { %s8319_s23 = smov (%p25_p0, %s24_s23), 0  ;;  %p69_p3 = por %p68_p2, %p67_p1 }
   0x7   : > { %s57_s24 = ssub.s32 %s7036_s21, %s8319_s23  ;;  %205 = sbr.rel (%p5800_p5) target bundleno = 408 (0x198), region = 24 }
   0x8   : > { %p58_p4 = scmp.eq.s32.totalorder %s57_s24, 0 }
   0xa   : > { %s7108_s26 = scalar_select %p58_p4, %s7028_s19, %s60_s25  }
   0xc   : > { %208 = sbr.rel (!%p69_p3) target bundleno = 408 (0x198), region = 28  ;;  %s210_s27 = sand.u32 (%p69_p3), 1, %s7028_s19  }
   0xd   : > { %s5801_s28 = sshll.u32 (%p69_p3), %s7036_s21, 2  ;;  %s6957_s29 = smul.u32 (%p69_p3), 1568, %s210_s27 }
   0xe   : > { %s7116_s7 = scalar_lea.vmem (%p69_p3), %s8309_s1, %s5801_s28 }
   0xf   : > { %v231_v0 = vld [vmem:[%s7116_s7] sm:$0xf] (%p69_p3)  ;;  %v233_v1 = vld [vmem:[%s7116_s7 + $0x10] sm:$0xf] (%p69_p3)  ;;  %s7121_s8 = scalar_lea.vmem (%p69_p3), [#allocation3], %s6957_s29 }
  0x10   : > { %v235_v2 = vld [vmem:[%s7116_s7 + $0x20] sm:$0xf] (%p69_p3)  ;;  %232 = vst [vmem:[%s7121_s8] sm:$0xf] (%p69_p3), %v231_v0  ;;  %v237_v3 = vld [vmem:[%s7116_s7 + $0x30] sm:$0xf] (%p69_p3) }
  0x11   : > { %234 = vst [vmem:[%s7121_s8 + $0x4] sm:$0xf] %v233_v1  ;;  %v239_v4 = vld [vmem:[%s7116_s7 + $0x40] sm:$0xf]  ;;  %v241_v5 = vld [vmem:[%s7116_s7 + $0x50] sm:$0xf] }
  0x12   : > { %236 = vst [vmem:[%s7121_s8 + $0x8] sm:$0xf] %v235_v2  ;;  %v243_v6 = vld [vmem:[%s7116_s7 + $0x60] sm:$0xf]  ;;  %v245_v7 = vld [vmem:[%s7116_s7 + $0x70] sm:$0xf] }
  0x13   : > { %238 = vst [vmem:[%s7121_s8 + $0xc] sm:$0xf] %v237_v3  ;;  %v247_v8 = vld [vmem:[%s7116_s7 + $0x80] sm:$0xf]  ;;  %v249_v9 = vld [vmem:[%s7116_s7 + $0x90] sm:$0xf] }
  0x14   : > { %240 = vst [vmem:[%s7121_s8 + $0x10] sm:$0xf] %v239_v4  ;;  %v251_v10 = vld [vmem:[%s7116_s7 + $0xa0] sm:$0xf]  ;;  %v253_v11 = vld [vmem:[%s7116_s7 + $0xb0] sm:$0xf] }
  0x15   : > { %242 = vst [vmem:[%s7121_s8 + $0x14] sm:$0xf] %v241_v5  ;;  %v255_v12 = vld [vmem:[%s7116_s7 + $0xc0] sm:$0xf]  ;;  %v257_v13 = vld [vmem:[%s7116_s7 + $0xd0] sm:$0xf] }
  0x16   : > { %244 = vst [vmem:[%s7121_s8 + $0x18] sm:$0xf] %v243_v6  ;;  %v259_v14 = vld [vmem:[%s7116_s7 + $0xe0] sm:$0xf]  ;;  %v261_v15 = vld [vmem:[%s7116_s7 + $0xf0] sm:$0xf] }
  0x17   : > { %246 = vst [vmem:[%s7121_s8 + $0x1c] sm:$0xf] %v245_v7  ;;  %v263_v16 = vld [vmem:[%s7116_s7 + $0x100] sm:$0xf]  ;;  %v265_v17 = vld [vmem:[%s7116_s7 + $0x110] sm:$0xf] }
  0x18   : > { %248 = vst [vmem:[%s7121_s8 + $0x20] sm:$0xf] %v247_v8  ;;  %v267_v18 = vld [vmem:[%s7116_s7 + $0x120] sm:$0xf]  ;;  %v269_v19 = vld [vmem:[%s7116_s7 + $0x130] sm:$0xf] }
  0x19   : > { %250 = vst [vmem:[%s7121_s8 + $0x24] sm:$0xf] %v249_v9  ;;  %v271_v20 = vld [vmem:[%s7116_s7 + $0x140] sm:$0xf]  ;;  %v273_v21 = vld [vmem:[%s7116_s7 + $0x150] sm:$0xf] }
  0x1a   : > { %252 = vst [vmem:[%s7121_s8 + $0x28] sm:$0xf] %v251_v10  ;;  %v275_v22 = vld [vmem:[%s7116_s7 + $0x160] sm:$0xf]  ;;  %v277_v23 = vld [vmem:[%s7116_s7 + $0x170] sm:$0xf] }
  0x1b   : > { %254 = vst [vmem:[%s7121_s8 + $0x2c] sm:$0xf] %v253_v11  ;;  %v279_v24 = vld [vmem:[%s7116_s7 + $0x180] sm:$0xf]  ;;  %v281_v25 = vld [vmem:[%s7116_s7 + $0x190] sm:$0xf] }
  0x1c   : > { %256 = vst [vmem:[%s7121_s8 + $0x30] sm:$0xf] %v255_v12  ;;  %v283_v26 = vld [vmem:[%s7116_s7 + $0x1a0] sm:$0xf]  ;;  %v285_v27 = vld [vmem:[%s7116_s7 + $0x1b0] sm:$0xf] }
  0x1d   : > { %258 = vst [vmem:[%s7121_s8 + $0x34] sm:$0xf] %v257_v13  ;;  %v287_v28 = vld [vmem:[%s7116_s7 + $0x1c0] sm:$0xf]  ;;  %v289_v29 = vld [vmem:[%s7116_s7 + $0x1d0] sm:$0xf] }
  0x1e   : > { %260 = vst [vmem:[%s7121_s8 + $0x38] sm:$0xf] %v259_v14  ;;  %v291_v30 = vld [vmem:[%s7116_s7 + $0x1e0] sm:$0xf]  ;;  %v293_v31 = vld [vmem:[%s7116_s7 + $0x1f0] sm:$0xf] }
  0x1f   : > { %262 = vst [vmem:[%s7121_s8 + $0x3c] sm:$0xf] %v261_v15  ;;  %v295_v32 = vld [vmem:[%s7116_s7 + $0x200] sm:$0xf]  ;;  %v297_v33 = vld [vmem:[%s7116_s7 + $0x210] sm:$0xf] }
  0x20   : > { %264 = vst [vmem:[%s7121_s8 + $0x40] sm:$0xf] %v263_v16  ;;  %v299_v34 = vld [vmem:[%s7116_s7 + $0x220] sm:$0xf]  ;;  %v301_v35 = vld [vmem:[%s7116_s7 + $0x230] sm:$0xf] }
  0x21   : > { %266 = vst [vmem:[%s7121_s8 + $0x44] sm:$0xf] %v265_v17  ;;  %v303_v36 = vld [vmem:[%s7116_s7 + $0x240] sm:$0xf]  ;;  %v305_v37 = vld [vmem:[%s7116_s7 + $0x250] sm:$0xf] }
  0x22   : > { %268 = vst [vmem:[%s7121_s8 + $0x48] sm:$0xf] %v267_v18  ;;  %v307_v38 = vld [vmem:[%s7116_s7 + $0x260] sm:$0xf]  ;;  %v309_v39 = vld [vmem:[%s7116_s7 + $0x270] sm:$0xf] }
  0x23   : > { %270 = vst [vmem:[%s7121_s8 + $0x4c] sm:$0xf] %v269_v19  ;;  %v311_v40 = vld [vmem:[%s7116_s7 + $0x280] sm:$0xf]  ;;  %v313_v41 = vld [vmem:[%s7116_s7 + $0x290] sm:$0xf] }
  0x24   : > { %272 = vst [vmem:[%s7121_s8 + $0x50] sm:$0xf] %v271_v20  ;;  %v315_v42 = vld [vmem:[%s7116_s7 + $0x2a0] sm:$0xf]  ;;  %v317_v43 = vld [vmem:[%s7116_s7 + $0x2b0] sm:$0xf] }
  0x25   : > { %274 = vst [vmem:[%s7121_s8 + $0x54] sm:$0xf] %v273_v21  ;;  %v319_v44 = vld [vmem:[%s7116_s7 + $0x2c0] sm:$0xf]  ;;  %v321_v45 = vld [vmem:[%s7116_s7 + $0x2d0] sm:$0xf] }
  0x26   : > { %276 = vst [vmem:[%s7121_s8 + $0x58] sm:$0xf] %v275_v22  ;;  %v323_v46 = vld [vmem:[%s7116_s7 + $0x2e0] sm:$0xf]  ;;  %v325_v47 = vld [vmem:[%s7116_s7 + $0x2f0] sm:$0xf] }
  0x27   : > { %278 = vst [vmem:[%s7121_s8 + $0x5c] sm:$0xf] %v277_v23  ;;  %v327_v48 = vld [vmem:[%s7116_s7 + $0x300] sm:$0xf]  ;;  %v329_v49 = vld [vmem:[%s7116_s7 + $0x310] sm:$0xf] }
  0x28   : > { %280 = vst [vmem:[%s7121_s8 + $0x60] sm:$0xf] %v279_v24  ;;  %v331_v50 = vld [vmem:[%s7116_s7 + $0x320] sm:$0xf]  ;;  %v333_v51 = vld [vmem:[%s7116_s7 + $0x330] sm:$0xf] }
  0x29   : > { %282 = vst [vmem:[%s7121_s8 + $0x64] sm:$0xf] %v281_v25  ;;  %v335_v52 = vld [vmem:[%s7116_s7 + $0x340] sm:$0xf]  ;;  %v337_v53 = vld [vmem:[%s7116_s7 + $0x350] sm:$0xf] }
  0x2a   : > { %284 = vst [vmem:[%s7121_s8 + $0x68] sm:$0xf] %v283_v26  ;;  %v339_v54 = vld [vmem:[%s7116_s7 + $0x360] sm:$0xf]  ;;  %v341_v55 = vld [vmem:[%s7116_s7 + $0x370] sm:$0xf] }
  0x2b   : > { %286 = vst [vmem:[%s7121_s8 + $0x6c] sm:$0xf] %v285_v27  ;;  %v343_v56 = vld [vmem:[%s7116_s7 + $0x380] sm:$0xf]  ;;  %v345_v57 = vld [vmem:[%s7116_s7 + $0x390] sm:$0xf] }
  0x2c   : > { %288 = vst [vmem:[%s7121_s8 + $0x70] sm:$0xf] %v287_v28  ;;  %v347_v58 = vld [vmem:[%s7116_s7 + $0x3a0] sm:$0xf]  ;;  %v349_v59 = vld [vmem:[%s7116_s7 + $0x3b0] sm:$0xf] }
  0x2d   : > { %290 = vst [vmem:[%s7121_s8 + $0x74] sm:$0xf] %v289_v29  ;;  %v351_v60 = vld [vmem:[%s7116_s7 + $0x3c0] sm:$0xf]  ;;  %v353_v61 = vld [vmem:[%s7116_s7 + $0x3d0] sm:$0xf] }
  0x2e   : > { %292 = vst [vmem:[%s7121_s8 + $0x78] sm:$0xf] %v291_v30  ;;  %v355_v62 = vld [vmem:[%s7116_s7 + $0x3e0] sm:$0xf]  ;;  %v357_v63 = vld [vmem:[%s7116_s7 + $0x3f0] sm:$0xf] }
  0x2f   : > { %294 = vst [vmem:[%s7121_s8 + $0x7c] sm:$0xf] %v293_v31  ;;  %v359_v0 = vld [vmem:[%s7116_s7 + $0x400] sm:$0xf]  ;;  %v361_v1 = vld [vmem:[%s7116_s7 + $0x410] sm:$0xf] }
  0x30   : > { %296 = vst [vmem:[%s7121_s8 + $0x80] sm:$0xf] %v295_v32  ;;  %v363_v2 = vld [vmem:[%s7116_s7 + $0x420] sm:$0xf]  ;;  %v365_v3 = vld [vmem:[%s7116_s7 + $0x430] sm:$0xf] }
  0x31   : > { %298 = vst [vmem:[%s7121_s8 + $0x84] sm:$0xf] %v297_v33  ;;  %v367_v4 = vld [vmem:[%s7116_s7 + $0x440] sm:$0xf]  ;;  %v369_v5 = vld [vmem:[%s7116_s7 + $0x450] sm:$0xf] }
  0x32   : > { %300 = vst [vmem:[%s7121_s8 + $0x88] sm:$0xf] %v299_v34  ;;  %v371_v6 = vld [vmem:[%s7116_s7 + $0x460] sm:$0xf]  ;;  %v373_v7 = vld [vmem:[%s7116_s7 + $0x470] sm:$0xf] }
  0x33   : > { %302 = vst [vmem:[%s7121_s8 + $0x8c] sm:$0xf] %v301_v35  ;;  %v375_v8 = vld [vmem:[%s7116_s7 + $0x480] sm:$0xf]  ;;  %v377_v9 = vld [vmem:[%s7116_s7 + $0x490] sm:$0xf] }
  0x34   : > { %304 = vst [vmem:[%s7121_s8 + $0x90] sm:$0xf] %v303_v36  ;;  %v379_v10 = vld [vmem:[%s7116_s7 + $0x4a0] sm:$0xf]  ;;  %v381_v11 = vld [vmem:[%s7116_s7 + $0x4b0] sm:$0xf] }
  0x35   : > { %306 = vst [vmem:[%s7121_s8 + $0x94] sm:$0xf] %v305_v37  ;;  %v383_v12 = vld [vmem:[%s7116_s7 + $0x4c0] sm:$0xf]  ;;  %v385_v13 = vld [vmem:[%s7116_s7 + $0x4d0] sm:$0xf] }
  0x36   : > { %308 = vst [vmem:[%s7121_s8 + $0x98] sm:$0xf] %v307_v38  ;;  %v387_v14 = vld [vmem:[%s7116_s7 + $0x4e0] sm:$0xf]  ;;  %v389_v15 = vld [vmem:[%s7116_s7 + $0x4f0] sm:$0xf] }
  0x37   : > { %310 = vst [vmem:[%s7121_s8 + $0x9c] sm:$0xf] %v309_v39  ;;  %v391_v16 = vld [vmem:[%s7116_s7 + $0x500] sm:$0xf]  ;;  %v393_v17 = vld [vmem:[%s7116_s7 + $0x510] sm:$0xf] }
  0x38   : > { %312 = vst [vmem:[%s7121_s8 + $0xa0] sm:$0xf] %v311_v40  ;;  %v395_v18 = vld [vmem:[%s7116_s7 + $0x520] sm:$0xf]  ;;  %v397_v19 = vld [vmem:[%s7116_s7 + $0x530] sm:$0xf] }
  0x39   : > { %314 = vst [vmem:[%s7121_s8 + $0xa4] sm:$0xf] %v313_v41  ;;  %v399_v20 = vld [vmem:[%s7116_s7 + $0x540] sm:$0xf]  ;;  %v401_v21 = vld [vmem:[%s7116_s7 + $0x550] sm:$0xf] }
  0x3a   : > { %316 = vst [vmem:[%s7121_s8 + $0xa8] sm:$0xf] %v315_v42  ;;  %v403_v22 = vld [vmem:[%s7116_s7 + $0x560] sm:$0xf]  ;;  %v405_v23 = vld [vmem:[%s7116_s7 + $0x570] sm:$0xf] }
  0x3b   : > { %318 = vst [vmem:[%s7121_s8 + $0xac] sm:$0xf] %v317_v43  ;;  %v407_v24 = vld [vmem:[%s7116_s7 + $0x580] sm:$0xf]  ;;  %v409_v25 = vld [vmem:[%s7116_s7 + $0x590] sm:$0xf] }
  0x3c   : > { %320 = vst [vmem:[%s7121_s8 + $0xb0] sm:$0xf] %v319_v44  ;;  %v411_v26 = vld [vmem:[%s7116_s7 + $0x5a0] sm:$0xf]  ;;  %v413_v27 = vld [vmem:[%s7116_s7 + $0x5b0] sm:$0xf] }
  0x3d   : > { %322 = vst [vmem:[%s7121_s8 + $0xb4] sm:$0xf] %v321_v45  ;;  %v415_v28 = vld [vmem:[%s7116_s7 + $0x5c0] sm:$0xf]  ;;  %v417_v29 = vld [vmem:[%s7116_s7 + $0x5d0] sm:$0xf] }
  0x3e   : > { %324 = vst [vmem:[%s7121_s8 + $0xb8] sm:$0xf] %v323_v46  ;;  %v419_v30 = vld [vmem:[%s7116_s7 + $0x5e0] sm:$0xf]  ;;  %v421_v31 = vld [vmem:[%s7116_s7 + $0x5f0] sm:$0xf] }
  0x3f   : > { %326 = vst [vmem:[%s7121_s8 + $0xbc] sm:$0xf] %v325_v47  ;;  %v423_v32 = vld [vmem:[%s7116_s7 + $0x600] sm:$0xf]  ;;  %v425_v33 = vld [vmem:[%s7116_s7 + $0x610] sm:$0xf] }
  0x40   : > { %328 = vst [vmem:[%s7121_s8 + $0xc0] sm:$0xf] %v327_v48  ;;  %v427_v34 = vld [vmem:[%s7116_s7 + $0x620] sm:$0xf]  ;;  %v429_v35 = vld [vmem:[%s7116_s7 + $0x630] sm:$0xf] }
  0x41   : > { %330 = vst [vmem:[%s7121_s8 + $0xc4] sm:$0xf] %v329_v49  ;;  %v431_v36 = vld [vmem:[%s7116_s7 + $0x640] sm:$0xf]  ;;  %v433_v37 = vld [vmem:[%s7116_s7 + $0x650] sm:$0xf] }
  0x42   : > { %332 = vst [vmem:[%s7121_s8 + $0xc8] sm:$0xf] %v331_v50  ;;  %v435_v38 = vld [vmem:[%s7116_s7 + $0x660] sm:$0xf]  ;;  %v437_v39 = vld [vmem:[%s7116_s7 + $0x670] sm:$0xf] }
  0x43   : > { %334 = vst [vmem:[%s7121_s8 + $0xcc] sm:$0xf] %v333_v51  ;;  %v439_v40 = vld [vmem:[%s7116_s7 + $0x680] sm:$0xf]  ;;  %v441_v41 = vld [vmem:[%s7116_s7 + $0x690] sm:$0xf] }
  0x44   : > { %336 = vst [vmem:[%s7121_s8 + $0xd0] sm:$0xf] %v335_v52  ;;  %v443_v42 = vld [vmem:[%s7116_s7 + $0x6a0] sm:$0xf]  ;;  %v445_v43 = vld [vmem:[%s7116_s7 + $0x6b0] sm:$0xf] }
  0x45   : > { %338 = vst [vmem:[%s7121_s8 + $0xd4] sm:$0xf] %v337_v53  ;;  %v447_v44 = vld [vmem:[%s7116_s7 + $0x6c0] sm:$0xf]  ;;  %v449_v45 = vld [vmem:[%s7116_s7 + $0x6d0] sm:$0xf] }
  0x46   : > { %340 = vst [vmem:[%s7121_s8 + $0xd8] sm:$0xf] %v339_v54  ;;  %v451_v46 = vld [vmem:[%s7116_s7 + $0x6e0] sm:$0xf]  ;;  %v453_v47 = vld [vmem:[%s7116_s7 + $0x6f0] sm:$0xf] }
  0x47   : > { %342 = vst [vmem:[%s7121_s8 + $0xdc] sm:$0xf] %v341_v55  ;;  %v455_v48 = vld [vmem:[%s7116_s7 + $0x700] sm:$0xf]  ;;  %v457_v49 = vld [vmem:[%s7116_s7 + $0x710] sm:$0xf] }
  0x48   : > { %344 = vst [vmem:[%s7121_s8 + $0xe0] sm:$0xf] %v343_v56  ;;  %v459_v50 = vld [vmem:[%s7116_s7 + $0x720] sm:$0xf]  ;;  %v461_v51 = vld [vmem:[%s7116_s7 + $0x730] sm:$0xf] }
  0x49   : > { %346 = vst [vmem:[%s7121_s8 + $0xe4] sm:$0xf] %v345_v57  ;;  %v463_v52 = vld [vmem:[%s7116_s7 + $0x740] sm:$0xf]  ;;  %v465_v53 = vld [vmem:[%s7116_s7 + $0x750] sm:$0xf] }
  0x4a   : > { %348 = vst [vmem:[%s7121_s8 + $0xe8] sm:$0xf] %v347_v58  ;;  %v467_v54 = vld [vmem:[%s7116_s7 + $0x760] sm:$0xf]  ;;  %v469_v55 = vld [vmem:[%s7116_s7 + $0x770] sm:$0xf] }
  0x4b   : > { %350 = vst [vmem:[%s7121_s8 + $0xec] sm:$0xf] %v349_v59  ;;  %v471_v56 = vld [vmem:[%s7116_s7 + $0x780] sm:$0xf]  ;;  %v473_v57 = vld [vmem:[%s7116_s7 + $0x790] sm:$0xf] }
  0x4c   : > { %352 = vst [vmem:[%s7121_s8 + $0xf0] sm:$0xf] %v351_v60  ;;  %v475_v58 = vld [vmem:[%s7116_s7 + $0x7a0] sm:$0xf]  ;;  %v477_v59 = vld [vmem:[%s7116_s7 + $0x7b0] sm:$0xf] }
  0x4d   : > { %354 = vst [vmem:[%s7121_s8 + $0xf4] sm:$0xf] %v353_v61  ;;  %v479_v60 = vld [vmem:[%s7116_s7 + $0x7c0] sm:$0xf]  ;;  %v481_v61 = vld [vmem:[%s7116_s7 + $0x7d0] sm:$0xf] }
  0x4e   : > { %356 = vst [vmem:[%s7121_s8 + $0xf8] sm:$0xf] %v355_v62  ;;  %v483_v62 = vld [vmem:[%s7116_s7 + $0x7e0] sm:$0xf] }
  0x4f   : > { %358 = vst [vmem:[%s7121_s8 + $0xfc] sm:$0xf] %v357_v63  ;;  %v485_v63 = vld [vmem:[%s7116_s7 + $0x7f0] sm:$0xf] }
  0x50   : > { %360 = vst [vmem:[%s7121_s8 + $0x100] sm:$0xf] %v359_v0  ;;  %v487_v0 = vld [vmem:[%s7116_s7 + $0x800] sm:$0xf] }
  0x51   : > { %362 = vst [vmem:[%s7121_s8 + $0x104] sm:$0xf] %v361_v1  ;;  %v489_v1 = vld [vmem:[%s7116_s7 + $0x810] sm:$0xf] }
  0x52   : > { %364 = vst [vmem:[%s7121_s8 + $0x108] sm:$0xf] %v363_v2  ;;  %v491_v2 = vld [vmem:[%s7116_s7 + $0x820] sm:$0xf] }
  0x53   : > { %366 = vst [vmem:[%s7121_s8 + $0x10c] sm:$0xf] %v365_v3  ;;  %v493_v3 = vld [vmem:[%s7116_s7 + $0x830] sm:$0xf] }
  0x54   : > { %368 = vst [vmem:[%s7121_s8 + $0x110] sm:$0xf] %v367_v4  ;;  %v495_v4 = vld [vmem:[%s7116_s7 + $0x840] sm:$0xf] }
  0x55   : > { %370 = vst [vmem:[%s7121_s8 + $0x114] sm:$0xf] %v369_v5  ;;  %v497_v5 = vld [vmem:[%s7116_s7 + $0x850] sm:$0xf] }
  0x56   : > { %372 = vst [vmem:[%s7121_s8 + $0x118] sm:$0xf] %v371_v6  ;;  %v499_v6 = vld [vmem:[%s7116_s7 + $0x860] sm:$0xf] }
  0x57   : > { %374 = vst [vmem:[%s7121_s8 + $0x11c] sm:$0xf] %v373_v7  ;;  %v501_v7 = vld [vmem:[%s7116_s7 + $0x870] sm:$0xf] }
  0x58   : > { %376 = vst [vmem:[%s7121_s8 + $0x120] sm:$0xf] %v375_v8  ;;  %v503_v8 = vld [vmem:[%s7116_s7 + $0x880] sm:$0xf] }
  0x59   : > { %378 = vst [vmem:[%s7121_s8 + $0x124] sm:$0xf] %v377_v9  ;;  %v505_v9 = vld [vmem:[%s7116_s7 + $0x890] sm:$0xf] }
  0x5a   : > { %380 = vst [vmem:[%s7121_s8 + $0x128] sm:$0xf] %v379_v10  ;;  %v507_v10 = vld [vmem:[%s7116_s7 + $0x8a0] sm:$0xf] }
  0x5b   : > { %382 = vst [vmem:[%s7121_s8 + $0x12c] sm:$0xf] %v381_v11  ;;  %v509_v11 = vld [vmem:[%s7116_s7 + $0x8b0] sm:$0xf] }
  0x5c   : > { %384 = vst [vmem:[%s7121_s8 + $0x130] sm:$0xf] %v383_v12  ;;  %v511_v12 = vld [vmem:[%s7116_s7 + $0x8c0] sm:$0xf] }
  0x5d   : > { %386 = vst [vmem:[%s7121_s8 + $0x134] sm:$0xf] %v385_v13  ;;  %v513_v13 = vld [vmem:[%s7116_s7 + $0x8d0] sm:$0xf] }
  0x5e   : > { %388 = vst [vmem:[%s7121_s8 + $0x138] sm:$0xf] %v387_v14  ;;  %v515_v14 = vld [vmem:[%s7116_s7 + $0x8e0] sm:$0xf] }
  0x5f   : > { %390 = vst [vmem:[%s7121_s8 + $0x13c] sm:$0xf] %v389_v15  ;;  %v517_v15 = vld [vmem:[%s7116_s7 + $0x8f0] sm:$0xf] }
  0x60   : > { %392 = vst [vmem:[%s7121_s8 + $0x140] sm:$0xf] %v391_v16  ;;  %v519_v16 = vld [vmem:[%s7116_s7 + $0x900] sm:$0xf] }
  0x61   : > { %394 = vst [vmem:[%s7121_s8 + $0x144] sm:$0xf] %v393_v17  ;;  %v521_v17 = vld [vmem:[%s7116_s7 + $0x910] sm:$0xf] }
  0x62   : > { %396 = vst [vmem:[%s7121_s8 + $0x148] sm:$0xf] %v395_v18  ;;  %v523_v18 = vld [vmem:[%s7116_s7 + $0x920] sm:$0xf] }
  0x63   : > { %398 = vst [vmem:[%s7121_s8 + $0x14c] sm:$0xf] %v397_v19  ;;  %v525_v19 = vld [vmem:[%s7116_s7 + $0x930] sm:$0xf] }
  0x64   : > { %400 = vst [vmem:[%s7121_s8 + $0x150] sm:$0xf] %v399_v20  ;;  %v527_v20 = vld [vmem:[%s7116_s7 + $0x940] sm:$0xf] }
  0x65   : > { %402 = vst [vmem:[%s7121_s8 + $0x154] sm:$0xf] %v401_v21  ;;  %v529_v21 = vld [vmem:[%s7116_s7 + $0x950] sm:$0xf] }
  0x66   : > { %404 = vst [vmem:[%s7121_s8 + $0x158] sm:$0xf] %v403_v22  ;;  %v531_v22 = vld [vmem:[%s7116_s7 + $0x960] sm:$0xf] }
  0x67   : > { %406 = vst [vmem:[%s7121_s8 + $0x15c] sm:$0xf] %v405_v23  ;;  %v533_v23 = vld [vmem:[%s7116_s7 + $0x970] sm:$0xf] }
  0x68   : > { %408 = vst [vmem:[%s7121_s8 + $0x160] sm:$0xf] %v407_v24  ;;  %v535_v24 = vld [vmem:[%s7116_s7 + $0x980] sm:$0xf] }
  0x69   : > { %410 = vst [vmem:[%s7121_s8 + $0x164] sm:$0xf] %v409_v25  ;;  %v537_v25 = vld [vmem:[%s7116_s7 + $0x990] sm:$0xf] }
  0x6a   : > { %412 = vst [vmem:[%s7121_s8 + $0x168] sm:$0xf] %v411_v26  ;;  %v539_v26 = vld [vmem:[%s7116_s7 + $0x9a0] sm:$0xf] }
  0x6b   : > { %414 = vst [vmem:[%s7121_s8 + $0x16c] sm:$0xf] %v413_v27  ;;  %v541_v27 = vld [vmem:[%s7116_s7 + $0x9b0] sm:$0xf] }
  0x6c   : > { %416 = vst [vmem:[%s7121_s8 + $0x170] sm:$0xf] %v415_v28  ;;  %v543_v28 = vld [vmem:[%s7116_s7 + $0x9c0] sm:$0xf] }
  0x6d   : > { %418 = vst [vmem:[%s7121_s8 + $0x174] sm:$0xf] %v417_v29  ;;  %v545_v29 = vld [vmem:[%s7116_s7 + $0x9d0] sm:$0xf] }
  0x6e   : > { %420 = vst [vmem:[%s7121_s8 + $0x178] sm:$0xf] %v419_v30  ;;  %v547_v30 = vld [vmem:[%s7116_s7 + $0x9e0] sm:$0xf] }
  0x6f   : > { %422 = vst [vmem:[%s7121_s8 + $0x17c] sm:$0xf] %v421_v31  ;;  %v549_v31 = vld [vmem:[%s7116_s7 + $0x9f0] sm:$0xf] }
  0x70   : > { %424 = vst [vmem:[%s7121_s8 + $0x180] sm:$0xf] %v423_v32  ;;  %v551_v32 = vld [vmem:[%s7116_s7 + $0xa00] sm:$0xf] }
  0x71   : > { %426 = vst [vmem:[%s7121_s8 + $0x184] sm:$0xf] %v425_v33  ;;  %v553_v33 = vld [vmem:[%s7116_s7 + $0xa10] sm:$0xf] }
  0x72   : > { %428 = vst [vmem:[%s7121_s8 + $0x188] sm:$0xf] %v427_v34  ;;  %v555_v34 = vld [vmem:[%s7116_s7 + $0xa20] sm:$0xf] }
  0x73   : > { %430 = vst [vmem:[%s7121_s8 + $0x18c] sm:$0xf] %v429_v35  ;;  %v557_v35 = vld [vmem:[%s7116_s7 + $0xa30] sm:$0xf] }
  0x74   : > { %432 = vst [vmem:[%s7121_s8 + $0x190] sm:$0xf] %v431_v36  ;;  %v559_v36 = vld [vmem:[%s7116_s7 + $0xa40] sm:$0xf] }
  0x75   : > { %434 = vst [vmem:[%s7121_s8 + $0x194] sm:$0xf] %v433_v37  ;;  %v561_v37 = vld [vmem:[%s7116_s7 + $0xa50] sm:$0xf] }
  0x76   : > { %436 = vst [vmem:[%s7121_s8 + $0x198] sm:$0xf] %v435_v38  ;;  %v563_v38 = vld [vmem:[%s7116_s7 + $0xa60] sm:$0xf] }
  0x77   : > { %438 = vst [vmem:[%s7121_s8 + $0x19c] sm:$0xf] %v437_v39  ;;  %v565_v39 = vld [vmem:[%s7116_s7 + $0xa70] sm:$0xf] }
  0x78   : > { %440 = vst [vmem:[%s7121_s8 + $0x1a0] sm:$0xf] %v439_v40  ;;  %v567_v40 = vld [vmem:[%s7116_s7 + $0xa80] sm:$0xf] }
  0x79   : > { %442 = vst [vmem:[%s7121_s8 + $0x1a4] sm:$0xf] %v441_v41  ;;  %v569_v41 = vld [vmem:[%s7116_s7 + $0xa90] sm:$0xf] }
  0x7a   : > { %444 = vst [vmem:[%s7121_s8 + $0x1a8] sm:$0xf] %v443_v42  ;;  %v571_v42 = vld [vmem:[%s7116_s7 + $0xaa0] sm:$0xf] }
  0x7b   : > { %446 = vst [vmem:[%s7121_s8 + $0x1ac] sm:$0xf] %v445_v43  ;;  %v573_v43 = vld [vmem:[%s7116_s7 + $0xab0] sm:$0xf] }
  0x7c   : > { %448 = vst [vmem:[%s7121_s8 + $0x1b0] sm:$0xf] %v447_v44  ;;  %v575_v44 = vld [vmem:[%s7116_s7 + $0xac0] sm:$0xf] }
  0x7d   : > { %450 = vst [vmem:[%s7121_s8 + $0x1b4] sm:$0xf] %v449_v45  ;;  %v577_v45 = vld [vmem:[%s7116_s7 + $0xad0] sm:$0xf] }
  0x7e   : > { %452 = vst [vmem:[%s7121_s8 + $0x1b8] sm:$0xf] %v451_v46  ;;  %v579_v46 = vld [vmem:[%s7116_s7 + $0xae0] sm:$0xf] }
  0x7f   : > { %454 = vst [vmem:[%s7121_s8 + $0x1bc] sm:$0xf] %v453_v47  ;;  %v581_v47 = vld [vmem:[%s7116_s7 + $0xaf0] sm:$0xf] }
  0x80   : > { %456 = vst [vmem:[%s7121_s8 + $0x1c0] sm:$0xf] %v455_v48  ;;  %v583_v48 = vld [vmem:[%s7116_s7 + $0xb00] sm:$0xf] }
  0x81   : > { %458 = vst [vmem:[%s7121_s8 + $0x1c4] sm:$0xf] %v457_v49  ;;  %v585_v49 = vld [vmem:[%s7116_s7 + $0xb10] sm:$0xf] }
  0x82   : > { %460 = vst [vmem:[%s7121_s8 + $0x1c8] sm:$0xf] %v459_v50  ;;  %v587_v50 = vld [vmem:[%s7116_s7 + $0xb20] sm:$0xf] }
  0x83   : > { %462 = vst [vmem:[%s7121_s8 + $0x1cc] sm:$0xf] %v461_v51  ;;  %v589_v51 = vld [vmem:[%s7116_s7 + $0xb30] sm:$0xf] }
  0x84   : > { %464 = vst [vmem:[%s7121_s8 + $0x1d0] sm:$0xf] %v463_v52  ;;  %v591_v52 = vld [vmem:[%s7116_s7 + $0xb40] sm:$0xf] }
  0x85   : > { %466 = vst [vmem:[%s7121_s8 + $0x1d4] sm:$0xf] %v465_v53  ;;  %v593_v53 = vld [vmem:[%s7116_s7 + $0xb50] sm:$0xf] }
  0x86   : > { %468 = vst [vmem:[%s7121_s8 + $0x1d8] sm:$0xf] %v467_v54  ;;  %v595_v54 = vld [vmem:[%s7116_s7 + $0xb60] sm:$0xf] }
  0x87   : > { %470 = vst [vmem:[%s7121_s8 + $0x1dc] sm:$0xf] %v469_v55  ;;  %v597_v55 = vld [vmem:[%s7116_s7 + $0xb70] sm:$0xf] }
  0x88   : > { %472 = vst [vmem:[%s7121_s8 + $0x1e0] sm:$0xf] %v471_v56  ;;  %v599_v56 = vld [vmem:[%s7116_s7 + $0xb80] sm:$0xf] }
  0x89   : > { %474 = vst [vmem:[%s7121_s8 + $0x1e4] sm:$0xf] %v473_v57  ;;  %v601_v57 = vld [vmem:[%s7116_s7 + $0xb90] sm:$0xf] }
  0x8a   : > { %476 = vst [vmem:[%s7121_s8 + $0x1e8] sm:$0xf] %v475_v58  ;;  %v603_v58 = vld [vmem:[%s7116_s7 + $0xba0] sm:$0xf] }
  0x8b   : > { %478 = vst [vmem:[%s7121_s8 + $0x1ec] sm:$0xf] %v477_v59  ;;  %v605_v59 = vld [vmem:[%s7116_s7 + $0xbb0] sm:$0xf] }
  0x8c   : > { %480 = vst [vmem:[%s7121_s8 + $0x1f0] sm:$0xf] %v479_v60  ;;  %v607_v60 = vld [vmem:[%s7116_s7 + $0xbc0] sm:$0xf] }
  0x8d   : > { %482 = vst [vmem:[%s7121_s8 + $0x1f4] sm:$0xf] %v481_v61  ;;  %v609_v61 = vld [vmem:[%s7116_s7 + $0xbd0] sm:$0xf] }
  0x8e   : > { %484 = vst [vmem:[%s7121_s8 + $0x1f8] sm:$0xf] %v483_v62  ;;  %v611_v62 = vld [vmem:[%s7116_s7 + $0xbe0] sm:$0xf] }
  0x8f   : > { %486 = vst [vmem:[%s7121_s8 + $0x1fc] sm:$0xf] %v485_v63  ;;  %v613_v63 = vld [vmem:[%s7116_s7 + $0xbf0] sm:$0xf] }
  0x90   : > { %488 = vst [vmem:[%s7121_s8 + $0x200] sm:$0xf] %v487_v0  ;;  %v615_v0 = vld [vmem:[%s7116_s7 + $0xc00] sm:$0xf] }
  0x91   : > { %490 = vst [vmem:[%s7121_s8 + $0x204] sm:$0xf] %v489_v1  ;;  %v617_v1 = vld [vmem:[%s7116_s7 + $0xc10] sm:$0xf] }
  0x92   : > { %492 = vst [vmem:[%s7121_s8 + $0x208] sm:$0xf] %v491_v2  ;;  %v619_v2 = vld [vmem:[%s7116_s7 + $0xc20] sm:$0xf] }
  0x93   : > { %494 = vst [vmem:[%s7121_s8 + $0x20c] sm:$0xf] %v493_v3  ;;  %v621_v3 = vld [vmem:[%s7116_s7 + $0xc30] sm:$0xf] }
  0x94   : > { %496 = vst [vmem:[%s7121_s8 + $0x210] sm:$0xf] %v495_v4  ;;  %v623_v4 = vld [vmem:[%s7116_s7 + $0xc40] sm:$0xf] }
  0x95   : > { %498 = vst [vmem:[%s7121_s8 + $0x214] sm:$0xf] %v497_v5  ;;  %v625_v5 = vld [vmem:[%s7116_s7 + $0xc50] sm:$0xf] }
  0x96   : > { %500 = vst [vmem:[%s7121_s8 + $0x218] sm:$0xf] %v499_v6  ;;  %v627_v6 = vld [vmem:[%s7116_s7 + $0xc60] sm:$0xf] }
  0x97   : > { %502 = vst [vmem:[%s7121_s8 + $0x21c] sm:$0xf] %v501_v7  ;;  %v629_v7 = vld [vmem:[%s7116_s7 + $0xc70] sm:$0xf] }
  0x98   : > { %504 = vst [vmem:[%s7121_s8 + $0x220] sm:$0xf] %v503_v8  ;;  %v631_v8 = vld [vmem:[%s7116_s7 + $0xc80] sm:$0xf] }
  0x99   : > { %506 = vst [vmem:[%s7121_s8 + $0x224] sm:$0xf] %v505_v9  ;;  %v633_v9 = vld [vmem:[%s7116_s7 + $0xc90] sm:$0xf] }
  0x9a   : > { %508 = vst [vmem:[%s7121_s8 + $0x228] sm:$0xf] %v507_v10  ;;  %v635_v10 = vld [vmem:[%s7116_s7 + $0xca0] sm:$0xf] }
  0x9b   : > { %510 = vst [vmem:[%s7121_s8 + $0x22c] sm:$0xf] %v509_v11  ;;  %v637_v11 = vld [vmem:[%s7116_s7 + $0xcb0] sm:$0xf] }
  0x9c   : > { %512 = vst [vmem:[%s7121_s8 + $0x230] sm:$0xf] %v511_v12  ;;  %v639_v12 = vld [vmem:[%s7116_s7 + $0xcc0] sm:$0xf] }
  0x9d   : > { %514 = vst [vmem:[%s7121_s8 + $0x234] sm:$0xf] %v513_v13  ;;  %v641_v13 = vld [vmem:[%s7116_s7 + $0xcd0] sm:$0xf] }
  0x9e   : > { %516 = vst [vmem:[%s7121_s8 + $0x238] sm:$0xf] %v515_v14  ;;  %v643_v14 = vld [vmem:[%s7116_s7 + $0xce0] sm:$0xf] }
  0x9f   : > { %518 = vst [vmem:[%s7121_s8 + $0x23c] sm:$0xf] %v517_v15  ;;  %v645_v15 = vld [vmem:[%s7116_s7 + $0xcf0] sm:$0xf] }
  0xa0   : > { %520 = vst [vmem:[%s7121_s8 + $0x240] sm:$0xf] %v519_v16  ;;  %v647_v16 = vld [vmem:[%s7116_s7 + $0xd00] sm:$0xf] }
  0xa1   : > { %522 = vst [vmem:[%s7121_s8 + $0x244] sm:$0xf] %v521_v17  ;;  %v649_v17 = vld [vmem:[%s7116_s7 + $0xd10] sm:$0xf] }
  0xa2   : > { %524 = vst [vmem:[%s7121_s8 + $0x248] sm:$0xf] %v523_v18  ;;  %v651_v18 = vld [vmem:[%s7116_s7 + $0xd20] sm:$0xf] }
  0xa3   : > { %526 = vst [vmem:[%s7121_s8 + $0x24c] sm:$0xf] %v525_v19  ;;  %v653_v19 = vld [vmem:[%s7116_s7 + $0xd30] sm:$0xf] }
  0xa4   : > { %528 = vst [vmem:[%s7121_s8 + $0x250] sm:$0xf] %v527_v20  ;;  %v655_v20 = vld [vmem:[%s7116_s7 + $0xd40] sm:$0xf] }
  0xa5   : > { %530 = vst [vmem:[%s7121_s8 + $0x254] sm:$0xf] %v529_v21  ;;  %v657_v21 = vld [vmem:[%s7116_s7 + $0xd50] sm:$0xf] }
  0xa6   : > { %532 = vst [vmem:[%s7121_s8 + $0x258] sm:$0xf] %v531_v22  ;;  %v659_v22 = vld [vmem:[%s7116_s7 + $0xd60] sm:$0xf] }
  0xa7   : > { %534 = vst [vmem:[%s7121_s8 + $0x25c] sm:$0xf] %v533_v23  ;;  %v661_v23 = vld [vmem:[%s7116_s7 + $0xd70] sm:$0xf] }
  0xa8   : > { %536 = vst [vmem:[%s7121_s8 + $0x260] sm:$0xf] %v535_v24  ;;  %v663_v24 = vld [vmem:[%s7116_s7 + $0xd80] sm:$0xf] }
  0xa9   : > { %538 = vst [vmem:[%s7121_s8 + $0x264] sm:$0xf] %v537_v25  ;;  %v665_v25 = vld [vmem:[%s7116_s7 + $0xd90] sm:$0xf] }
  0xaa   : > { %540 = vst [vmem:[%s7121_s8 + $0x268] sm:$0xf] %v539_v26  ;;  %v667_v26 = vld [vmem:[%s7116_s7 + $0xda0] sm:$0xf] }
  0xab   : > { %542 = vst [vmem:[%s7121_s8 + $0x26c] sm:$0xf] %v541_v27  ;;  %v669_v27 = vld [vmem:[%s7116_s7 + $0xdb0] sm:$0xf] }
  0xac   : > { %544 = vst [vmem:[%s7121_s8 + $0x270] sm:$0xf] %v543_v28  ;;  %v671_v28 = vld [vmem:[%s7116_s7 + $0xdc0] sm:$0xf] }
  0xad   : > { %546 = vst [vmem:[%s7121_s8 + $0x274] sm:$0xf] %v545_v29  ;;  %v673_v29 = vld [vmem:[%s7116_s7 + $0xdd0] sm:$0xf] }
  0xae   : > { %548 = vst [vmem:[%s7121_s8 + $0x278] sm:$0xf] %v547_v30  ;;  %v675_v30 = vld [vmem:[%s7116_s7 + $0xde0] sm:$0xf] }
  0xaf   : > { %550 = vst [vmem:[%s7121_s8 + $0x27c] sm:$0xf] %v549_v31  ;;  %v677_v31 = vld [vmem:[%s7116_s7 + $0xdf0] sm:$0xf] }
  0xb0   : > { %552 = vst [vmem:[%s7121_s8 + $0x280] sm:$0xf] %v551_v32  ;;  %v679_v32 = vld [vmem:[%s7116_s7 + $0xe00] sm:$0xf] }
  0xb1   : > { %554 = vst [vmem:[%s7121_s8 + $0x284] sm:$0xf] %v553_v33  ;;  %v681_v33 = vld [vmem:[%s7116_s7 + $0xe10] sm:$0xf] }
  0xb2   : > { %556 = vst [vmem:[%s7121_s8 + $0x288] sm:$0xf] %v555_v34  ;;  %v683_v34 = vld [vmem:[%s7116_s7 + $0xe20] sm:$0xf] }
  0xb3   : > { %558 = vst [vmem:[%s7121_s8 + $0x28c] sm:$0xf] %v557_v35  ;;  %v685_v35 = vld [vmem:[%s7116_s7 + $0xe30] sm:$0xf] }
  0xb4   : > { %560 = vst [vmem:[%s7121_s8 + $0x290] sm:$0xf] %v559_v36  ;;  %v687_v36 = vld [vmem:[%s7116_s7 + $0xe40] sm:$0xf] }
  0xb5   : > { %562 = vst [vmem:[%s7121_s8 + $0x294] sm:$0xf] %v561_v37  ;;  %v689_v37 = vld [vmem:[%s7116_s7 + $0xe50] sm:$0xf] }
  0xb6   : > { %564 = vst [vmem:[%s7121_s8 + $0x298] sm:$0xf] %v563_v38  ;;  %v691_v38 = vld [vmem:[%s7116_s7 + $0xe60] sm:$0xf] }
  0xb7   : > { %566 = vst [vmem:[%s7121_s8 + $0x29c] sm:$0xf] %v565_v39  ;;  %v693_v39 = vld [vmem:[%s7116_s7 + $0xe70] sm:$0xf] }
  0xb8   : > { %568 = vst [vmem:[%s7121_s8 + $0x2a0] sm:$0xf] %v567_v40  ;;  %v695_v40 = vld [vmem:[%s7116_s7 + $0xe80] sm:$0xf] }
  0xb9   : > { %570 = vst [vmem:[%s7121_s8 + $0x2a4] sm:$0xf] %v569_v41  ;;  %v697_v41 = vld [vmem:[%s7116_s7 + $0xe90] sm:$0xf] }
  0xba   : > { %572 = vst [vmem:[%s7121_s8 + $0x2a8] sm:$0xf] %v571_v42  ;;  %v699_v42 = vld [vmem:[%s7116_s7 + $0xea0] sm:$0xf] }
  0xbb   : > { %574 = vst [vmem:[%s7121_s8 + $0x2ac] sm:$0xf] %v573_v43  ;;  %v701_v43 = vld [vmem:[%s7116_s7 + $0xeb0] sm:$0xf] }
  0xbc   : > { %576 = vst [vmem:[%s7121_s8 + $0x2b0] sm:$0xf] %v575_v44  ;;  %v703_v44 = vld [vmem:[%s7116_s7 + $0xec0] sm:$0xf] }
  0xbd   : > { %578 = vst [vmem:[%s7121_s8 + $0x2b4] sm:$0xf] %v577_v45  ;;  %v705_v45 = vld [vmem:[%s7116_s7 + $0xed0] sm:$0xf] }
  0xbe   : > { %580 = vst [vmem:[%s7121_s8 + $0x2b8] sm:$0xf] %v579_v46  ;;  %v707_v46 = vld [vmem:[%s7116_s7 + $0xee0] sm:$0xf] }
  0xbf   : > { %582 = vst [vmem:[%s7121_s8 + $0x2bc] sm:$0xf] %v581_v47  ;;  %v709_v47 = vld [vmem:[%s7116_s7 + $0xef0] sm:$0xf] }
  0xc0   : > { %584 = vst [vmem:[%s7121_s8 + $0x2c0] sm:$0xf] %v583_v48  ;;  %v711_v48 = vld [vmem:[%s7116_s7 + $0xf00] sm:$0xf] }
  0xc1   : > { %586 = vst [vmem:[%s7121_s8 + $0x2c4] sm:$0xf] %v585_v49  ;;  %v713_v49 = vld [vmem:[%s7116_s7 + $0xf10] sm:$0xf] }
  0xc2   : > { %588 = vst [vmem:[%s7121_s8 + $0x2c8] sm:$0xf] %v587_v50  ;;  %v715_v50 = vld [vmem:[%s7116_s7 + $0xf20] sm:$0xf] }
  0xc3   : > { %590 = vst [vmem:[%s7121_s8 + $0x2cc] sm:$0xf] %v589_v51  ;;  %v717_v51 = vld [vmem:[%s7116_s7 + $0xf30] sm:$0xf] }
  0xc4   : > { %592 = vst [vmem:[%s7121_s8 + $0x2d0] sm:$0xf] %v591_v52  ;;  %v719_v52 = vld [vmem:[%s7116_s7 + $0xf40] sm:$0xf] }
  0xc5   : > { %594 = vst [vmem:[%s7121_s8 + $0x2d4] sm:$0xf] %v593_v53  ;;  %v721_v53 = vld [vmem:[%s7116_s7 + $0xf50] sm:$0xf] }
  0xc6   : > { %596 = vst [vmem:[%s7121_s8 + $0x2d8] sm:$0xf] %v595_v54  ;;  %v723_v54 = vld [vmem:[%s7116_s7 + $0xf60] sm:$0xf] }
  0xc7   : > { %598 = vst [vmem:[%s7121_s8 + $0x2dc] sm:$0xf] %v597_v55  ;;  %v725_v55 = vld [vmem:[%s7116_s7 + $0xf70] sm:$0xf] }
  0xc8   : > { %600 = vst [vmem:[%s7121_s8 + $0x2e0] sm:$0xf] %v599_v56  ;;  %v727_v56 = vld [vmem:[%s7116_s7 + $0xf80] sm:$0xf] }
  0xc9   : > { %602 = vst [vmem:[%s7121_s8 + $0x2e4] sm:$0xf] %v601_v57  ;;  %v729_v57 = vld [vmem:[%s7116_s7 + $0xf90] sm:$0xf] }
  0xca   : > { %604 = vst [vmem:[%s7121_s8 + $0x2e8] sm:$0xf] %v603_v58  ;;  %v731_v58 = vld [vmem:[%s7116_s7 + $0xfa0] sm:$0xf] }
  0xcb   : > { %606 = vst [vmem:[%s7121_s8 + $0x2ec] sm:$0xf] %v605_v59  ;;  %v733_v59 = vld [vmem:[%s7116_s7 + $0xfb0] sm:$0xf] }
  0xcc   : > { %608 = vst [vmem:[%s7121_s8 + $0x2f0] sm:$0xf] %v607_v60  ;;  %v735_v60 = vld [vmem:[%s7116_s7 + $0xfc0] sm:$0xf] }
  0xcd   : > { %610 = vst [vmem:[%s7121_s8 + $0x2f4] sm:$0xf] %v609_v61  ;;  %v737_v61 = vld [vmem:[%s7116_s7 + $0xfd0] sm:$0xf] }
  0xce   : > { %612 = vst [vmem:[%s7121_s8 + $0x2f8] sm:$0xf] %v611_v62  ;;  %v739_v62 = vld [vmem:[%s7116_s7 + $0xfe0] sm:$0xf] }
  0xcf   : > { %614 = vst [vmem:[%s7121_s8 + $0x2fc] sm:$0xf] %v613_v63  ;;  %v741_v63 = vld [vmem:[%s7116_s7 + $0xff0] sm:$0xf] }
  0xd0   : > { %616 = vst [vmem:[%s7121_s8 + $0x300] sm:$0xf] %v615_v0  ;;  %v743_v0 = vld [vmem:[%s7116_s7 + $0x1000] sm:$0xf] }
  0xd1   : > { %618 = vst [vmem:[%s7121_s8 + $0x304] sm:$0xf] %v617_v1  ;;  %v745_v1 = vld [vmem:[%s7116_s7 + $0x1010] sm:$0xf] }
  0xd2   : > { %620 = vst [vmem:[%s7121_s8 + $0x308] sm:$0xf] %v619_v2  ;;  %v747_v2 = vld [vmem:[%s7116_s7 + $0x1020] sm:$0xf] }
  0xd3   : > { %622 = vst [vmem:[%s7121_s8 + $0x30c] sm:$0xf] %v621_v3  ;;  %v749_v3 = vld [vmem:[%s7116_s7 + $0x1030] sm:$0xf] }
  0xd4   : > { %624 = vst [vmem:[%s7121_s8 + $0x310] sm:$0xf] %v623_v4  ;;  %v751_v4 = vld [vmem:[%s7116_s7 + $0x1040] sm:$0xf] }
  0xd5   : > { %626 = vst [vmem:[%s7121_s8 + $0x314] sm:$0xf] %v625_v5  ;;  %v753_v5 = vld [vmem:[%s7116_s7 + $0x1050] sm:$0xf] }
  0xd6   : > { %628 = vst [vmem:[%s7121_s8 + $0x318] sm:$0xf] %v627_v6  ;;  %v755_v6 = vld [vmem:[%s7116_s7 + $0x1060] sm:$0xf] }
  0xd7   : > { %630 = vst [vmem:[%s7121_s8 + $0x31c] sm:$0xf] %v629_v7  ;;  %v757_v7 = vld [vmem:[%s7116_s7 + $0x1070] sm:$0xf] }
  0xd8   : > { %632 = vst [vmem:[%s7121_s8 + $0x320] sm:$0xf] %v631_v8  ;;  %v759_v8 = vld [vmem:[%s7116_s7 + $0x1080] sm:$0xf] }
  0xd9   : > { %634 = vst [vmem:[%s7121_s8 + $0x324] sm:$0xf] %v633_v9  ;;  %v761_v9 = vld [vmem:[%s7116_s7 + $0x1090] sm:$0xf] }
  0xda   : > { %636 = vst [vmem:[%s7121_s8 + $0x328] sm:$0xf] %v635_v10  ;;  %v763_v10 = vld [vmem:[%s7116_s7 + $0x10a0] sm:$0xf] }
  0xdb   : > { %638 = vst [vmem:[%s7121_s8 + $0x32c] sm:$0xf] %v637_v11  ;;  %v765_v11 = vld [vmem:[%s7116_s7 + $0x10b0] sm:$0xf] }
  0xdc   : > { %640 = vst [vmem:[%s7121_s8 + $0x330] sm:$0xf] %v639_v12  ;;  %v767_v12 = vld [vmem:[%s7116_s7 + $0x10c0] sm:$0xf] }
  0xdd   : > { %642 = vst [vmem:[%s7121_s8 + $0x334] sm:$0xf] %v641_v13  ;;  %v769_v13 = vld [vmem:[%s7116_s7 + $0x10d0] sm:$0xf] }
  0xde   : > { %644 = vst [vmem:[%s7121_s8 + $0x338] sm:$0xf] %v643_v14  ;;  %v771_v14 = vld [vmem:[%s7116_s7 + $0x10e0] sm:$0xf] }
  0xdf   : > { %646 = vst [vmem:[%s7121_s8 + $0x33c] sm:$0xf] %v645_v15  ;;  %v773_v15 = vld [vmem:[%s7116_s7 + $0x10f0] sm:$0xf] }
  0xe0   : > { %648 = vst [vmem:[%s7121_s8 + $0x340] sm:$0xf] %v647_v16  ;;  %v775_v16 = vld [vmem:[%s7116_s7 + $0x1100] sm:$0xf] }
  0xe1   : > { %650 = vst [vmem:[%s7121_s8 + $0x344] sm:$0xf] %v649_v17  ;;  %v777_v17 = vld [vmem:[%s7116_s7 + $0x1110] sm:$0xf] }
  0xe2   : > { %652 = vst [vmem:[%s7121_s8 + $0x348] sm:$0xf] %v651_v18  ;;  %v779_v18 = vld [vmem:[%s7116_s7 + $0x1120] sm:$0xf] }
  0xe3   : > { %654 = vst [vmem:[%s7121_s8 + $0x34c] sm:$0xf] %v653_v19  ;;  %v781_v19 = vld [vmem:[%s7116_s7 + $0x1130] sm:$0xf] }
  0xe4   : > { %656 = vst [vmem:[%s7121_s8 + $0x350] sm:$0xf] %v655_v20  ;;  %v783_v20 = vld [vmem:[%s7116_s7 + $0x1140] sm:$0xf] }
  0xe5   : > { %658 = vst [vmem:[%s7121_s8 + $0x354] sm:$0xf] %v657_v21  ;;  %v785_v21 = vld [vmem:[%s7116_s7 + $0x1150] sm:$0xf] }
  0xe6   : > { %660 = vst [vmem:[%s7121_s8 + $0x358] sm:$0xf] %v659_v22  ;;  %v787_v22 = vld [vmem:[%s7116_s7 + $0x1160] sm:$0xf] }
  0xe7   : > { %662 = vst [vmem:[%s7121_s8 + $0x35c] sm:$0xf] %v661_v23  ;;  %v789_v23 = vld [vmem:[%s7116_s7 + $0x1170] sm:$0xf] }
  0xe8   : > { %664 = vst [vmem:[%s7121_s8 + $0x360] sm:$0xf] %v663_v24  ;;  %v791_v24 = vld [vmem:[%s7116_s7 + $0x1180] sm:$0xf] }
  0xe9   : > { %666 = vst [vmem:[%s7121_s8 + $0x364] sm:$0xf] %v665_v25  ;;  %v793_v25 = vld [vmem:[%s7116_s7 + $0x1190] sm:$0xf] }
  0xea   : > { %668 = vst [vmem:[%s7121_s8 + $0x368] sm:$0xf] %v667_v26  ;;  %v795_v26 = vld [vmem:[%s7116_s7 + $0x11a0] sm:$0xf] }
  0xeb   : > { %670 = vst [vmem:[%s7121_s8 + $0x36c] sm:$0xf] %v669_v27  ;;  %v797_v27 = vld [vmem:[%s7116_s7 + $0x11b0] sm:$0xf] }
  0xec   : > { %672 = vst [vmem:[%s7121_s8 + $0x370] sm:$0xf] %v671_v28  ;;  %v799_v28 = vld [vmem:[%s7116_s7 + $0x11c0] sm:$0xf] }
  0xed   : > { %674 = vst [vmem:[%s7121_s8 + $0x374] sm:$0xf] %v673_v29  ;;  %v801_v29 = vld [vmem:[%s7116_s7 + $0x11d0] sm:$0xf] }
  0xee   : > { %676 = vst [vmem:[%s7121_s8 + $0x378] sm:$0xf] %v675_v30  ;;  %v803_v30 = vld [vmem:[%s7116_s7 + $0x11e0] sm:$0xf] }
  0xef   : > { %678 = vst [vmem:[%s7121_s8 + $0x37c] sm:$0xf] %v677_v31  ;;  %v805_v31 = vld [vmem:[%s7116_s7 + $0x11f0] sm:$0xf] }
  0xf0   : > { %680 = vst [vmem:[%s7121_s8 + $0x380] sm:$0xf] %v679_v32  ;;  %v807_v32 = vld [vmem:[%s7116_s7 + $0x1200] sm:$0xf] }
  0xf1   : > { %682 = vst [vmem:[%s7121_s8 + $0x384] sm:$0xf] %v681_v33  ;;  %v809_v33 = vld [vmem:[%s7116_s7 + $0x1210] sm:$0xf] }
  0xf2   : > { %684 = vst [vmem:[%s7121_s8 + $0x388] sm:$0xf] %v683_v34  ;;  %v811_v34 = vld [vmem:[%s7116_s7 + $0x1220] sm:$0xf] }
  0xf3   : > { %686 = vst [vmem:[%s7121_s8 + $0x38c] sm:$0xf] %v685_v35  ;;  %v813_v35 = vld [vmem:[%s7116_s7 + $0x1230] sm:$0xf] }
  0xf4   : > { %688 = vst [vmem:[%s7121_s8 + $0x390] sm:$0xf] %v687_v36  ;;  %v815_v36 = vld [vmem:[%s7116_s7 + $0x1240] sm:$0xf] }
  0xf5   : > { %690 = vst [vmem:[%s7121_s8 + $0x394] sm:$0xf] %v689_v37  ;;  %v817_v37 = vld [vmem:[%s7116_s7 + $0x1250] sm:$0xf] }
  0xf6   : > { %692 = vst [vmem:[%s7121_s8 + $0x398] sm:$0xf] %v691_v38  ;;  %v819_v38 = vld [vmem:[%s7116_s7 + $0x1260] sm:$0xf] }
  0xf7   : > { %694 = vst [vmem:[%s7121_s8 + $0x39c] sm:$0xf] %v693_v39  ;;  %v821_v39 = vld [vmem:[%s7116_s7 + $0x1270] sm:$0xf] }
  0xf8   : > { %696 = vst [vmem:[%s7121_s8 + $0x3a0] sm:$0xf] %v695_v40  ;;  %v823_v40 = vld [vmem:[%s7116_s7 + $0x1280] sm:$0xf] }
  0xf9   : > { %698 = vst [vmem:[%s7121_s8 + $0x3a4] sm:$0xf] %v697_v41  ;;  %v825_v41 = vld [vmem:[%s7116_s7 + $0x1290] sm:$0xf] }
  0xfa   : > { %700 = vst [vmem:[%s7121_s8 + $0x3a8] sm:$0xf] %v699_v42  ;;  %v827_v42 = vld [vmem:[%s7116_s7 + $0x12a0] sm:$0xf] }
  0xfb   : > { %702 = vst [vmem:[%s7121_s8 + $0x3ac] sm:$0xf] %v701_v43  ;;  %v829_v43 = vld [vmem:[%s7116_s7 + $0x12b0] sm:$0xf] }
  0xfc   : > { %704 = vst [vmem:[%s7121_s8 + $0x3b0] sm:$0xf] %v703_v44  ;;  %v831_v44 = vld [vmem:[%s7116_s7 + $0x12c0] sm:$0xf] }
  0xfd   : > { %706 = vst [vmem:[%s7121_s8 + $0x3b4] sm:$0xf] %v705_v45  ;;  %v833_v45 = vld [vmem:[%s7116_s7 + $0x12d0] sm:$0xf] }
  0xfe   : > { %708 = vst [vmem:[%s7121_s8 + $0x3b8] sm:$0xf] %v707_v46  ;;  %v835_v46 = vld [vmem:[%s7116_s7 + $0x12e0] sm:$0xf] }
  0xff   : > { %710 = vst [vmem:[%s7121_s8 + $0x3bc] sm:$0xf] %v709_v47  ;;  %v837_v47 = vld [vmem:[%s7116_s7 + $0x12f0] sm:$0xf] }
 0x100   : > { %712 = vst [vmem:[%s7121_s8 + $0x3c0] sm:$0xf] %v711_v48  ;;  %v839_v48 = vld [vmem:[%s7116_s7 + $0x1300] sm:$0xf] }
 0x101   : > { %714 = vst [vmem:[%s7121_s8 + $0x3c4] sm:$0xf] %v713_v49  ;;  %v841_v49 = vld [vmem:[%s7116_s7 + $0x1310] sm:$0xf] }
 0x102   : > { %716 = vst [vmem:[%s7121_s8 + $0x3c8] sm:$0xf] %v715_v50  ;;  %v843_v50 = vld [vmem:[%s7116_s7 + $0x1320] sm:$0xf] }
 0x103   : > { %718 = vst [vmem:[%s7121_s8 + $0x3cc] sm:$0xf] %v717_v51  ;;  %v845_v51 = vld [vmem:[%s7116_s7 + $0x1330] sm:$0xf] }
 0x104   : > { %720 = vst [vmem:[%s7121_s8 + $0x3d0] sm:$0xf] %v719_v52  ;;  %v847_v52 = vld [vmem:[%s7116_s7 + $0x1340] sm:$0xf] }
 0x105   : > { %722 = vst [vmem:[%s7121_s8 + $0x3d4] sm:$0xf] %v721_v53  ;;  %v849_v53 = vld [vmem:[%s7116_s7 + $0x1350] sm:$0xf] }
 0x106   : > { %724 = vst [vmem:[%s7121_s8 + $0x3d8] sm:$0xf] %v723_v54  ;;  %v851_v54 = vld [vmem:[%s7116_s7 + $0x1360] sm:$0xf] }
 0x107   : > { %726 = vst [vmem:[%s7121_s8 + $0x3dc] sm:$0xf] %v725_v55  ;;  %v853_v55 = vld [vmem:[%s7116_s7 + $0x1370] sm:$0xf] }
 0x108   : > { %728 = vst [vmem:[%s7121_s8 + $0x3e0] sm:$0xf] %v727_v56  ;;  %v855_v56 = vld [vmem:[%s7116_s7 + $0x1380] sm:$0xf] }
 0x109   : > { %730 = vst [vmem:[%s7121_s8 + $0x3e4] sm:$0xf] %v729_v57  ;;  %v857_v57 = vld [vmem:[%s7116_s7 + $0x1390] sm:$0xf] }
 0x10a   : > { %732 = vst [vmem:[%s7121_s8 + $0x3e8] sm:$0xf] %v731_v58  ;;  %v859_v58 = vld [vmem:[%s7116_s7 + $0x13a0] sm:$0xf] }
 0x10b   : > { %734 = vst [vmem:[%s7121_s8 + $0x3ec] sm:$0xf] %v733_v59  ;;  %v861_v59 = vld [vmem:[%s7116_s7 + $0x13b0] sm:$0xf] }
 0x10c   : > { %736 = vst [vmem:[%s7121_s8 + $0x3f0] sm:$0xf] %v735_v60  ;;  %v863_v60 = vld [vmem:[%s7116_s7 + $0x13c0] sm:$0xf] }
 0x10d   : > { %738 = vst [vmem:[%s7121_s8 + $0x3f4] sm:$0xf] %v737_v61  ;;  %v865_v61 = vld [vmem:[%s7116_s7 + $0x13d0] sm:$0xf] }
 0x10e   : > { %740 = vst [vmem:[%s7121_s8 + $0x3f8] sm:$0xf] %v739_v62  ;;  %v867_v62 = vld [vmem:[%s7116_s7 + $0x13e0] sm:$0xf] }
 0x10f   : > { %742 = vst [vmem:[%s7121_s8 + $0x3fc] sm:$0xf] %v741_v63  ;;  %v869_v63 = vld [vmem:[%s7116_s7 + $0x13f0] sm:$0xf] }
 0x110   : > { %744 = vst [vmem:[%s7121_s8 + $0x400] sm:$0xf] %v743_v0  ;;  %v871_v0 = vld [vmem:[%s7116_s7 + $0x1400] sm:$0xf] }
 0x111   : > { %746 = vst [vmem:[%s7121_s8 + $0x404] sm:$0xf] %v745_v1  ;;  %v873_v1 = vld [vmem:[%s7116_s7 + $0x1410] sm:$0xf] }
 0x112   : > { %748 = vst [vmem:[%s7121_s8 + $0x408] sm:$0xf] %v747_v2  ;;  %v875_v2 = vld [vmem:[%s7116_s7 + $0x1420] sm:$0xf] }
 0x113   : > { %750 = vst [vmem:[%s7121_s8 + $0x40c] sm:$0xf] %v749_v3  ;;  %v877_v3 = vld [vmem:[%s7116_s7 + $0x1430] sm:$0xf] }
 0x114   : > { %752 = vst [vmem:[%s7121_s8 + $0x410] sm:$0xf] %v751_v4  ;;  %v879_v4 = vld [vmem:[%s7116_s7 + $0x1440] sm:$0xf] }
 0x115   : > { %754 = vst [vmem:[%s7121_s8 + $0x414] sm:$0xf] %v753_v5  ;;  %v881_v5 = vld [vmem:[%s7116_s7 + $0x1450] sm:$0xf] }
 0x116   : > { %756 = vst [vmem:[%s7121_s8 + $0x418] sm:$0xf] %v755_v6  ;;  %v883_v6 = vld [vmem:[%s7116_s7 + $0x1460] sm:$0xf] }
 0x117   : > { %758 = vst [vmem:[%s7121_s8 + $0x41c] sm:$0xf] %v757_v7  ;;  %v885_v7 = vld [vmem:[%s7116_s7 + $0x1470] sm:$0xf] }
 0x118   : > { %760 = vst [vmem:[%s7121_s8 + $0x420] sm:$0xf] %v759_v8  ;;  %v887_v8 = vld [vmem:[%s7116_s7 + $0x1480] sm:$0xf] }
 0x119   : > { %762 = vst [vmem:[%s7121_s8 + $0x424] sm:$0xf] %v761_v9  ;;  %v889_v9 = vld [vmem:[%s7116_s7 + $0x1490] sm:$0xf] }
 0x11a   : > { %764 = vst [vmem:[%s7121_s8 + $0x428] sm:$0xf] %v763_v10  ;;  %v891_v10 = vld [vmem:[%s7116_s7 + $0x14a0] sm:$0xf] }
 0x11b   : > { %766 = vst [vmem:[%s7121_s8 + $0x42c] sm:$0xf] %v765_v11  ;;  %v893_v11 = vld [vmem:[%s7116_s7 + $0x14b0] sm:$0xf] }
 0x11c   : > { %768 = vst [vmem:[%s7121_s8 + $0x430] sm:$0xf] %v767_v12  ;;  %v895_v12 = vld [vmem:[%s7116_s7 + $0x14c0] sm:$0xf] }
 0x11d   : > { %770 = vst [vmem:[%s7121_s8 + $0x434] sm:$0xf] %v769_v13  ;;  %v897_v13 = vld [vmem:[%s7116_s7 + $0x14d0] sm:$0xf] }
 0x11e   : > { %772 = vst [vmem:[%s7121_s8 + $0x438] sm:$0xf] %v771_v14  ;;  %v899_v14 = vld [vmem:[%s7116_s7 + $0x14e0] sm:$0xf] }
 0x11f   : > { %774 = vst [vmem:[%s7121_s8 + $0x43c] sm:$0xf] %v773_v15  ;;  %v901_v15 = vld [vmem:[%s7116_s7 + $0x14f0] sm:$0xf] }
 0x120   : > { %776 = vst [vmem:[%s7121_s8 + $0x440] sm:$0xf] %v775_v16  ;;  %v903_v16 = vld [vmem:[%s7116_s7 + $0x1500] sm:$0xf] }
 0x121   : > { %778 = vst [vmem:[%s7121_s8 + $0x444] sm:$0xf] %v777_v17  ;;  %v905_v17 = vld [vmem:[%s7116_s7 + $0x1510] sm:$0xf] }
 0x122   : > { %780 = vst [vmem:[%s7121_s8 + $0x448] sm:$0xf] %v779_v18  ;;  %v907_v18 = vld [vmem:[%s7116_s7 + $0x1520] sm:$0xf] }
 0x123   : > { %782 = vst [vmem:[%s7121_s8 + $0x44c] sm:$0xf] %v781_v19  ;;  %v909_v19 = vld [vmem:[%s7116_s7 + $0x1530] sm:$0xf] }
 0x124   : > { %784 = vst [vmem:[%s7121_s8 + $0x450] sm:$0xf] %v783_v20  ;;  %v911_v20 = vld [vmem:[%s7116_s7 + $0x1540] sm:$0xf] }
 0x125   : > { %786 = vst [vmem:[%s7121_s8 + $0x454] sm:$0xf] %v785_v21  ;;  %v913_v21 = vld [vmem:[%s7116_s7 + $0x1550] sm:$0xf] }
 0x126   : > { %788 = vst [vmem:[%s7121_s8 + $0x458] sm:$0xf] %v787_v22  ;;  %v915_v22 = vld [vmem:[%s7116_s7 + $0x1560] sm:$0xf] }
 0x127   : > { %790 = vst [vmem:[%s7121_s8 + $0x45c] sm:$0xf] %v789_v23  ;;  %v917_v23 = vld [vmem:[%s7116_s7 + $0x1570] sm:$0xf] }
 0x128   : > { %792 = vst [vmem:[%s7121_s8 + $0x460] sm:$0xf] %v791_v24  ;;  %v919_v24 = vld [vmem:[%s7116_s7 + $0x1580] sm:$0xf] }
 0x129   : > { %794 = vst [vmem:[%s7121_s8 + $0x464] sm:$0xf] %v793_v25  ;;  %v921_v25 = vld [vmem:[%s7116_s7 + $0x1590] sm:$0xf] }
 0x12a   : > { %796 = vst [vmem:[%s7121_s8 + $0x468] sm:$0xf] %v795_v26  ;;  %v923_v26 = vld [vmem:[%s7116_s7 + $0x15a0] sm:$0xf] }
 0x12b   : > { %798 = vst [vmem:[%s7121_s8 + $0x46c] sm:$0xf] %v797_v27  ;;  %v925_v27 = vld [vmem:[%s7116_s7 + $0x15b0] sm:$0xf] }
 0x12c   : > { %800 = vst [vmem:[%s7121_s8 + $0x470] sm:$0xf] %v799_v28  ;;  %v927_v28 = vld [vmem:[%s7116_s7 + $0x15c0] sm:$0xf] }
 0x12d   : > { %802 = vst [vmem:[%s7121_s8 + $0x474] sm:$0xf] %v801_v29  ;;  %v929_v29 = vld [vmem:[%s7116_s7 + $0x15d0] sm:$0xf] }
 0x12e   : > { %804 = vst [vmem:[%s7121_s8 + $0x478] sm:$0xf] %v803_v30  ;;  %v931_v30 = vld [vmem:[%s7116_s7 + $0x15e0] sm:$0xf] }
 0x12f   : > { %806 = vst [vmem:[%s7121_s8 + $0x47c] sm:$0xf] %v805_v31  ;;  %v933_v31 = vld [vmem:[%s7116_s7 + $0x15f0] sm:$0xf] }
 0x130   : > { %808 = vst [vmem:[%s7121_s8 + $0x480] sm:$0xf] %v807_v32  ;;  %v935_v32 = vld [vmem:[%s7116_s7 + $0x1600] sm:$0xf] }
 0x131   : > { %810 = vst [vmem:[%s7121_s8 + $0x484] sm:$0xf] %v809_v33  ;;  %v937_v33 = vld [vmem:[%s7116_s7 + $0x1610] sm:$0xf] }
 0x132   : > { %812 = vst [vmem:[%s7121_s8 + $0x488] sm:$0xf] %v811_v34  ;;  %v939_v34 = vld [vmem:[%s7116_s7 + $0x1620] sm:$0xf] }
 0x133   : > { %814 = vst [vmem:[%s7121_s8 + $0x48c] sm:$0xf] %v813_v35  ;;  %v941_v35 = vld [vmem:[%s7116_s7 + $0x1630] sm:$0xf] }
 0x134   : > { %816 = vst [vmem:[%s7121_s8 + $0x490] sm:$0xf] %v815_v36  ;;  %v943_v36 = vld [vmem:[%s7116_s7 + $0x1640] sm:$0xf] }
 0x135   : > { %818 = vst [vmem:[%s7121_s8 + $0x494] sm:$0xf] %v817_v37  ;;  %v945_v37 = vld [vmem:[%s7116_s7 + $0x1650] sm:$0xf] }
 0x136   : > { %820 = vst [vmem:[%s7121_s8 + $0x498] sm:$0xf] %v819_v38  ;;  %v947_v38 = vld [vmem:[%s7116_s7 + $0x1660] sm:$0xf] }
 0x137   : > { %822 = vst [vmem:[%s7121_s8 + $0x49c] sm:$0xf] %v821_v39  ;;  %v949_v39 = vld [vmem:[%s7116_s7 + $0x1670] sm:$0xf] }
 0x138   : > { %824 = vst [vmem:[%s7121_s8 + $0x4a0] sm:$0xf] %v823_v40  ;;  %v951_v40 = vld [vmem:[%s7116_s7 + $0x1680] sm:$0xf] }
 0x139   : > { %826 = vst [vmem:[%s7121_s8 + $0x4a4] sm:$0xf] %v825_v41  ;;  %v953_v41 = vld [vmem:[%s7116_s7 + $0x1690] sm:$0xf] }
 0x13a   : > { %828 = vst [vmem:[%s7121_s8 + $0x4a8] sm:$0xf] %v827_v42  ;;  %v955_v42 = vld [vmem:[%s7116_s7 + $0x16a0] sm:$0xf] }
 0x13b   : > { %830 = vst [vmem:[%s7121_s8 + $0x4ac] sm:$0xf] %v829_v43  ;;  %v957_v43 = vld [vmem:[%s7116_s7 + $0x16b0] sm:$0xf] }
 0x13c   : > { %832 = vst [vmem:[%s7121_s8 + $0x4b0] sm:$0xf] %v831_v44  ;;  %v959_v44 = vld [vmem:[%s7116_s7 + $0x16c0] sm:$0xf] }
 0x13d   : > { %834 = vst [vmem:[%s7121_s8 + $0x4b4] sm:$0xf] %v833_v45  ;;  %v961_v45 = vld [vmem:[%s7116_s7 + $0x16d0] sm:$0xf] }
 0x13e   : > { %836 = vst [vmem:[%s7121_s8 + $0x4b8] sm:$0xf] %v835_v46  ;;  %v963_v46 = vld [vmem:[%s7116_s7 + $0x16e0] sm:$0xf] }
 0x13f   : > { %838 = vst [vmem:[%s7121_s8 + $0x4bc] sm:$0xf] %v837_v47  ;;  %v965_v47 = vld [vmem:[%s7116_s7 + $0x16f0] sm:$0xf] }
 0x140   : > { %840 = vst [vmem:[%s7121_s8 + $0x4c0] sm:$0xf] %v839_v48  ;;  %v967_v48 = vld [vmem:[%s7116_s7 + $0x1700] sm:$0xf] }
 0x141   : > { %842 = vst [vmem:[%s7121_s8 + $0x4c4] sm:$0xf] %v841_v49  ;;  %v969_v49 = vld [vmem:[%s7116_s7 + $0x1710] sm:$0xf] }
 0x142   : > { %844 = vst [vmem:[%s7121_s8 + $0x4c8] sm:$0xf] %v843_v50  ;;  %v971_v50 = vld [vmem:[%s7116_s7 + $0x1720] sm:$0xf] }
 0x143   : > { %846 = vst [vmem:[%s7121_s8 + $0x4cc] sm:$0xf] %v845_v51  ;;  %v973_v51 = vld [vmem:[%s7116_s7 + $0x1730] sm:$0xf] }
 0x144   : > { %848 = vst [vmem:[%s7121_s8 + $0x4d0] sm:$0xf] %v847_v52  ;;  %v975_v52 = vld [vmem:[%s7116_s7 + $0x1740] sm:$0xf] }
 0x145   : > { %850 = vst [vmem:[%s7121_s8 + $0x4d4] sm:$0xf] %v849_v53  ;;  %v977_v53 = vld [vmem:[%s7116_s7 + $0x1750] sm:$0xf] }
 0x146   : > { %852 = vst [vmem:[%s7121_s8 + $0x4d8] sm:$0xf] %v851_v54  ;;  %v979_v54 = vld [vmem:[%s7116_s7 + $0x1760] sm:$0xf] }
 0x147   : > { %854 = vst [vmem:[%s7121_s8 + $0x4dc] sm:$0xf] %v853_v55  ;;  %v981_v55 = vld [vmem:[%s7116_s7 + $0x1770] sm:$0xf] }
 0x148   : > { %856 = vst [vmem:[%s7121_s8 + $0x4e0] sm:$0xf] %v855_v56  ;;  %v983_v56 = vld [vmem:[%s7116_s7 + $0x1780] sm:$0xf] }
 0x149   : > { %858 = vst [vmem:[%s7121_s8 + $0x4e4] sm:$0xf] %v857_v57  ;;  %v985_v57 = vld [vmem:[%s7116_s7 + $0x1790] sm:$0xf] }
 0x14a   : > { %860 = vst [vmem:[%s7121_s8 + $0x4e8] sm:$0xf] %v859_v58  ;;  %v987_v58 = vld [vmem:[%s7116_s7 + $0x17a0] sm:$0xf] }
 0x14b   : > { %862 = vst [vmem:[%s7121_s8 + $0x4ec] sm:$0xf] %v861_v59  ;;  %v989_v59 = vld [vmem:[%s7116_s7 + $0x17b0] sm:$0xf] }
 0x14c   : > { %864 = vst [vmem:[%s7121_s8 + $0x4f0] sm:$0xf] %v863_v60  ;;  %v991_v60 = vld [vmem:[%s7116_s7 + $0x17c0] sm:$0xf] }
 0x14d   : > { %866 = vst [vmem:[%s7121_s8 + $0x4f4] sm:$0xf] %v865_v61  ;;  %v993_v61 = vld [vmem:[%s7116_s7 + $0x17d0] sm:$0xf] }
 0x14e   : > { %868 = vst [vmem:[%s7121_s8 + $0x4f8] sm:$0xf] %v867_v62  ;;  %v995_v62 = vld [vmem:[%s7116_s7 + $0x17e0] sm:$0xf] }
 0x14f   : > { %870 = vst [vmem:[%s7121_s8 + $0x4fc] sm:$0xf] %v869_v63  ;;  %v997_v63 = vld [vmem:[%s7116_s7 + $0x17f0] sm:$0xf] }
 0x150   : > { %872 = vst [vmem:[%s7121_s8 + $0x500] sm:$0xf] %v871_v0  ;;  %v999_v0 = vld [vmem:[%s7116_s7 + $0x1800] sm:$0xf] }
 0x151   : > { %874 = vst [vmem:[%s7121_s8 + $0x504] sm:$0xf] %v873_v1  ;;  %v1001_v1 = vld [vmem:[%s7116_s7 + $0x1810] sm:$0xf] }
 0x152   : > { %876 = vst [vmem:[%s7121_s8 + $0x508] sm:$0xf] %v875_v2  ;;  %v1003_v2 = vld [vmem:[%s7116_s7 + $0x1820] sm:$0xf] }
 0x153   : > { %878 = vst [vmem:[%s7121_s8 + $0x50c] sm:$0xf] %v877_v3  ;;  %v1005_v3 = vld [vmem:[%s7116_s7 + $0x1830] sm:$0xf] }
 0x154   : > { %880 = vst [vmem:[%s7121_s8 + $0x510] sm:$0xf] %v879_v4  ;;  %v1007_v4 = vld [vmem:[%s7116_s7 + $0x1840] sm:$0xf] }
 0x155   : > { %882 = vst [vmem:[%s7121_s8 + $0x514] sm:$0xf] %v881_v5  ;;  %v1009_v5 = vld [vmem:[%s7116_s7 + $0x1850] sm:$0xf] }
 0x156   : > { %884 = vst [vmem:[%s7121_s8 + $0x518] sm:$0xf] %v883_v6  ;;  %v1011_v6 = vld [vmem:[%s7116_s7 + $0x1860] sm:$0xf] }
 0x157   : > { %886 = vst [vmem:[%s7121_s8 + $0x51c] sm:$0xf] %v885_v7  ;;  %v1013_v7 = vld [vmem:[%s7116_s7 + $0x1870] sm:$0xf] }
 0x158   : > { %888 = vst [vmem:[%s7121_s8 + $0x520] sm:$0xf] %v887_v8 }
 0x159   : > { %890 = vst [vmem:[%s7121_s8 + $0x524] sm:$0xf] %v889_v9 }
 0x15a   : > { %892 = vst [vmem:[%s7121_s8 + $0x528] sm:$0xf] %v891_v10 }
 0x15b   : > { %894 = vst [vmem:[%s7121_s8 + $0x52c] sm:$0xf] %v893_v11 }
 0x15c   : > { %896 = vst [vmem:[%s7121_s8 + $0x530] sm:$0xf] %v895_v12 }
 0x15d   : > { %898 = vst [vmem:[%s7121_s8 + $0x534] sm:$0xf] %v897_v13 }
 0x15e   : > { %900 = vst [vmem:[%s7121_s8 + $0x538] sm:$0xf] %v899_v14 }
 0x15f   : > { %902 = vst [vmem:[%s7121_s8 + $0x53c] sm:$0xf] %v901_v15 }
 0x160   : > { %904 = vst [vmem:[%s7121_s8 + $0x540] sm:$0xf] %v903_v16 }
 0x161   : > { %906 = vst [vmem:[%s7121_s8 + $0x544] sm:$0xf] %v905_v17 }
 0x162   : > { %908 = vst [vmem:[%s7121_s8 + $0x548] sm:$0xf] %v907_v18 }
 0x163   : > { %910 = vst [vmem:[%s7121_s8 + $0x54c] sm:$0xf] %v909_v19 }
 0x164   : > { %912 = vst [vmem:[%s7121_s8 + $0x550] sm:$0xf] %v911_v20 }
 0x165   : > { %914 = vst [vmem:[%s7121_s8 + $0x554] sm:$0xf] %v913_v21 }
 0x166   : > { %916 = vst [vmem:[%s7121_s8 + $0x558] sm:$0xf] %v915_v22 }
 0x167   : > { %918 = vst [vmem:[%s7121_s8 + $0x55c] sm:$0xf] %v917_v23 }
 0x168   : > { %920 = vst [vmem:[%s7121_s8 + $0x560] sm:$0xf] %v919_v24 }
 0x169   : > { %922 = vst [vmem:[%s7121_s8 + $0x564] sm:$0xf] %v921_v25 }
 0x16a   : > { %924 = vst [vmem:[%s7121_s8 + $0x568] sm:$0xf] %v923_v26 }
 0x16b   : > { %926 = vst [vmem:[%s7121_s8 + $0x56c] sm:$0xf] %v925_v27 }
 0x16c   : > { %928 = vst [vmem:[%s7121_s8 + $0x570] sm:$0xf] %v927_v28 }
 0x16d   : > { %930 = vst [vmem:[%s7121_s8 + $0x574] sm:$0xf] %v929_v29 }
 0x16e   : > { %932 = vst [vmem:[%s7121_s8 + $0x578] sm:$0xf] %v931_v30 }
 0x16f   : > { %934 = vst [vmem:[%s7121_s8 + $0x57c] sm:$0xf] %v933_v31 }
 0x170   : > { %936 = vst [vmem:[%s7121_s8 + $0x580] sm:$0xf] %v935_v32 }
 0x171   : > { %938 = vst [vmem:[%s7121_s8 + $0x584] sm:$0xf] %v937_v33 }
 0x172   : > { %940 = vst [vmem:[%s7121_s8 + $0x588] sm:$0xf] %v939_v34 }
 0x173   : > { %942 = vst [vmem:[%s7121_s8 + $0x58c] sm:$0xf] %v941_v35 }
 0x174   : > { %944 = vst [vmem:[%s7121_s8 + $0x590] sm:$0xf] %v943_v36 }
 0x175   : > { %946 = vst [vmem:[%s7121_s8 + $0x594] sm:$0xf] %v945_v37 }
 0x176   : > { %948 = vst [vmem:[%s7121_s8 + $0x598] sm:$0xf] %v947_v38 }
 0x177   : > { %950 = vst [vmem:[%s7121_s8 + $0x59c] sm:$0xf] %v949_v39 }
 0x178   : > { %952 = vst [vmem:[%s7121_s8 + $0x5a0] sm:$0xf] %v951_v40 }
 0x179   : > { %954 = vst [vmem:[%s7121_s8 + $0x5a4] sm:$0xf] %v953_v41 }
 0x17a   : > { %956 = vst [vmem:[%s7121_s8 + $0x5a8] sm:$0xf] %v955_v42 }
 0x17b   : > { %958 = vst [vmem:[%s7121_s8 + $0x5ac] sm:$0xf] %v957_v43 }
 0x17c   : > { %960 = vst [vmem:[%s7121_s8 + $0x5b0] sm:$0xf] %v959_v44 }
 0x17d   : > { %962 = vst [vmem:[%s7121_s8 + $0x5b4] sm:$0xf] %v961_v45 }
 0x17e   : > { %964 = vst [vmem:[%s7121_s8 + $0x5b8] sm:$0xf] %v963_v46 }
 0x17f   : > { %966 = vst [vmem:[%s7121_s8 + $0x5bc] sm:$0xf] %v965_v47 }
 0x180   : > { %968 = vst [vmem:[%s7121_s8 + $0x5c0] sm:$0xf] %v967_v48 }
 0x181   : > { %970 = vst [vmem:[%s7121_s8 + $0x5c4] sm:$0xf] %v969_v49 }
 0x182   : > { %972 = vst [vmem:[%s7121_s8 + $0x5c8] sm:$0xf] %v971_v50 }
 0x183   : > { %974 = vst [vmem:[%s7121_s8 + $0x5cc] sm:$0xf] %v973_v51 }
 0x184   : > { %976 = vst [vmem:[%s7121_s8 + $0x5d0] sm:$0xf] %v975_v52 }
 0x185   : > { %978 = vst [vmem:[%s7121_s8 + $0x5d4] sm:$0xf] %v977_v53 }
 0x186   : > { %980 = vst [vmem:[%s7121_s8 + $0x5d8] sm:$0xf] %v979_v54 }
 0x187   : > { %982 = vst [vmem:[%s7121_s8 + $0x5dc] sm:$0xf] %v981_v55 }
 0x188   : > { %984 = vst [vmem:[%s7121_s8 + $0x5e0] sm:$0xf] %v983_v56 }
 0x189   : > { %986 = vst [vmem:[%s7121_s8 + $0x5e4] sm:$0xf] %v985_v57 }
 0x18a   : > { %988 = vst [vmem:[%s7121_s8 + $0x5e8] sm:$0xf] %v987_v58 }
 0x18b   : > { %990 = vst [vmem:[%s7121_s8 + $0x5ec] sm:$0xf] %v989_v59 }
 0x18c   : > { %992 = vst [vmem:[%s7121_s8 + $0x5f0] sm:$0xf] %v991_v60 }
 0x18d   : > { %994 = vst [vmem:[%s7121_s8 + $0x5f4] sm:$0xf] %v993_v61 }
 0x18e   : > { %996 = vst [vmem:[%s7121_s8 + $0x5f8] sm:$0xf] %v995_v62 }
 0x18f   : > { %998 = vst [vmem:[%s7121_s8 + $0x5fc] sm:$0xf] %v997_v63 }
 0x190   : > { %1000 = vst [vmem:[%s7121_s8 + $0x600] sm:$0xf] %v999_v0 }
 0x191   : > { %1002 = vst [vmem:[%s7121_s8 + $0x604] sm:$0xf] %v1001_v1 }
 0x192   : > { %1004 = vst [vmem:[%s7121_s8 + $0x608] sm:$0xf] %v1003_v2 }
 0x193   : > { %1006 = vst [vmem:[%s7121_s8 + $0x60c] sm:$0xf] %v1005_v3 }
 0x194   : > { %1008 = vst [vmem:[%s7121_s8 + $0x610] sm:$0xf] %v1007_v4 }
 0x195   : > { %1010 = vst [vmem:[%s7121_s8 + $0x614] sm:$0xf] %v1009_v5 }
 0x196   : > { %1012 = vst [vmem:[%s7121_s8 + $0x618] sm:$0xf] %v1011_v6 }
 0x197   : > { %1014 = vst [vmem:[%s7121_s8 + $0x61c] sm:$0xf] %v1013_v7 }
 0x198 PF: > { %p5802_p6 = scmp.ge.s32.totalorder %s7040_s22, 1  ;;  %p3430_p7 = scmp.lt.s32.totalorder %s7040_s22, 5 }
 0x19a   : > { %p3431_p8 = pnand %p5802_p6, %p3430_p7 }
 0x19b   : > { %s3437_s9 = sand.u32 (!%p3431_p8), 1, %s7024_s18   ;;  %p3485_p9 = scmp.lt.s32.totalorder (!%p3431_p8), %s7032_s20, 3 }
 0x19c   : > { %3434 = sbr.rel (%p3431_p8) target bundleno = 921 (0x399), region = 88  ;;  %s5803_s11 = sshll.u32 (!%p3431_p8), %s7032_s20, 4 }
 0x19d   : > { %s6958_s10 = smul.u32 (!%p3431_p8), 1568, %s3437_s9  ;;  %p3489_p10 = scmp.lt.s32.totalorder (!%p3431_p8), %s5803_s11, 63 }
 0x19e   : > { %p5805_p11 = scmp.ne.s32.totalorder (!%p3431_p8), %s7032_s20, 0 }
 0x19f   : > { %s7921_s27 = scalar_lea.vmem (!%p3431_p8), [#allocation3], %s6958_s10 }
 0x1a1   : > { %s7910_s12 = scalar_select %p3485_p9, %s7032_s20, 3 }
 0x1a2   : > { %s8321_s11 = smov (!%p3489_p10, %s5803_s11), 63  ;;  %3504 = sbr.rel (%p5805_p11) target bundleno = 426 (0x1aa), region = 96 }
 0x1a3   : > { %s3487_s15 = scalar_lea.vmem %s8310_s2, %s7910_s12  ;;  %s5804_s16 = sshll.u32 %s8321_s11, 2 }
 0x1a4   : > { %s7919_s25 = scalar_lea.vmem %s8311_s3, %s5804_s16 }
 0x1a7   : > { %v7042_v8 = vmov 0.0  }
 0x1a8   : > { %3505 = vst [vmem:[#allocation2] sm:$0xff] %v7042_v8 }
 0x1a9   : > { %3506 = vst [vmem:[#allocation2 + $0x8] sm:$0xff] %v7042_v8 }
 0x1aa PF: > { %v6760_v9 = vld [vmem:[%s7921_s27 + $0x38] sm:$0xff]  ;;  %v6759_v13 = vld [vmem:[%s7921_s27 + $0x30] sm:$0xff]  ;;  %v6758_v17 = vld [vmem:[%s7921_s27 + $0x28] sm:$0xff]  ;;  %vm5230_vm0 = vcmask 523264   ;;  %p6723_p12 = scmp.ne.s32.totalorder %s7032_s20, 3 }
 0x1ab   : > { %v6776_v10 = vld [vmem:[%s7921_s27 + $0xb8] sm:$0xff]  ;;  %5234 = vmatpush.bf16.msra.mxu0 %v6760_v9  ;;  %v6775_v14 = vld [vmem:[%s7921_s27 + $0xb0] sm:$0xff]  ;;  %v6774_v18 = vld [vmem:[%s7921_s27 + $0xa8] sm:$0xff] }
 0x1ac   : > { %v6784_v11 = vld [vmem:[%s7921_s27 + $0xf8] sm:$0xff]  ;;  %5262 = vmatpush.bf16.msra.mxu2 %v6776_v10  ;;  %v6783_v15 = vld [vmem:[%s7921_s27 + $0xf0] sm:$0xff]  ;;  %v6782_v19 = vld [vmem:[%s7921_s27 + $0xe8] sm:$0xff] }
 0x1ad   : > { %v6768_v12 = vld [vmem:[%s7921_s27 + $0x78] sm:$0xff]  ;;  %5276 = vmatpush.bf16.msra.mxu3 %v6784_v11  ;;  %v6767_v16 = vld [vmem:[%s7921_s27 + $0x70] sm:$0xff]  ;;  %v6766_v20 = vld [vmem:[%s7921_s27 + $0x68] sm:$0xff] }
 0x1ae   : > { %5248 = vmatpush.bf16.msra.mxu1 %v6768_v12  ;;  %v6757_v21 = vld [vmem:[%s7921_s27 + $0x20] sm:$0xff]  ;;  %v6756_v25 = vld [vmem:[%s7921_s27 + $0x18] sm:$0xff]  ;;  %v6755_v29 = vld [vmem:[%s7921_s27 + $0x10] sm:$0xff] }
 0x1af   : > { %5235 = vmatpush.bf16.msra.mxu0 %v6759_v13  ;;  %v6773_v22 = vld [vmem:[%s7921_s27 + $0xa0] sm:$0xff]  ;;  %v6772_v26 = vld [vmem:[%s7921_s27 + $0x98] sm:$0xff]  ;;  %v6771_v30 = vld [vmem:[%s7921_s27 + $0x90] sm:$0xff] }
 0x1b0   : > { %5263 = vmatpush.bf16.msra.mxu2 %v6775_v14  ;;  %v6781_v23 = vld [vmem:[%s7921_s27 + $0xe0] sm:$0xff]  ;;  %v6780_v27 = vld [vmem:[%s7921_s27 + $0xd8] sm:$0xff]  ;;  %v6779_v31 = vld [vmem:[%s7921_s27 + $0xd0] sm:$0xff] }
 0x1b1   : > { %5277 = vmatpush.bf16.msra.mxu3 %v6783_v15  ;;  %v6765_v24 = vld [vmem:[%s7921_s27 + $0x60] sm:$0xff]  ;;  %v6764_v28 = vld [vmem:[%s7921_s27 + $0x58] sm:$0xff]  ;;  %v6763_v32 = vld [vmem:[%s7921_s27 + $0x50] sm:$0xff] }
 0x1b2   : > { %5249 = vmatpush.bf16.msra.mxu1 %v6767_v16  ;;  %v6754_v33 = vld [vmem:[%s7921_s27 + $0x8] sm:$0xff]  ;;  %v6753_v37 = vld [vmem:[%s7921_s27] sm:$0xff]  ;;  %v6792_v40 = vld [vmem:[%s7921_s27 + $0x138] sm:$0xff] }
 0x1b3   : > { %5236 = vmatpush.bf16.msra.mxu0 %v6758_v17  ;;  %v6770_v34 = vld [vmem:[%s7921_s27 + $0x88] sm:$0xff]  ;;  %v6769_v38 = vld [vmem:[%s7921_s27 + $0x80] sm:$0xff]  ;;  %v5808_v41 = vld [vmem:[%s8308_s0] sm:$0xf] }
 0x1b4   : > { %5264 = vmatpush.bf16.msra.mxu2 %v6774_v18  ;;  %v6778_v35 = vld [vmem:[%s7921_s27 + $0xc8] sm:$0xff]  ;;  %v6777_v39 = vld [vmem:[%s7921_s27 + $0xc0] sm:$0xff]  ;;  %v6740_v42 = vld [vmem:[%s8308_s0 + $0x60] sm:$0xf0] }
 0x1b5   : > { %5278 = vmatpush.bf16.msra.mxu3 %v6782_v19  ;;  %v6762_v36 = vld [vmem:[%s7921_s27 + $0x48] sm:$0xff]  ;;  %v6808_v43 = vld [vmem:[%s7921_s27 + $0x1b8] sm:$0xff]  ;;  %v5818_v48 = vld [vmem:[%s8308_s0 + $0x6c] sm:$0xf0]  ;;  %v5809_v50 = vor.u32 %v6740_v42, %v5808_v41 }
 0x1b6   : > { %5250 = vmatpush.bf16.msra.mxu1 %v6766_v20  ;;  %v5816_v44 = vld [vmem:[%s8308_s0 + $0x8] sm:$0xf]  ;;  %v6741_v45 = vld [vmem:[%s8308_s0 + $0x68] sm:$0xf0]  ;;  %v6761_v49 = vld [vmem:[%s7921_s27 + $0x40] sm:$0xff] }
 0x1b7   : > { %5237 = vmatpush.bf16.msra.mxu0 %v6757_v21  ;;  %v6816_v46 = vld [vmem:[%s7921_s27 + $0x1f8] sm:$0xff]  ;;  %v5817_v52 = vor.u32 %v6741_v45, %v5816_v44  ;;  %v6728_v53 = vld [vmem:[%s8308_s0 + $0x4] sm:$0xf]  ;;  %v6790_v61 = vld [vmem:[%s7921_s27 + $0x128] sm:$0xff] }
 0x1b8   : > { %5265 = vmatpush.bf16.msra.mxu2 %v6773_v22  ;;  %v6729_v47 = vld [vmem:[%s8308_s0 + $0xc] sm:$0xf]  ;;  %v5810_v54 = vld [vmem:[%s8308_s0 + $0x64] sm:$0xf0]  ;;  %v6791_v55 = vld [vmem:[%s7921_s27 + $0x130] sm:$0xff] }
 0x1b9   : > { %5279 = vmatpush.bf16.msra.mxu3 %v6781_v23  ;;  %v6800_v51 = vld [vmem:[%s7921_s27 + $0x178] sm:$0xff]  ;;  %v5821_v56 = vor.u32 %v6729_v47, %v5818_v48  ;;  %v6807_v57 = vld [vmem:[%s7921_s27 + $0x1b0] sm:$0xff]  ;;  %v5813_v59 = vor.u32 %v6728_v53, %v5810_v54  ;;  %v6806_v62 = vld [vmem:[%s7921_s27 + $0x1a8] sm:$0xff] }
 0x1ba   : > { %5251 = vmatpush.bf16.msra.mxu1 %v6765_v24  ;;  %v6815_v58 = vld [vmem:[%s7921_s27 + $0x1f0] sm:$0xff]  ;;  %v6814_v63 = vld [vmem:[%s7921_s27 + $0x1e8] sm:$0xff]  ;;  %v6789_v1 = vld [vmem:[%s7921_s27 + $0x120] sm:$0xff] }
 0x1bb   : > { %5238 = vmatpush.bf16.msra.mxu0 %v6756_v25  ;;  %v6799_v60 = vld [vmem:[%s7921_s27 + $0x170] sm:$0xff]  ;;  %v6798_v0 = vld [vmem:[%s7921_s27 + $0x168] sm:$0xff]  ;;  %v6805_v2 = vld [vmem:[%s7921_s27 + $0x1a0] sm:$0xff] }
 0x1bc   : > { %5266 = vmatpush.bf16.msra.mxu2 %v6772_v26  ;;  %v6813_v3 = vld [vmem:[%s7921_s27 + $0x1e0] sm:$0xff]  ;;  %v6788_v5 = vld [vmem:[%s7921_s27 + $0x118] sm:$0xff]  ;;  %v6787_v9 = vld [vmem:[%s7921_s27 + $0x110] sm:$0xff] }
 0x1bd   : > { %5280 = vmatpush.bf16.msra.mxu3 %v6780_v27  ;;  %v6797_v4 = vld [vmem:[%s7921_s27 + $0x160] sm:$0xff]  ;;  %v6804_v6 = vld [vmem:[%s7921_s27 + $0x198] sm:$0xff]  ;;  %v6803_v10 = vld [vmem:[%s7921_s27 + $0x190] sm:$0xff] }
 0x1be   : > { %5252 = vmatpush.bf16.msra.mxu1 %v6764_v28  ;;  %v6812_v7 = vld [vmem:[%s7921_s27 + $0x1d8] sm:$0xff]  ;;  %v6811_v11 = vld [vmem:[%s7921_s27 + $0x1d0] sm:$0xff]  ;;  %v6786_v13 = vld [vmem:[%s7921_s27 + $0x108] sm:$0xff] }
 0x1bf   : > { %5239 = vmatpush.bf16.msra.mxu0 %v6755_v29  ;;  %v6796_v8 = vld [vmem:[%s7921_s27 + $0x158] sm:$0xff]  ;;  %v6795_v12 = vld [vmem:[%s7921_s27 + $0x150] sm:$0xff]  ;;  %v6802_v14 = vld [vmem:[%s7921_s27 + $0x188] sm:$0xff] }
 0x1c0   : > { %5267 = vmatpush.bf16.msra.mxu2 %v6771_v30  ;;  %v6810_v15 = vld [vmem:[%s7921_s27 + $0x1c8] sm:$0xff]  ;;  %v6785_v17 = vld [vmem:[%s7921_s27 + $0x100] sm:$0xff]  ;;  %v6824_v20 = vld [vmem:[%s7921_s27 + $0x238] sm:$0xff] }
 0x1c1   : > { %5281 = vmatpush.bf16.msra.mxu3 %v6779_v31  ;;  %v6794_v16 = vld [vmem:[%s7921_s27 + $0x148] sm:$0xff]  ;;  %v6801_v18 = vld [vmem:[%s7921_s27 + $0x180] sm:$0xff]  ;;  %v6840_v21 = vld [vmem:[%s7921_s27 + $0x2b8] sm:$0xff] }
 0x1c2   : > { %5253 = vmatpush.bf16.msra.mxu1 %v6763_v32  ;;  %v6809_v19 = vld [vmem:[%s7921_s27 + $0x1c0] sm:$0xff]  ;;  %v5832_v24 = vld [vmem:[%s8308_s0 + $0x18] sm:$0xf]  ;;  %v6743_v25 = vld [vmem:[%s8308_s0 + $0x78] sm:$0xf0] }
 0x1c3   : > { %5240 = vmatpush.bf16.msra.mxu0 %v6754_v33  ;;  %v5824_v22 = vld [vmem:[%s8308_s0 + $0x10] sm:$0xf]  ;;  %v6742_v23 = vld [vmem:[%s8308_s0 + $0x70] sm:$0xf0]  ;;  %v6848_v26 = vld [vmem:[%s7921_s27 + $0x2f8] sm:$0xff]  ;;  %v5833_v33 = vor.u32 %v6743_v25, %v5832_v24 }
 0x1c4   : > { %5268 = vmatpush.bf16.msra.mxu2 %v6770_v34  ;;  %v6731_v27 = vld [vmem:[%s8308_s0 + $0x1c] sm:$0xf]  ;;  %v5834_v28 = vld [vmem:[%s8308_s0 + $0x7c] sm:$0xf0]  ;;  %v6793_v29 = vld [vmem:[%s7921_s27 + $0x140] sm:$0xff]  ;;  %v5825_v32 = vor.u32 %v6742_v23, %v5824_v22 }
 0x1c5   : > { %5282 = vmatpush.bf16.msra.mxu3 %v6778_v35  ;;  %v6730_v30 = vld [vmem:[%s8308_s0 + $0x14] sm:$0xf]  ;;  %v5826_v31 = vld [vmem:[%s8308_s0 + $0x74] sm:$0xf0]  ;;  %v6832_v34 = vld [vmem:[%s7921_s27 + $0x278] sm:$0xff]  ;;  %v5837_v35 = vor.u32 %v6731_v27, %v5834_v28 }
 0x1c6   : > { %5254 = vmatpush.bf16.msra.mxu1 %v6762_v36  ;;  %v5829_v36 = vor.u32 %v6730_v30, %v5826_v31  ;;  %v6822_v41 = vld [vmem:[%s7921_s27 + $0x228] sm:$0xff]  ;;  %v6821_v45 = vld [vmem:[%s7921_s27 + $0x220] sm:$0xff]  ;;  %v6819_v53 = vld [vmem:[%s7921_s27 + $0x210] sm:$0xff] }
 0x1c7   : > { %5241 = vmatpush.bf16.msra.mxu0 %v6753_v37  ;;  %v6823_v37 = vld [vmem:[%s7921_s27 + $0x230] sm:$0xff]  ;;  %v6838_v42 = vld [vmem:[%s7921_s27 + $0x2a8] sm:$0xff]  ;;  %v6845_v47 = vld [vmem:[%s7921_s27 + $0x2e0] sm:$0xff] }
 0x1c8   : > { %5269 = vmatpush.bf16.msra.mxu2 %v6769_v38  ;;  %v6839_v38 = vld [vmem:[%s7921_s27 + $0x2b0] sm:$0xff]  ;;  %v6830_v44 = vld [vmem:[%s7921_s27 + $0x268] sm:$0xff]  ;;  %v6829_v48 = vld [vmem:[%s7921_s27 + $0x260] sm:$0xff] }
 0x1c9   : > { %5283 = vmatpush.bf16.msra.mxu3 %v6777_v39  ;;  %v6847_v39 = vld [vmem:[%s7921_s27 + $0x2f0] sm:$0xff]  ;;  %v6870_v22 = vld [vmem:[%s7921_s27 + $0x3a8] sm:$0xff]  ;;  %v6853_v25 = vld [vmem:[%s7921_s27 + $0x320] sm:$0xff] }
 0x1ca   : > { %5255 = vmatpush.bf16.msra.mxu1 %v6761_v49  ;;  %5242 = vmatmul.bf16.vlgmr.msra.gmra.mxu0 %v5809_v50  ;;  %v6820_v49 = vld [vmem:[%s7921_s27 + $0x218] sm:$0xff]  ;;  %v6835_v54 = vld [vmem:[%s7921_s27 + $0x290] sm:$0xff]  ;;  %v6878_v23 = vld [vmem:[%s7921_s27 + $0x3e8] sm:$0xff] }
 0x1cb   : > { %5290 = vmatpush.bf16.msrb.mxu0 %v6792_v40  ;;  %5270 = vmatmul.bf16.vlgmr.msra.gmra.mxu2 %v5817_v52  ;;  %v6831_v40 = vld [vmem:[%s7921_s27 + $0x270] sm:$0xff]  ;;  %v6836_v50 = vld [vmem:[%s7921_s27 + $0x298] sm:$0xff]  ;;  %v6862_v24 = vld [vmem:[%s7921_s27 + $0x368] sm:$0xff] }
 0x1cc   : > { %5318 = vmatpush.bf16.msrb.mxu2 %v6808_v43  ;;  %5284 = vmatmul.bf16.vlgmr.msra.gmra.mxu3 %v5821_v56  ;;  %v6846_v43 = vld [vmem:[%s7921_s27 + $0x2e8] sm:$0xff]  ;;  %v6828_v52 = vld [vmem:[%s7921_s27 + $0x258] sm:$0xff]  ;;  %v6827_v56 = vld [vmem:[%s7921_s27 + $0x250] sm:$0xff] }
 0x1cd   : > { %5332 = vmatpush.bf16.msrb.mxu3 %v6816_v46  ;;  %5256 = vmatmul.bf16.vlgmr.msra.gmra.mxu1 %v5813_v59  ;;  %v6837_v46 = vld [vmem:[%s7921_s27 + $0x2a0] sm:$0xff]  ;;  %v6842_v59 = vld [vmem:[%s7921_s27 + $0x2c8] sm:$0xff]  ;;  %v6868_v30 = vld [vmem:[%s7921_s27 + $0x398] sm:$0xff] }
 0x1ce   : > { %5304 = vmatpush.bf16.msrb.mxu1 %v6800_v51  ;;  %v6844_v51 = vld [vmem:[%s7921_s27 + $0x2d8] sm:$0xff]  ;;  %v6877_v27 = vld [vmem:[%s7921_s27 + $0x3e0] sm:$0xff] }
 0x1cf   : > { %5291 = vmatpush.bf16.msrb.mxu0 %v6791_v55  ;;  %v6843_v55 = vld [vmem:[%s7921_s27 + $0x2d0] sm:$0xff]  ;;  %v6861_v28 = vld [vmem:[%s7921_s27 + $0x360] sm:$0xff]  ;;  %v6876_v31 = vld [vmem:[%s7921_s27 + $0x3d8] sm:$0xff] }
 0x1d0   : > { %5319 = vmatpush.bf16.msrb.mxu2 %v6807_v57  ;;  %v6818_v57 = vld [vmem:[%s7921_s27 + $0x208] sm:$0xff] }
 0x1d1   : > { %5333 = vmatpush.bf16.msrb.mxu3 %v6815_v58  ;;  %v6834_v58 = vld [vmem:[%s7921_s27 + $0x288] sm:$0xff] }
 0x1d2   : > { %5305 = vmatpush.bf16.msrb.mxu1 %v6799_v60  ;;  %v6826_v60 = vld [vmem:[%s7921_s27 + $0x248] sm:$0xff] }
 0x1d3   : > { %5292 = vmatpush.bf16.msrb.mxu0 %v6790_v61  ;;  %v6817_v61 = vld [vmem:[%s7921_s27 + $0x200] sm:$0xff] }
 0x1d4   : > { %5320 = vmatpush.bf16.msrb.mxu2 %v6806_v62  ;;  %v6833_v62 = vld [vmem:[%s7921_s27 + $0x280] sm:$0xff] }
 0x1d5   : > { %5334 = vmatpush.bf16.msrb.mxu3 %v6814_v63  ;;  %v6841_v63 = vld [vmem:[%s7921_s27 + $0x2c0] sm:$0xff] }
 0x1d6   : > { %5306 = vmatpush.bf16.msrb.mxu1 %v6798_v0  ;;  %v6856_v0 = vld [vmem:[%s7921_s27 + $0x338] sm:$0xff] }
 0x1d7   : > { %5293 = vmatpush.bf16.msrb.mxu0 %v6789_v1  ;;  %v6872_v1 = vld [vmem:[%s7921_s27 + $0x3b8] sm:$0xff] }
 0x1d8   : > { %5321 = vmatpush.bf16.msrb.mxu2 %v6805_v2  ;;  %v5840_v2 = vld [vmem:[%s8308_s0 + $0x20] sm:$0xf] }
 0x1d9   : > { %5335 = vmatpush.bf16.msrb.mxu3 %v6813_v3  ;;  %v6744_v3 = vld [vmem:[%s8308_s0 + $0x80] sm:$0xf0] }
 0x1da   : > { %5307 = vmatpush.bf16.msrb.mxu1 %v6797_v4  ;;  %v5848_v4 = vld [vmem:[%s8308_s0 + $0x28] sm:$0xf] }
 0x1db   : > { %5294 = vmatpush.bf16.msrb.mxu0 %v6788_v5  ;;  %v6745_v5 = vld [vmem:[%s8308_s0 + $0x88] sm:$0xf0] }
 0x1dc   : > { %5322 = vmatpush.bf16.msrb.mxu2 %v6804_v6  ;;  %v6880_v6 = vld [vmem:[%s7921_s27 + $0x3f8] sm:$0xff] }
 0x1dd   : > { %5336 = vmatpush.bf16.msrb.mxu3 %v6812_v7  ;;  %v6733_v7 = vld [vmem:[%s8308_s0 + $0x2c] sm:$0xf] }
 0x1de   : > { %5308 = vmatpush.bf16.msrb.mxu1 %v6796_v8  ;;  %v5850_v8 = vld [vmem:[%s8308_s0 + $0x8c] sm:$0xf0] }
 0x1df   : > { %5295 = vmatpush.bf16.msrb.mxu0 %v6787_v9  ;;  %v6825_v9 = vld [vmem:[%s7921_s27 + $0x240] sm:$0xff] }
 0x1e0   : > { %5323 = vmatpush.bf16.msrb.mxu2 %v6803_v10  ;;  %v6732_v10 = vld [vmem:[%s8308_s0 + $0x24] sm:$0xf] }
 0x1e1   : > { %5337 = vmatpush.bf16.msrb.mxu3 %v6811_v11  ;;  %v5842_v11 = vld [vmem:[%s8308_s0 + $0x84] sm:$0xf0] }
 0x1e2   : > { %5309 = vmatpush.bf16.msrb.mxu1 %v6795_v12  ;;  %v5841_v12 = vor.u32 %v6744_v3, %v5840_v2  ;;  %v6902_v2 = vld [vmem:[%s7921_s27 + $0x4a8] sm:$0xff] }
 0x1e3   : > { %5296 = vmatpush.bf16.msrb.mxu0 %v6786_v13  ;;  %v5849_v13 = vor.u32 %v6745_v5, %v5848_v4  ;;  %v6910_v3 = vld [vmem:[%s7921_s27 + $0x4e8] sm:$0xff]  ;;  %v6885_v5 = vld [vmem:[%s7921_s27 + $0x420] sm:$0xff] }
 0x1e4   : > { %5324 = vmatpush.bf16.msrb.mxu2 %v6802_v14  ;;  %v6864_v14 = vld [vmem:[%s7921_s27 + $0x378] sm:$0xff]  ;;  %v6894_v4 = vld [vmem:[%s7921_s27 + $0x468] sm:$0xff] }
 0x1e5   : > { %5338 = vmatpush.bf16.msrb.mxu3 %v6810_v15  ;;  %v5853_v15 = vor.u32 %v6733_v7, %v5850_v8  ;;  %v6909_v7 = vld [vmem:[%s7921_s27 + $0x4e0] sm:$0xff] }
 0x1e6   : > { %5310 = vmatpush.bf16.msrb.mxu1 %v6794_v16  ;;  %v5845_v16 = vor.u32 %v6732_v10, %v5842_v11  ;;  %v6893_v8 = vld [vmem:[%s7921_s27 + $0x460] sm:$0xff]  ;;  %v6900_v10 = vld [vmem:[%s7921_s27 + $0x498] sm:$0xff] }
 0x1e7   : > { %5297 = vmatpush.bf16.msrb.mxu0 %v6785_v17  ;;  %v6855_v17 = vld [vmem:[%s7921_s27 + $0x330] sm:$0xff]  ;;  %v6908_v11 = vld [vmem:[%s7921_s27 + $0x4d8] sm:$0xff] }
 0x1e8   : > { %5325 = vmatpush.bf16.msrb.mxu2 %v6801_v18  ;;  %v6871_v18 = vld [vmem:[%s7921_s27 + $0x3b0] sm:$0xff] }
 0x1e9   : > { %5339 = vmatpush.bf16.msrb.mxu3 %v6809_v19  ;;  %v6879_v19 = vld [vmem:[%s7921_s27 + $0x3f0] sm:$0xff] }
 0x1ea   : > { %5311 = vmatpush.bf16.msrb.mxu1 %v6793_v29  ;;  %5298 = vmatmul.bf16.vlgmr.msrb.gmra.mxu0 %v5825_v32  ;;  %v6852_v29 = vld [vmem:[%s7921_s27 + $0x318] sm:$0xff] }
 0x1eb   : > { %5346 = vmatpush.bf16.msra.mxu0 %v6824_v20  ;;  %5326 = vmatmul.bf16.vlgmr.msrb.gmra.mxu2 %v5833_v33  ;;  %v6863_v20 = vld [vmem:[%s7921_s27 + $0x370] sm:$0xff]  ;;  %v6860_v32 = vld [vmem:[%s7921_s27 + $0x358] sm:$0xff] }
 0x1ec   : > { %5374 = vmatpush.bf16.msra.mxu2 %v6840_v21  ;;  %5340 = vmatmul.bf16.vlgmr.msrb.gmra.mxu3 %v5837_v35  ;;  %v6854_v21 = vld [vmem:[%s7921_s27 + $0x328] sm:$0xff]  ;;  %v6851_v33 = vld [vmem:[%s7921_s27 + $0x310] sm:$0xff] }
 0x1ed   : > { %5388 = vmatpush.bf16.msra.mxu3 %v6848_v26  ;;  %5312 = vmatmul.bf16.vlgmr.msrb.gmra.mxu1 %v5829_v36  ;;  %v6869_v26 = vld [vmem:[%s7921_s27 + $0x3a0] sm:$0xff]  ;;  %v6875_v35 = vld [vmem:[%s7921_s27 + $0x3d0] sm:$0xff] }
 0x1ee   : > { %5360 = vmatpush.bf16.msra.mxu1 %v6832_v34  ;;  %v6867_v34 = vld [vmem:[%s7921_s27 + $0x390] sm:$0xff] }
 0x1ef   : > { %5347 = vmatpush.bf16.msra.mxu0 %v6823_v37  ;;  %v6859_v36 = vld [vmem:[%s7921_s27 + $0x350] sm:$0xff]  ;;  %v6850_v37 = vld [vmem:[%s7921_s27 + $0x308] sm:$0xff] }
 0x1f0   : > { %5375 = vmatpush.bf16.msra.mxu2 %v6839_v38  ;;  %v6866_v38 = vld [vmem:[%s7921_s27 + $0x388] sm:$0xff] }
 0x1f1   : > { %5389 = vmatpush.bf16.msra.mxu3 %v6847_v39  ;;  %v6874_v39 = vld [vmem:[%s7921_s27 + $0x3c8] sm:$0xff] }
 0x1f2   : > { %5361 = vmatpush.bf16.msra.mxu1 %v6831_v40  ;;  %v6858_v40 = vld [vmem:[%s7921_s27 + $0x348] sm:$0xff] }
 0x1f3   : > { %5348 = vmatpush.bf16.msra.mxu0 %v6822_v41  ;;  %v6849_v41 = vld [vmem:[%s7921_s27 + $0x300] sm:$0xff] }
 0x1f4   : > { %5376 = vmatpush.bf16.msra.mxu2 %v6838_v42  ;;  %v6865_v42 = vld [vmem:[%s7921_s27 + $0x380] sm:$0xff] }
 0x1f5   : > { %5390 = vmatpush.bf16.msra.mxu3 %v6846_v43  ;;  %v6873_v43 = vld [vmem:[%s7921_s27 + $0x3c0] sm:$0xff] }
 0x1f6   : > { %5362 = vmatpush.bf16.msra.mxu1 %v6830_v44  ;;  %v6888_v44 = vld [vmem:[%s7921_s27 + $0x438] sm:$0xff] }
 0x1f7   : > { %5349 = vmatpush.bf16.msra.mxu0 %v6821_v45  ;;  %v6904_v45 = vld [vmem:[%s7921_s27 + $0x4b8] sm:$0xff] }
 0x1f8   : > { %5377 = vmatpush.bf16.msra.mxu2 %v6837_v46  ;;  %v5856_v46 = vld [vmem:[%s8308_s0 + $0x30] sm:$0xf] }
 0x1f9   : > { %5391 = vmatpush.bf16.msra.mxu3 %v6845_v47  ;;  %v6746_v47 = vld [vmem:[%s8308_s0 + $0x90] sm:$0xf0] }
 0x1fa   : > { %5363 = vmatpush.bf16.msra.mxu1 %v6829_v48  ;;  %v5864_v48 = vld [vmem:[%s8308_s0 + $0x38] sm:$0xf] }
 0x1fb   : > { %5350 = vmatpush.bf16.msra.mxu0 %v6820_v49  ;;  %v6747_v49 = vld [vmem:[%s8308_s0 + $0x98] sm:$0xf0] }
 0x1fc   : > { %5378 = vmatpush.bf16.msra.mxu2 %v6836_v50  ;;  %v6912_v50 = vld [vmem:[%s7921_s27 + $0x4f8] sm:$0xff] }
 0x1fd   : > { %5392 = vmatpush.bf16.msra.mxu3 %v6844_v51  ;;  %v6735_v51 = vld [vmem:[%s8308_s0 + $0x3c] sm:$0xf] }
 0x1fe   : > { %5364 = vmatpush.bf16.msra.mxu1 %v6828_v52  ;;  %v5866_v52 = vld [vmem:[%s8308_s0 + $0x9c] sm:$0xf0] }
 0x1ff   : > { %5351 = vmatpush.bf16.msra.mxu0 %v6819_v53  ;;  %v6857_v53 = vld [vmem:[%s7921_s27 + $0x340] sm:$0xff] }
 0x200   : > { %5379 = vmatpush.bf16.msra.mxu2 %v6835_v54  ;;  %v6734_v54 = vld [vmem:[%s8308_s0 + $0x34] sm:$0xf] }
 0x201   : > { %5393 = vmatpush.bf16.msra.mxu3 %v6843_v55  ;;  %v5858_v55 = vld [vmem:[%s8308_s0 + $0x94] sm:$0xf0] }
 0x202   : > { %5365 = vmatpush.bf16.msra.mxu1 %v6827_v56  ;;  %v5857_v56 = vor.u32 %v6746_v47, %v5856_v46  ;;  %v6934_v46 = vld [vmem:[%s7921_s27 + $0x5a8] sm:$0xff] }
 0x203   : > { %5352 = vmatpush.bf16.msra.mxu0 %v6818_v57  ;;  %v5865_v57 = vor.u32 %v6747_v49, %v5864_v48  ;;  %v6942_v47 = vld [vmem:[%s7921_s27 + $0x5e8] sm:$0xff]  ;;  %v6917_v49 = vld [vmem:[%s7921_s27 + $0x520] sm:$0xff] }
 0x204   : > { %5380 = vmatpush.bf16.msra.mxu2 %v6834_v58  ;;  %v6896_v58 = vld [vmem:[%s7921_s27 + $0x478] sm:$0xff]  ;;  %v6926_v48 = vld [vmem:[%s7921_s27 + $0x568] sm:$0xff] }
 0x205   : > { %5394 = vmatpush.bf16.msra.mxu3 %v6842_v59  ;;  %v5869_v59 = vor.u32 %v6735_v51, %v5866_v52  ;;  %v6941_v51 = vld [vmem:[%s7921_s27 + $0x5e0] sm:$0xff] }
 0x206   : > { %5366 = vmatpush.bf16.msra.mxu1 %v6826_v60  ;;  %v5861_v60 = vor.u32 %v6734_v54, %v5858_v55  ;;  %v6925_v52 = vld [vmem:[%s7921_s27 + $0x560] sm:$0xff]  ;;  %v6932_v54 = vld [vmem:[%s7921_s27 + $0x598] sm:$0xff] }
 0x207   : > { %5353 = vmatpush.bf16.msra.mxu0 %v6817_v61  ;;  %v6887_v61 = vld [vmem:[%s7921_s27 + $0x430] sm:$0xff]  ;;  %v6940_v55 = vld [vmem:[%s7921_s27 + $0x5d8] sm:$0xff] }
 0x208   : > { %5381 = vmatpush.bf16.msra.mxu2 %v6833_v62  ;;  %v6903_v62 = vld [vmem:[%s7921_s27 + $0x4b0] sm:$0xff] }
 0x209   : > { %5395 = vmatpush.bf16.msra.mxu3 %v6841_v63  ;;  %v6911_v63 = vld [vmem:[%s7921_s27 + $0x4f0] sm:$0xff] }
 0x20a   : > { %5367 = vmatpush.bf16.msra.mxu1 %v6825_v9  ;;  %5354 = vmatmul.bf16.vlgmr.msra.gmra.mxu0 %v5841_v12  ;;  %v6884_v9 = vld [vmem:[%s7921_s27 + $0x418] sm:$0xff] }
 0x20b   : > { %5402 = vmatpush.bf16.msrb.mxu0 %v6856_v0  ;;  %5382 = vmatmul.bf16.vlgmr.msra.gmra.mxu2 %v5849_v13  ;;  %v6895_v0 = vld [vmem:[%s7921_s27 + $0x470] sm:$0xff]  ;;  %v6892_v12 = vld [vmem:[%s7921_s27 + $0x458] sm:$0xff] }
 0x20c   : > { %5430 = vmatpush.bf16.msrb.mxu2 %v6872_v1  ;;  %5396 = vmatmul.bf16.vlgmr.msra.gmra.mxu3 %v5853_v15  ;;  %v6886_v1 = vld [vmem:[%s7921_s27 + $0x428] sm:$0xff]  ;;  %v6883_v13 = vld [vmem:[%s7921_s27 + $0x410] sm:$0xff] }
 0x20d   : > { %5444 = vmatpush.bf16.msrb.mxu3 %v6880_v6  ;;  %5368 = vmatmul.bf16.vlgmr.msra.gmra.mxu1 %v5845_v16  ;;  %v6901_v6 = vld [vmem:[%s7921_s27 + $0x4a0] sm:$0xff]  ;;  %v6907_v15 = vld [vmem:[%s7921_s27 + $0x4d0] sm:$0xff] }
 0x20e   : > { %5416 = vmatpush.bf16.msrb.mxu1 %v6864_v14  ;;  %v6899_v14 = vld [vmem:[%s7921_s27 + $0x490] sm:$0xff] }
 0x20f   : > { %5403 = vmatpush.bf16.msrb.mxu0 %v6855_v17  ;;  %v6891_v16 = vld [vmem:[%s7921_s27 + $0x450] sm:$0xff]  ;;  %v6882_v17 = vld [vmem:[%s7921_s27 + $0x408] sm:$0xff] }
 0x210   : > { %5431 = vmatpush.bf16.msrb.mxu2 %v6871_v18  ;;  %v6898_v18 = vld [vmem:[%s7921_s27 + $0x488] sm:$0xff] }
 0x211   : > { %5445 = vmatpush.bf16.msrb.mxu3 %v6879_v19  ;;  %v6906_v19 = vld [vmem:[%s7921_s27 + $0x4c8] sm:$0xff] }
 0x212   : > { %5417 = vmatpush.bf16.msrb.mxu1 %v6863_v20  ;;  %v6890_v20 = vld [vmem:[%s7921_s27 + $0x448] sm:$0xff] }
 0x213   : > { %5404 = vmatpush.bf16.msrb.mxu0 %v6854_v21  ;;  %v6881_v21 = vld [vmem:[%s7921_s27 + $0x400] sm:$0xff] }
 0x214   : > { %5432 = vmatpush.bf16.msrb.mxu2 %v6870_v22  ;;  %v6897_v22 = vld [vmem:[%s7921_s27 + $0x480] sm:$0xff] }
 0x215   : > { %5446 = vmatpush.bf16.msrb.mxu3 %v6878_v23  ;;  %v6905_v23 = vld [vmem:[%s7921_s27 + $0x4c0] sm:$0xff] }
 0x216   : > { %5418 = vmatpush.bf16.msrb.mxu1 %v6862_v24  ;;  %v6920_v24 = vld [vmem:[%s7921_s27 + $0x538] sm:$0xff] }
 0x217   : > { %5405 = vmatpush.bf16.msrb.mxu0 %v6853_v25  ;;  %v6936_v25 = vld [vmem:[%s7921_s27 + $0x5b8] sm:$0xff] }
 0x218   : > { %5433 = vmatpush.bf16.msrb.mxu2 %v6869_v26  ;;  %v5872_v26 = vld [vmem:[%s8308_s0 + $0x40] sm:$0xf] }
 0x219   : > { %5447 = vmatpush.bf16.msrb.mxu3 %v6877_v27  ;;  %v6748_v27 = vld [vmem:[%s8308_s0 + $0xa0] sm:$0xf0] }
 0x21a   : > { %5419 = vmatpush.bf16.msrb.mxu1 %v6861_v28  ;;  %v5880_v28 = vld [vmem:[%s8308_s0 + $0x48] sm:$0xf] }
 0x21b   : > { %5406 = vmatpush.bf16.msrb.mxu0 %v6852_v29  ;;  %v6749_v29 = vld [vmem:[%s8308_s0 + $0xa8] sm:$0xf0] }
 0x21c   : > { %5434 = vmatpush.bf16.msrb.mxu2 %v6868_v30  ;;  %v6944_v30 = vld [vmem:[%s7921_s27 + $0x5f8] sm:$0xff] }
 0x21d   : > { %5448 = vmatpush.bf16.msrb.mxu3 %v6876_v31  ;;  %v6737_v31 = vld [vmem:[%s8308_s0 + $0x4c] sm:$0xf] }
 0x21e   : > { %5420 = vmatpush.bf16.msrb.mxu1 %v6860_v32  ;;  %v5882_v32 = vld [vmem:[%s8308_s0 + $0xac] sm:$0xf0] }
 0x21f   : > { %5407 = vmatpush.bf16.msrb.mxu0 %v6851_v33  ;;  %v6889_v33 = vld [vmem:[%s7921_s27 + $0x440] sm:$0xff] }
 0x220   : > { %5435 = vmatpush.bf16.msrb.mxu2 %v6867_v34  ;;  %v6736_v34 = vld [vmem:[%s8308_s0 + $0x44] sm:$0xf] }
 0x221   : > { %5449 = vmatpush.bf16.msrb.mxu3 %v6875_v35  ;;  %v5874_v35 = vld [vmem:[%s8308_s0 + $0xa4] sm:$0xf0] }
 0x222   : > { %5421 = vmatpush.bf16.msrb.mxu1 %v6859_v36  ;;  %v5873_v36 = vor.u32 %v6748_v27, %v5872_v26 }
 0x223   : > { %5408 = vmatpush.bf16.msrb.mxu0 %v6850_v37  ;;  %v5881_v37 = vor.u32 %v6749_v29, %v5880_v28 }
 0x224   : > { %5436 = vmatpush.bf16.msrb.mxu2 %v6866_v38  ;;  %v6928_v38 = vld [vmem:[%s7921_s27 + $0x578] sm:$0xff] }
 0x225   : > { %5450 = vmatpush.bf16.msrb.mxu3 %v6874_v39  ;;  %v5885_v39 = vor.u32 %v6737_v31, %v5882_v32 }
 0x226   : > { %5422 = vmatpush.bf16.msrb.mxu1 %v6858_v40  ;;  %v5877_v40 = vor.u32 %v6736_v34, %v5874_v35 }
 0x227   : > { %5409 = vmatpush.bf16.msrb.mxu0 %v6849_v41  ;;  %v6919_v41 = vld [vmem:[%s7921_s27 + $0x530] sm:$0xff] }
 0x228   : > { %5437 = vmatpush.bf16.msrb.mxu2 %v6865_v42  ;;  %v6935_v42 = vld [vmem:[%s7921_s27 + $0x5b0] sm:$0xff] }
 0x229   : > { %5451 = vmatpush.bf16.msrb.mxu3 %v6873_v43  ;;  %v6943_v43 = vld [vmem:[%s7921_s27 + $0x5f0] sm:$0xff] }
 0x22a   : > { %5423 = vmatpush.bf16.msrb.mxu1 %v6857_v53  ;;  %5410 = vmatmul.bf16.vlgmr.msrb.gmra.mxu0 %v5857_v56  ;;  %v6916_v53 = vld [vmem:[%s7921_s27 + $0x518] sm:$0xff] }
 0x22b   : > { %5458 = vmatpush.bf16.msra.mxu0 %v6888_v44  ;;  %5438 = vmatmul.bf16.vlgmr.msrb.gmra.mxu2 %v5865_v57  ;;  %v6927_v44 = vld [vmem:[%s7921_s27 + $0x570] sm:$0xff]  ;;  %v6924_v56 = vld [vmem:[%s7921_s27 + $0x558] sm:$0xff] }
 0x22c   : > { %5486 = vmatpush.bf16.msra.mxu2 %v6904_v45  ;;  %5452 = vmatmul.bf16.vlgmr.msrb.gmra.mxu3 %v5869_v59  ;;  %v6918_v45 = vld [vmem:[%s7921_s27 + $0x528] sm:$0xff]  ;;  %v6915_v57 = vld [vmem:[%s7921_s27 + $0x510] sm:$0xff] }
 0x22d   : > { %5500 = vmatpush.bf16.msra.mxu3 %v6912_v50  ;;  %5424 = vmatmul.bf16.vlgmr.msrb.gmra.mxu1 %v5861_v60  ;;  %v6933_v50 = vld [vmem:[%s7921_s27 + $0x5a0] sm:$0xff]  ;;  %v6939_v59 = vld [vmem:[%s7921_s27 + $0x5d0] sm:$0xff] }
 0x22e   : > { %5472 = vmatpush.bf16.msra.mxu1 %v6896_v58  ;;  %v6931_v58 = vld [vmem:[%s7921_s27 + $0x590] sm:$0xff] }
 0x22f   : > { %5459 = vmatpush.bf16.msra.mxu0 %v6887_v61  ;;  %v6923_v60 = vld [vmem:[%s7921_s27 + $0x550] sm:$0xff]  ;;  %v6914_v61 = vld [vmem:[%s7921_s27 + $0x508] sm:$0xff] }
 0x230   : > { %5487 = vmatpush.bf16.msra.mxu2 %v6903_v62  ;;  %v6930_v62 = vld [vmem:[%s7921_s27 + $0x588] sm:$0xff] }
 0x231   : > { %5501 = vmatpush.bf16.msra.mxu3 %v6911_v63  ;;  %v6938_v63 = vld [vmem:[%s7921_s27 + $0x5c8] sm:$0xff] }
 0x232   : > { %5473 = vmatpush.bf16.msra.mxu1 %v6895_v0  ;;  %v6922_v0 = vld [vmem:[%s7921_s27 + $0x548] sm:$0xff] }
 0x233   : > { %5460 = vmatpush.bf16.msra.mxu0 %v6886_v1  ;;  %v6913_v1 = vld [vmem:[%s7921_s27 + $0x500] sm:$0xff] }
 0x234   : > { %5488 = vmatpush.bf16.msra.mxu2 %v6902_v2  ;;  %v6929_v2 = vld [vmem:[%s7921_s27 + $0x580] sm:$0xff] }
 0x235   : > { %5502 = vmatpush.bf16.msra.mxu3 %v6910_v3  ;;  %v6937_v3 = vld [vmem:[%s7921_s27 + $0x5c0] sm:$0xff] }
 0x236   : > { %5474 = vmatpush.bf16.msra.mxu1 %v6894_v4  ;;  %v5888_v4 = vld [vmem:[%s8308_s0 + $0x50] sm:$0xf] }
 0x237   : > { %5461 = vmatpush.bf16.msra.mxu0 %v6885_v5  ;;  %v6750_v5 = vld [vmem:[%s8308_s0 + $0xb0] sm:$0xf0] }
 0x238   : > { %5489 = vmatpush.bf16.msra.mxu2 %v6901_v6  ;;  %v5896_v6 = vld [vmem:[%s8308_s0 + $0x58] sm:$0xf] }
 0x239   : > { %5503 = vmatpush.bf16.msra.mxu3 %v6909_v7  ;;  %v6751_v7 = vld [vmem:[%s8308_s0 + $0xb8] sm:$0xf0] }
 0x23a   : > { %5475 = vmatpush.bf16.msra.mxu1 %v6893_v8  ;;  %v6739_v8 = vld [vmem:[%s8308_s0 + $0x5c] sm:$0xf] }
 0x23b   : > { %5462 = vmatpush.bf16.msra.mxu0 %v6884_v9  ;;  %v5898_v9 = vld [vmem:[%s8308_s0 + $0xbc] sm:$0xf0] }
 0x23c   : > { %5490 = vmatpush.bf16.msra.mxu2 %v6900_v10  ;;  %v6948_v10 = vld [vmem:[%s7921_s27 + $0x618] sm:$0xff] }
 0x23d   : > { %5504 = vmatpush.bf16.msra.mxu3 %v6908_v11  ;;  %v6921_v11 = vld [vmem:[%s7921_s27 + $0x540] sm:$0xff] }
 0x23e   : > { %5476 = vmatpush.bf16.msra.mxu1 %v6892_v12  ;;  %v5889_v12 = vor.u32 %v6750_v5, %v5888_v4 }
 0x23f   : > { %5463 = vmatpush.bf16.msra.mxu0 %v6883_v13  ;;  %v6738_v13 = vld [vmem:[%s8308_s0 + $0x54] sm:$0xf] }
 0x240   : > { %5491 = vmatpush.bf16.msra.mxu2 %v6899_v14  ;;  %v5890_v14 = vld [vmem:[%s8308_s0 + $0xb4] sm:$0xf0] }
 0x241   : > { %5505 = vmatpush.bf16.msra.mxu3 %v6907_v15  ;;  %v5897_v15 = vor.u32 %v6751_v7, %v5896_v6 }
 0x242   : > { %5477 = vmatpush.bf16.msra.mxu1 %v6891_v16  ;;  %v5901_v16 = vor.u32 %v6739_v8, %v5898_v9  ;;  %v6954_v8 = vld [vmem:[%s7919_s25 + $0x28] sm:$0xff] }
 0x243   : > { %5464 = vmatpush.bf16.msra.mxu0 %v6882_v17  ;;  %v5893_v17 = vor.u32 %v6738_v13, %v5890_v14  ;;  %v6953_v13 = vld [vmem:[%s7919_s25 + $0x20] sm:$0xff] }
 0x244   : > { %5492 = vmatpush.bf16.msra.mxu2 %v6898_v18  ;;  %v6947_v18 = vld [vmem:[%s7921_s27 + $0x610] sm:$0xff] }
 0x245   : > { %5506 = vmatpush.bf16.msra.mxu3 %v6906_v19  ;;  %v6946_v19 = vld [vmem:[%s7921_s27 + $0x608] sm:$0xff] }
 0x246   : > { %5478 = vmatpush.bf16.msra.mxu1 %v6890_v20  ;;  %v6945_v20 = vld [vmem:[%s7921_s27 + $0x600] sm:$0xff] }
 0x247   : > { %5465 = vmatpush.bf16.msra.mxu0 %v6881_v21  ;;  %v5904_v21 = vld [vmem:[%s8308_s0 + $0x60] sm:$0xf] }
 0x248   : > { %5493 = vmatpush.bf16.msra.mxu2 %v6897_v22  ;;  %v6752_v22 = vld [vmem:[%s8308_s0 + $0xc0] sm:$0xf0] }
 0x249   : > { %5507 = vmatpush.bf16.msra.mxu3 %v6905_v23  ;;  %v5905_v23 = vor.u32 %v6752_v22, %v5904_v21 }
 0x24a   : > { %5479 = vmatpush.bf16.msra.mxu1 %v6889_v33  ;;  %5466 = vmatmul.bf16.vlgmr.msra.gmra.mxu0 %v5873_v36 }
 0x24b   : > { %5514 = vmatpush.bf16.msrb.mxu0 %v6920_v24  ;;  %5494 = vmatmul.bf16.vlgmr.msra.gmra.mxu2 %v5881_v37  ;;  %v5243_v24 = vpop.f32.mrf.mxu0  ;;  %v7000_v37 = vld [vmem:[%s3487_s15] ss:$0 sm:$0xff] }
 0x24c   : > { %5542 = vmatpush.bf16.msrb.mxu2 %v6936_v25  ;;  %5508 = vmatmul.bf16.vlgmr.msra.gmra.mxu3 %v5885_v39  ;;  %v5257_v25 = vpop.f32.mrf.mxu1  ;;  %v5244_v39 = vadd.f32 %v7000_v37, %v5243_v24 }
 0x24d   : > { %5556 = vmatpush.bf16.msrb.mxu3 %v6944_v30  ;;  %5480 = vmatmul.bf16.vlgmr.msra.gmra.mxu1 %v5877_v40 }
 0x24e   : > { %5528 = vmatpush.bf16.msrb.mxu1 %v6928_v38  ;;  %v5271_v26 = vpop.f32.mrf.mxu2 }
 0x24f   : > { %5515 = vmatpush.bf16.msrb.mxu0 %v6919_v41  ;;  %v5285_v28 = vpop.f32.mrf.mxu3 }
 0x250   : > { %5543 = vmatpush.bf16.msrb.mxu2 %v6935_v42  ;;  %v5258_v42 = vadd.f32 %v5257_v25, %v5244_v39  ;;  %v6951_v25 = vld [vmem:[%s7919_s25 + $0x10] sm:$0xff] }
 0x251   : > { %5557 = vmatpush.bf16.msrb.mxu3 %v6943_v43 }
 0x252   : > { %5529 = vmatpush.bf16.msrb.mxu1 %v6927_v44 }
 0x253   : > { %5516 = vmatpush.bf16.msrb.mxu0 %v6918_v45  ;;  %v5245_v27 = vpop.f32.mrf.mxu0 }
 0x254   : > { %5544 = vmatpush.bf16.msrb.mxu2 %v6934_v46  ;;  %v5259_v29 = vpop.f32.mrf.mxu1  ;;  %v5246_v45 = vadd.f32 %v7000_v37, %v5245_v27  ;;  %v5272_v46 = vadd.f32 %v5271_v26, %v5258_v42 }
 0x255   : > { %5558 = vmatpush.bf16.msrb.mxu3 %v6942_v47 }
 0x256   : > { %5530 = vmatpush.bf16.msrb.mxu1 %v6926_v48  ;;  %v5273_v30 = vpop.f32.mrf.mxu2  ;;  %v5260_v48 = vadd.f32 %v5259_v29, %v5246_v45  ;;  %v6950_v29 = vld [vmem:[%s7919_s25 + $0x8] sm:$0xff] }
 0x257   : > { %5517 = vmatpush.bf16.msrb.mxu0 %v6917_v49  ;;  %v5287_v32 = vpop.f32.mrf.mxu3 }
 0x258   : > { %5545 = vmatpush.bf16.msrb.mxu2 %v6933_v50  ;;  %v5286_v50 = vadd.f32 %v5285_v28, %v5272_v46 }
 0x259   : > { %5559 = vmatpush.bf16.msrb.mxu3 %v6941_v51 }
 0x25a   : > { %5531 = vmatpush.bf16.msrb.mxu1 %v6925_v52  ;;  %v5274_v52 = vadd.f32 %v5273_v30, %v5260_v48 }
 0x25b   : > { %5518 = vmatpush.bf16.msrb.mxu0 %v6916_v53 }
 0x25c   : > { %5546 = vmatpush.bf16.msrb.mxu2 %v6932_v54 }
 0x25d   : > { %5560 = vmatpush.bf16.msrb.mxu3 %v6940_v55  ;;  %v5288_v55 = vadd.f32 %v5287_v32, %v5274_v52 }
 0x25e   : > { %5532 = vmatpush.bf16.msrb.mxu1 %v6924_v56 }
 0x25f   : > { %5519 = vmatpush.bf16.msrb.mxu0 %v6915_v57 }
 0x260   : > { %5547 = vmatpush.bf16.msrb.mxu2 %v6931_v58 }
 0x261   : > { %5561 = vmatpush.bf16.msrb.mxu3 %v6939_v59 }
 0x262   : > { %5533 = vmatpush.bf16.msrb.mxu1 %v6923_v60  ;;  %v6956_v60 = vld [vmem:[%s7919_s25 + $0x38] sm:$0xff] }
 0x263   : > { %5520 = vmatpush.bf16.msrb.mxu0 %v6914_v61 }
 0x264   : > { %5548 = vmatpush.bf16.msrb.mxu2 %v6930_v62 }
 0x265   : > { %5562 = vmatpush.bf16.msrb.mxu3 %v6938_v63 }
 0x266   : > { %5534 = vmatpush.bf16.msrb.mxu1 %v6922_v0 }
 0x267   : > { %5521 = vmatpush.bf16.msrb.mxu0 %v6913_v1  ;;  %v5299_v31 = vpop.f32.mrf.mxu0 }
 0x268   : > { %5549 = vmatpush.bf16.msrb.mxu2 %v6929_v2  ;;  %v5300_v54 = vadd.f32 %v5299_v31, %v5286_v50 }
 0x269   : > { %5563 = vmatpush.bf16.msrb.mxu3 %v6937_v3  ;;  %v6955_v3 = vld [vmem:[%s7919_s25 + $0x30] sm:$0xff] }
 0x26a   : > { %5535 = vmatpush.bf16.msrb.mxu1 %v6921_v11  ;;  %5522 = vmatmul.bf16.vlgmr.msrb.gmra.mxu0 %v5889_v12  ;;  %v5313_v33 = vpop.f32.mrf.mxu1 }
 0x26b   : > { %5574 = vmatpush.bf16.msra.mxu0 %v6948_v10  ;;  %5550 = vmatmul.bf16.vlgmr.msrb.gmra.mxu2 %v5897_v15  ;;  %v5314_v58 = vadd.f32 %v5313_v33, %v5300_v54 }
 0x26c   : > { %5564 = vmatmul.bf16.vlgmr.msrb.gmra.mxu3 %v5901_v16 }
 0x26d   : > { %5536 = vmatmul.bf16.vlgmr.msrb.gmra.mxu1 %v5893_v17 }
 0x26e   : > { %v5327_v34 = vpop.f32.mrf.mxu2  ;;  %5653 = vmatpush.bf16.msra.mxu1 %v6956_v60 }
 0x26f   : > { %5575 = vmatpush.bf16.msra.mxu0 %v6947_v18  ;;  %v5301_v35 = vpop.f32.mrf.mxu0  ;;  %v5341_v36 = vpop.f32.mrf.mxu3  ;;  %v5328_v63 = vadd.f32 %v5327_v34, %v5314_v58 }
 0x270   : > { %v5302_v59 = vadd.f32 %v5301_v35, %v5288_v55  ;;  %v6949_v35 = vld [vmem:[%s7919_s25] sm:$0xff] }
 0x271   : > { %v5342_v4 = vadd.f32 %v5341_v36, %v5328_v63 }
 0x272   : > { %v5315_v38 = vpop.f32.mrf.mxu1  ;;  %5654 = vmatpush.bf16.msra.mxu1 %v6955_v3 }
 0x273   : > { %5576 = vmatpush.bf16.msra.mxu0 %v6946_v19  ;;  %v5316_v0 = vadd.f32 %v5315_v38, %v5302_v59  ;;  %v6952_v19 = vld [vmem:[%s7919_s25 + $0x18] sm:$0xff] }
 0x276   : > { %v5329_v40 = vpop.f32.mrf.mxu2  ;;  %5655 = vmatpush.bf16.msra.mxu1 %v6954_v8  ;;  %v5587_v8 = vld [vmem:[#allocation2] sm:$0xff] }
 0x277   : > { %5577 = vmatpush.bf16.msra.mxu0 %v6945_v20  ;;  %v5343_v43 = vpop.f32.mrf.mxu3  ;;  %v5330_v1 = vadd.f32 %v5329_v40, %v5316_v0 }
 0x279   : > { %v5344_v6 = vadd.f32 %v5343_v43, %v5330_v1 }
 0x27a   : > { %6690 = vmatmul.msk.bf16.vlgmr.msra.gmra.mxu0 %vm5230_vm0, %v5905_v23  ;;  %5656 = vmatpush.bf16.msra.mxu1 %v6953_v13 }
 0x27e   : > { %5657 = vmatpush.bf16.msra.mxu1 %v6952_v19 }
 0x282   : > { %5658 = vmatpush.bf16.msra.mxu1 %v6951_v25 }
 0x286   : > { %5659 = vmatpush.bf16.msra.mxu1 %v6950_v29 }
 0x287   : > { %v5355_v41 = vpop.f32.mrf.mxu0 }
 0x288   : > { %v5356_v7 = vadd.f32 %v5355_v41, %v5342_v4 }
 0x28a   : > { %v5369_v44 = vpop.f32.mrf.mxu1  ;;  %5660 = vmatpush.bf16.msra.mxu1 %v6949_v35 }
 0x28b   : > { %v5370_v12 = vadd.f32 %v5369_v44, %v5356_v7 }
 0x28e   : > { %v5383_v47 = vpop.f32.mrf.mxu2 }
 0x28f   : > { %v5357_v49 = vpop.f32.mrf.mxu0  ;;  %v5397_v51 = vpop.f32.mrf.mxu3  ;;  %v5384_v14 = vadd.f32 %v5383_v47, %v5370_v12 }
 0x290   : > { %v5358_v10 = vadd.f32 %v5357_v49, %v5344_v6 }
 0x291   : > { %v5398_v20 = vadd.f32 %v5397_v51, %v5384_v14 }
 0x292   : > { %v5371_v53 = vpop.f32.mrf.mxu1 }
 0x293   : > { %v5372_v15 = vadd.f32 %v5371_v53, %v5358_v10 }
 0x296   : > { %v5385_v56 = vpop.f32.mrf.mxu2 }
 0x297   : > { %v5399_v61 = vpop.f32.mrf.mxu3  ;;  %v5386_v18 = vadd.f32 %v5385_v56, %v5372_v15 }
 0x299   : > { %v5400_v23 = vadd.f32 %v5399_v61, %v5386_v18 }
 0x2a7   : > { %v5411_v57 = vpop.f32.mrf.mxu0 }
 0x2a8   : > { %v5412_v24 = vadd.f32 %v5411_v57, %v5398_v20 }
 0x2aa   : > { %v5425_v62 = vpop.f32.mrf.mxu1 }
 0x2ab   : > { %v5426_v28 = vadd.f32 %v5425_v62, %v5412_v24 }
 0x2ae   : > { %v5439_v2 = vpop.f32.mrf.mxu2 }
 0x2af   : > { %v5413_v5 = vpop.f32.mrf.mxu0  ;;  %v5453_v9 = vpop.f32.mrf.mxu3  ;;  %v5440_v31 = vadd.f32 %v5439_v2, %v5426_v28 }
 0x2b0   : > { %v5414_v26 = vadd.f32 %v5413_v5, %v5400_v23 }
 0x2b1   : > { %v5454_v37 = vadd.f32 %v5453_v9, %v5440_v31 }
 0x2b2   : > { %v5427_v11 = vpop.f32.mrf.mxu1 }
 0x2b3   : > { %v5428_v32 = vadd.f32 %v5427_v11, %v5414_v26  ;;  %v5588_v11 = vld [vmem:[#allocation2 + $0x8] sm:$0xff] }
 0x2b6   : > { %v5441_v16 = vpop.f32.mrf.mxu2 }
 0x2b7   : > { %v5455_v21 = vpop.f32.mrf.mxu3  ;;  %v5442_v34 = vadd.f32 %v5441_v16, %v5428_v32 }
 0x2b9   : > { %v5456_v38 = vadd.f32 %v5455_v21, %v5442_v34 }
 0x2c7   : > { %v5467_v17 = vpop.f32.mrf.mxu0 }
 0x2c8   : > { %v5468_v39 = vadd.f32 %v5467_v17, %v5454_v37 }
 0x2ca   : > { %v5481_v22 = vpop.f32.mrf.mxu1 }
 0x2cb   : > { %v5482_v43 = vadd.f32 %v5481_v22, %v5468_v39 }
 0x2ce   : > { %v5495_v27 = vpop.f32.mrf.mxu2 }
 0x2cf   : > { %v5469_v30 = vpop.f32.mrf.mxu0  ;;  %v5509_v33 = vpop.f32.mrf.mxu3  ;;  %v5496_v46 = vadd.f32 %v5495_v27, %v5482_v43 }
 0x2d0   : > { %v5470_v42 = vadd.f32 %v5469_v30, %v5456_v38 }
 0x2d1   : > { %v5510_v51 = vadd.f32 %v5509_v33, %v5496_v46 }
 0x2d2   : > { %v5483_v36 = vpop.f32.mrf.mxu1 }
 0x2d3   : > { %v5484_v47 = vadd.f32 %v5483_v36, %v5470_v42 }
 0x2d6   : > { %v5497_v40 = vpop.f32.mrf.mxu2 }
 0x2d7   : > { %v5511_v44 = vpop.f32.mrf.mxu3  ;;  %v5498_v48 = vadd.f32 %v5497_v40, %v5484_v47 }
 0x2d9   : > { %v5512_v52 = vadd.f32 %v5511_v44, %v5498_v48 }
 0x2e7   : > { %v5523_v41 = vpop.f32.mrf.mxu0 }
 0x2e8   : > { %v5524_v53 = vadd.f32 %v5523_v41, %v5510_v51 }
 0x2ea   : > { %v5537_v45 = vpop.f32.mrf.mxu1 }
 0x2eb   : > { %v5538_v57 = vadd.f32 %v5537_v45, %v5524_v53 }
 0x2ee   : > { %v5551_v49 = vpop.f32.mrf.mxu2 }
 0x2ef   : > { %v5525_v50 = vpop.f32.mrf.mxu0  ;;  %v5565_v54 = vpop.f32.mrf.mxu3  ;;  %v5552_v60 = vadd.f32 %v5551_v49, %v5538_v57 }
 0x2f0   : > { %v5526_v55 = vadd.f32 %v5525_v50, %v5512_v52 }
 0x2f1   : > { %v5566_v63 = vadd.f32 %v5565_v54, %v5552_v60 }
 0x2f2   : > { %v5539_v56 = vpop.f32.mrf.mxu1 }
 0x2f3   : > { %v5540_v61 = vadd.f32 %v5539_v56, %v5526_v55 }
 0x2f6   : > { %v5553_v58 = vpop.f32.mrf.mxu2 }
 0x2f7   : > { %v5579_v59 = vpop.f32.mrf.mxu0  ;;  %v5554_v62 = vadd.f32 %v5553_v58, %v5540_v61  ;;  %v5567_v0 = vpop.f32.mrf.mxu3 }
 0x2f8   : > { %v5580_v2 = vadd.f32 %v5579_v59, %v5566_v63 }
 0x2f9   : > { %v5568_v1 = vadd.f32 %v5567_v0, %v5554_v62 }
 0x2fa   : > { %v5584_v5 = vmax.f32 %v5580_v2, 0.0 }
 0x2ff   : > { %v5581_v3 = vpop.f32.mrf.mxu0 }
 0x300   : > { %v5582_v4 = vadd.f32 %v5581_v3, %v5568_v1 }
 0x302   : > { %v5585_v6 = vmax.f32 %v5582_v4, 0.0 }
 0x304   : > { %v5586_v7 = vpack.c.bf16 %v5585_v6, %v5584_v5 }
 0x306   : > { %5661 = vmatmul.bf16.vlgmr.msra.gmra.mxu1 %v5586_v7 }
 0x383   : > { %v5662_v9 = vpop.f32.mrf.mxu1 }
 0x384   : > { %v5667_v10 = vadd.f32 %v5662_v9, %v5587_v8 }
 0x386   : > { %5669 = vst [vmem:[#allocation2] sm:$0xff] %v5667_v10 }
 0x38a   : > { %5674 = sbr.rel (%p6723_p12) target bundleno = 921 (0x399), region = 100 }
 0x38b   : > { %v5664_v12 = vpop.f32.mrf.mxu1 }
 0x38c   : > { %v5668_v13 = vadd.f32 %v5664_v12, %v5588_v11 }
 0x38e   : > { %5670 = vst [vmem:[#allocation2 + $0x8] sm:$0xff] %v5668_v13 }
 0x38f   : > { %v5675_v14 = vld [vmem:[#allocation2] sm:$0xff] }
 0x390   : > { %v7001_v15 = vld [vmem:[%s8312_s4] ss:$0 sm:$0xff] }
 0x391   : > { %v5681_v17 = vadd.f32 %v7001_v15, %v5675_v14 }
 0x393   : > { %5683 = vst [vmem:[%s8313_s5] sm:$0xff] %v5681_v17 }
 0x395   : > { %v5676_v16 = vld [vmem:[#allocation2 + $0x8] sm:$0xff] }
 0x396   : > { %v5682_v18 = vadd.f32 %v7001_v15, %v5676_v16 }
 0x398   : > { %5684 = vst [vmem:[%s8313_s5 + $0x8] sm:$0xff] %v5682_v18 }
 0x399 PF: > { %s15_s22 = sadd.s32 1, %s7040_s22   ;;  %s8314_s18 = smov %s7028_s19 }
 0x39a   : > { %p12_p13 = scmp.ge.s32.totalorder %s15_s22, 6   ;;  %s8315_s19 = smov %s7108_s26 }
 0x39b   : > { %s8316_s20 = smov %s7036_s21  ;;  %s8317_s21 = smov %s8319_s23 }
 0x39c   :  { %14 = sbr.rel (!%p12_p13) target bundleno = 3 (0x3), region = 148 }

</bundles_post_ra>
